<compile_context>
chip_gen: v5e
topology: v5e:2x2
jax: 0.10.0
libtpu: 0.0.40
codegen_flags: <defaults>
</compile_context>

<pallas_src>
import functools
import math

import jax
import jax.numpy as jnp
from jax.experimental import pallas as pl
from jax.experimental.pallas import tpu as pltpu


def _round_up(x, m):
    return ((x + m - 1) // m) * m


def _pick_time_chunk(seq_len, bytes_per_step, budget_bytes):
    """Largest divisor of seq_len whose double-buffered footprint fits budget."""
    max_chunk = max(1, budget_bytes // max(1, 2 * bytes_per_step))
    for c in range(min(seq_len, max_chunk), 0, -1):
        if seq_len % c == 0:
            return c
    return 1


def bayes_lstm_layer_kernel(xp_ref, wh_ref, h0_ref, c0_ref,
                            out_ref, h_out_ref, c_out_ref,
                            *, chunk, hidden_pad, unroll):
    """Grid = (layer, time_chunk). The time recurrence for one chunk runs here.

    xp_ref    : (chunk, Bp, 4*Hp) precomputed x @ W_x + bias (forget bias folded)
    wh_ref    : (Hp, 4*Hp)        fused recurrent weights (f32 or bf16)
    h0/c0_ref : (Bp, Hp)          initial state for this layer
    out_ref   : (chunk, Bp, Hp)   per-timestep output of this layer
    h_out/c_out : (Bp, Hp)        final state; also the h/c carry across chunks
                                  (block index is constant along the chunk axis,
                                  so the block stays VMEM-resident per layer).
    """
    s = pl.program_id(1)
    Hp = hidden_pad

    # First chunk of a layer: seed the resident carry blocks from h0/c0.
    @pl.when(s == 0)
    def _():
        h_out_ref[...] = h0_ref[...]
        c_out_ref[...] = c0_ref[...]

    # Loop-invariant fused recurrent weights (single MXU tile).
    w = wh_ref[...]

    def step(t, carry):
        h, c = carry
        # One fused matmul per timestep; input projection arrives precomputed.
        gates = xp_ref[t] + jnp.dot(h.astype(w.dtype), w,
                                    preferred_element_type=jnp.float32)
        # Static, lane-aligned gate slices (Hp is a multiple of 128).
        g_i = gates[:, 0 * Hp:1 * Hp]
        g_j = gates[:, 1 * Hp:2 * Hp]
        g_f = gates[:, 2 * Hp:3 * Hp]   # forget bias already folded into bias
        g_o = gates[:, 3 * Hp:4 * Hp]

        new_c = c * jax.nn.sigmoid(g_f) + jax.nn.sigmoid(g_i) * jnp.tanh(g_j)
        new_h = jnp.tanh(new_c) * jax.nn.sigmoid(g_o)

        out_ref[t] = new_h.astype(out_ref.dtype)
        return new_h, new_c

    h_c = h_out_ref[...].astype(jnp.float32)
    c_c = c_out_ref[...].astype(jnp.float32)
    h_n, c_n = jax.lax.fori_loop(0, chunk, step, (h_c, c_c), unroll=unroll)

    # Carry (and, after the last chunk, the final state) written once per chunk.
    h_out_ref[...] = h_n.astype(h_out_ref.dtype)
    c_out_ref[...] = c_n.astype(c_out_ref.dtype)


def bayes_lstm_forward(x, weights, bias, h0, c0, *, forget_bias=1.0,
                       use_bf16_recurrent=False):
    """x: (S, B, H); weights: (L, 2H, 4H); bias: (L, 4H); h0/c0: (L, B, H)."""
    S, B, H = x.shape
    L = weights.shape[0]
    assert weights.shape == (L, 2 * H, 4 * H)
    assert bias.shape == (L, 4 * H)
    assert h0.shape == (L, B, H) and c0.shape == (L, B, H)

    # --- Lane/sublane-dense padding (zeros are inert for the recurrence) ----
    Bp = _round_up(B, 8)
    Hp = _round_up(H, 128)

    w_x = weights[:, :H, :].reshape(L, H, 4, H)   # gate order [i, j, f, o]
    w_h = weights[:, H:, :].reshape(L, H, 4, H)

    def pad_w(w):                                  # (L,H,4,H) -> (L,Hp,4*Hp)
        w = jnp.pad(w, ((0, 0), (0, Hp - H), (0, 0), (0, Hp - H)))
        return w.reshape(L, Hp, 4 * Hp)

    w_x_p = pad_w(w_x)
    w_h_p = pad_w(w_h)

    b = bias.reshape(L, 4, H)
    b = b.at[:, 2, :].add(forget_bias)            # fold forget bias into f gate
    b = jnp.pad(b, ((0, 0), (0, 0), (0, Hp - H))).reshape(L, 4 * Hp)

    x_p = jnp.pad(x, ((0, 0), (0, Bp - B), (0, Hp - H)))
    h0_p = jnp.pad(h0, ((0, 0), (0, Bp - B), (0, Hp - H))).astype(jnp.float32)
    c0_p = jnp.pad(c0, ((0, 0), (0, Bp - B), (0, Hp - H))).astype(jnp.float32)

    # Hoist the input projection out of the recurrence: one big batched matmul
    # over all layers and timesteps (no recurrent dependency on it).
    xproj = jnp.einsum('sbh,lhg->lsbg', x_p, w_x_p,
                       preferred_element_type=jnp.float32)
    xproj = (xproj + b[:, None, None, :]).astype(jnp.float32)  # (L,S,Bp,4*Hp)

    if use_bf16_recurrent:
        # bf16 is the native MXU rate on v5e/v6e/v7x; accumulation stays f32.
        w_h_p = w_h_p.astype(jnp.bfloat16)

    # --- Time chunking + VMEM budget ----------------------------------------
    bytes_per_step = Bp * (4 * Hp + Hp) * 4              # xp chunk + out chunk
    chunk = _pick_time_chunk(S, bytes_per_step, budget_bytes=12 * 2 ** 20)
    n_chunks = S // chunk

    wh_itemsize = 2 if use_bf16_recurrent else 4
    xp_blk = chunk * Bp * 4 * Hp * 4
    out_blk = chunk * Bp * Hp * 4
    wh_blk = Hp * 4 * Hp * wh_itemsize
    st_blk = Bp * Hp * 4
    needed = 2 * (xp_blk + out_blk + wh_blk) + 8 * st_blk   # double-buffered
    vmem_limit = int(min(64 * 2 ** 20, max(2 * needed, 16 * 2 ** 20)))

    gate_tile_bytes = Bp * 4 * Hp * 4
    if gate_tile_bytes <= 32 * 1024:
        unroll = 8
    elif gate_tile_bytes <= 128 * 1024:
        unroll = 4
    else:
        unroll = 2
    unroll = max(1, min(unroll, chunk))

    kernel = functools.partial(bayes_lstm_layer_kernel, chunk=chunk,
                               hidden_pad=Hp, unroll=unroll)

    xp_spec = pl.BlockSpec((None, chunk, Bp, 4 * Hp), lambda l, s: (l, s, 0, 0))
    wh_spec = pl.BlockSpec((None, Hp, 4 * Hp), lambda l, s: (l, 0, 0))
    st_spec = pl.BlockSpec((None, Bp, Hp), lambda l, s: (l, 0, 0))
    out_spec = pl.BlockSpec((None, chunk, Bp, Hp), lambda l, s: (l, s, 0, 0))

    grid_spec = pltpu.PrefetchScalarGridSpec(
        num_scalar_prefetch=0,
        grid=(L, n_chunks),                    # layers parallel, time serial
        in_specs=[xp_spec, wh_spec, st_spec, st_spec],
        out_specs=[out_spec, st_spec, st_spec],
    )

    out_all, h_n, c_n = pl.pallas_call(
        kernel,
        out_shape=(
            jax.ShapeDtypeStruct((L, S, Bp, Hp), x.dtype),
            jax.ShapeDtypeStruct((L, Bp, Hp), x.dtype),
            jax.ShapeDtypeStruct((L, Bp, Hp), x.dtype),
        ),
        grid_spec=grid_spec,
        compiler_params=pltpu.CompilerParams(
            dimension_semantics=("parallel", "arbitrary"),
            vmem_limit_bytes=vmem_limit),
    )(xproj, w_h_p, h0_p, c0_p)

    # Un-pad and keep only the last layer's per-timestep output (module semantics).
    output = out_all[L - 1, :, :B, :H]
    return output, (h_n[:, :B, :H], c_n[:, :B, :H])


def lstm_reference(x, weights, bias, h0, c0, forget_bias=1.0):
    """Pure-JAX reference mirroring the PyTorch forward()."""
    S, B, H = x.shape
    L = weights.shape[0]
    outs_last = None
    hs, cs = [], []
    for l in range(L):
        h, c = h0[l], c0[l]
        outs = []
        for t in range(S):
            concat = jnp.concatenate([x[t], h], axis=-1)
            gates = concat @ weights[l] + bias[l]
            i_g, j_g, f_g, o_g = jnp.split(gates, 4, axis=1)
            c = c * jax.nn.sigmoid(f_g + forget_bias) \
                + jax.nn.sigmoid(i_g) * jnp.tanh(j_g)
            h = jnp.tanh(c) * jax.nn.sigmoid(o_g)
            outs.append(h)
        outs_last = jnp.stack(outs, axis=0)
        hs.append(h)
        cs.append(c)
    return outs_last, (jnp.stack(hs, 0), jnp.stack(cs, 0))


if __name__ == "__main__":
    seq_len, batch, hidden, num_layers = 8, 2, 32, 2
    input_size = hidden          # module requires input_size == hidden_size
    init_scale = 0.1
    # prior.lstm_init() stand-in: deterministic rho range (sigma_mix = 0.5)
    sigma_mix = 0.5
    rho_max_init = math.log(math.exp(sigma_mix / 2.0) - 1.0)
    rho_min_init = math.log(math.exp(sigma_mix / 4.0) - 1.0)

    key = jax.random.PRNGKey(0)
    k_mu, k_rho, k_eps, k_x, k_h, k_c = jax.random.split(key, 6)

    # Bayesian parameters per layer: mu, rho (uniform init), bias = 0.
    mu = jax.random.uniform(k_mu, (num_layers, 2 * hidden, 4 * hidden),
                            jnp.float32, -init_scale, init_scale)
    rho = jax.random.uniform(k_rho, (num_layers, 2 * hidden, 4 * hidden),
                             jnp.float32, rho_min_init, rho_max_init)
    bias = jnp.zeros((num_layers, 4 * hidden), jnp.float32)

    # Weight sampling (the "Bayes" part): weights = mu + eps*(softplus(rho)+1e-5)
    eps = jax.random.normal(k_eps, mu.shape, jnp.float32)
    sigma = jax.nn.softplus(rho) + 1e-5
    weights = mu + eps * sigma

    # Inputs / initial state
    x = jax.random.normal(k_x, (seq_len, batch, input_size), jnp.float32)
    h0 = jax.random.normal(k_h, (num_layers, batch, hidden), jnp.float32)
    c0 = jax.random.normal(k_c, (num_layers, batch, hidden), jnp.float32)

    # --- f32 path (default): tight correctness check -----------------------
    output, (h_n, c_n) = bayes_lstm_forward(x, weights, bias, h0, c0)
    output = jax.block_until_ready(output)
    h_n = jax.block_until_ready(h_n)
    c_n = jax.block_until_ready(c_n)

    out_ref, (h_ref, c_ref) = lstm_reference(x, weights, bias, h0, c0)
    assert jnp.allclose(output, out_ref, rtol=1e-4, atol=1e-5)
    assert jnp.allclose(h_n, h_ref, rtol=1e-4, atol=1e-5)
    assert jnp.allclose(c_n, c_ref, rtol=1e-4, atol=1e-5)

    # --- bf16 recurrent-weight path: loose correctness check ---------------
    out_bf, (h_bf, c_bf) = bayes_lstm_forward(x, weights, bias, h0, c0,
                                              use_bf16_recurrent=True)
    out_bf = jax.block_until_ready(out_bf)
    assert jnp.allclose(out_bf, out_ref, rtol=5e-2, atol=5e-2)
    assert jnp.allclose(jax.block_until_ready(h_bf), h_ref, rtol=5e-2, atol=5e-2)
    assert jnp.allclose(jax.block_until_ready(c_bf), c_ref, rtol=5e-2, atol=5e-2)

    print("KERNEL_OK")
</pallas_src>

<mosaic_0001>
module attributes {stable_mosaic.version = 11 : i64} {
  func.func @bayes_lstm_layer_kernel(%arg0: i32, %arg1: i32, %arg2: memref<1x8x8x512xf32, #tpu.memory_space<vmem>>, %arg3: memref<1x128x512xf32, #tpu.memory_space<vmem>>, %arg4: memref<1x8x128xf32, #tpu.memory_space<vmem>>, %arg5: memref<1x8x128xf32, #tpu.memory_space<vmem>>, %arg6: memref<1x8x8x128xf32, #tpu.memory_space<vmem>>, %arg7: memref<1x8x128xf32, #tpu.memory_space<vmem>>, %arg8: memref<1x8x128xf32, #tpu.memory_space<vmem>>) attributes {dimension_semantics = [#tpu.dimension_semantics<parallel>, #tpu.dimension_semantics<arbitrary>], iteration_bounds = array<i64: 2, 1>, scalar_prefetch = 0 : i64, scratch_operands = 0 : i64, tpu.core_type = #tpu.core_type<tc>, window_params = [{transform_indices = @transform_0, window_bounds = array<i64: 1, 8, 8, 512>}, {transform_indices = @transform_1, window_bounds = array<i64: 1, 128, 512>}, {transform_indices = @transform_2, window_bounds = array<i64: 1, 8, 128>}, {transform_indices = @transform_3, window_bounds = array<i64: 1, 8, 128>}, {transform_indices = @transform_4, window_bounds = array<i64: 1, 8, 8, 128>}, {transform_indices = @transform_5, window_bounds = array<i64: 1, 8, 128>}, {transform_indices = @transform_6, window_bounds = array<i64: 1, 8, 128>}]} {
    %c0_i32 = arith.constant 0 : i32
    %0 = arith.cmpi eq, %arg1, %c0_i32 : i32
    %1 = arith.extui %0 : i1 to i32
    %c0_i32_0 = arith.constant 0 : i32
    %2 = arith.cmpi ne, %1, %c0_i32_0 : i32
    scf.if %2 {
      %c0_95 = arith.constant 0 : index
      %c0_96 = arith.constant 0 : index
      %c0_97 = arith.constant 0 : index
      %287 = vector.load %arg4[%c0_95, %c0_96, %c0_97] : memref<1x8x128xf32, #tpu.memory_space<vmem>>, vector<1x8x128xf32>
      %288 = vector.shape_cast %287 : vector<1x8x128xf32> to vector<8x128xf32>
      %c0_98 = arith.constant 0 : index
      %c0_99 = arith.constant 0 : index
      %c0_100 = arith.constant 0 : index
      %289 = vector.load %arg7[%c0_98, %c0_99, %c0_100] : memref<1x8x128xf32, #tpu.memory_space<vmem>>, vector<1x8x128xf32>
      %290 = vector.shape_cast %289 : vector<1x8x128xf32> to vector<8x128xf32>
      %291 = vector.shape_cast %288 : vector<8x128xf32> to vector<1x8x128xf32>
      tpu.vector_store %arg7[%c0_98, %c0_99, %c0_100], %291 {strides = array<i32>} : memref<1x8x128xf32, #tpu.memory_space<vmem>>, vector<1x8x128xf32>,
      %c0_101 = arith.constant 0 : index
      %c0_102 = arith.constant 0 : index
      %c0_103 = arith.constant 0 : index
      %292 = vector.load %arg5[%c0_101, %c0_102, %c0_103] : memref<1x8x128xf32, #tpu.memory_space<vmem>>, vector<1x8x128xf32>
      %293 = vector.shape_cast %292 : vector<1x8x128xf32> to vector<8x128xf32>
      %c0_104 = arith.constant 0 : index
      %c0_105 = arith.constant 0 : index
      %c0_106 = arith.constant 0 : index
      %294 = vector.load %arg8[%c0_104, %c0_105, %c0_106] : memref<1x8x128xf32, #tpu.memory_space<vmem>>, vector<1x8x128xf32>
      %295 = vector.shape_cast %294 : vector<1x8x128xf32> to vector<8x128xf32>
      %296 = vector.shape_cast %293 : vector<8x128xf32> to vector<1x8x128xf32>
      tpu.vector_store %arg8[%c0_104, %c0_105, %c0_106], %296 {strides = array<i32>} : memref<1x8x128xf32, #tpu.memory_space<vmem>>, vector<1x8x128xf32>,
    } else {
    }
    %c0 = arith.constant 0 : index
    %c0_1 = arith.constant 0 : index
    %c0_2 = arith.constant 0 : index
    %3 = vector.load %arg3[%c0, %c0_1, %c0_2] : memref<1x128x512xf32, #tpu.memory_space<vmem>>, vector<1x128x512xf32>
    %4 = vector.shape_cast %3 : vector<1x128x512xf32> to vector<128x512xf32>
    %c0_3 = arith.constant 0 : index
    %c0_4 = arith.constant 0 : index
    %c0_5 = arith.constant 0 : index
    %5 = vector.load %arg7[%c0_3, %c0_4, %c0_5] : memref<1x8x128xf32, #tpu.memory_space<vmem>>, vector<1x8x128xf32>
    %6 = vector.shape_cast %5 : vector<1x8x128xf32> to vector<8x128xf32>
    %c0_6 = arith.constant 0 : index
    %c0_7 = arith.constant 0 : index
    %c0_8 = arith.constant 0 : index
    %7 = vector.load %arg8[%c0_6, %c0_7, %c0_8] : memref<1x8x128xf32, #tpu.memory_space<vmem>>, vector<1x8x128xf32>
    %8 = vector.shape_cast %7 : vector<1x8x128xf32> to vector<8x128xf32>
    %c0_i32_9 = arith.constant 0 : i32
    %c0_10 = arith.constant 0 : index
    %9 = arith.index_cast %c0_i32_9 : i32 to index
    %c0_11 = arith.constant 0 : index
    %c0_12 = arith.constant 0 : index
    %10 = vector.load %arg2[%c0_10, %9, %c0_11, %c0_12] : memref<1x8x8x512xf32, #tpu.memory_space<vmem>>, vector<1x1x8x512xf32>
    %11 = vector.shape_cast %10 : vector<1x1x8x512xf32> to vector<8x512xf32>
    %cst = arith.constant dense<0.000000e+00> : vector<8x512xf32>
    %12 = tpu.matmul %6, %4, %cst {dimension_numbers = #tpu.dot_dimension_numbers<[1], [0], [0], [1], [0, 0, 1, 1], [], []>} : vector<8x128xf32>, vector<128x512xf32>, vector<8x512xf32> -> vector<8x512xf32>
    %13 = arith.addf %11, %12 : vector<8x512xf32>
    %14 = vector.extract_strided_slice %13 {offsets = [0, 0], sizes = [8, 128], strides = [1, 1]} : vector<8x512xf32> to vector<8x128xf32>
    %15 = vector.extract_strided_slice %13 {offsets = [0, 128], sizes = [8, 128], strides = [1, 1]} : vector<8x512xf32> to vector<8x128xf32>
    %16 = vector.extract_strided_slice %13 {offsets = [0, 256], sizes = [8, 128], strides = [1, 1]} : vector<8x512xf32> to vector<8x128xf32>
    %17 = vector.extract_strided_slice %13 {offsets = [0, 384], sizes = [8, 128], strides = [1, 1]} : vector<8x512xf32> to vector<8x128xf32>
    %18 = arith.negf %16 : vector<8x128xf32>
    %19 = math.exp %18 : vector<8x128xf32>
    %cst_13 = arith.constant 1.000000e+00 : f32
    %20 = vector.broadcast %cst_13 : f32 to vector<8x128xf32>
    %21 = arith.addf %20, %19 : vector<8x128xf32>
    %22 = arith.divf %20, %21 : vector<8x128xf32>
    %23 = arith.mulf %8, %22 : vector<8x128xf32>
    %24 = arith.negf %14 : vector<8x128xf32>
    %25 = math.exp %24 : vector<8x128xf32>
    %cst_14 = arith.constant 1.000000e+00 : f32
    %26 = vector.broadcast %cst_14 : f32 to vector<8x128xf32>
    %27 = arith.addf %26, %25 : vector<8x128xf32>
    %28 = arith.divf %26, %27 : vector<8x128xf32>
    %29 = math.tanh %15 : vector<8x128xf32>
    %30 = arith.mulf %28, %29 : vector<8x128xf32>
    %31 = arith.addf %23, %30 : vector<8x128xf32>
    %32 = math.tanh %31 : vector<8x128xf32>
    %33 = arith.negf %17 : vector<8x128xf32>
    %34 = math.exp %33 : vector<8x128xf32>
    %cst_15 = arith.constant 1.000000e+00 : f32
    %35 = vector.broadcast %cst_15 : f32 to vector<8x128xf32>
    %36 = arith.addf %35, %34 : vector<8x128xf32>
    %37 = arith.divf %35, %36 : vector<8x128xf32>
    %38 = arith.mulf %32, %37 : vector<8x128xf32>
    %c0_16 = arith.constant 0 : index
    %39 = arith.index_cast %c0_i32_9 : i32 to index
    %c0_17 = arith.constant 0 : index
    %c0_18 = arith.constant 0 : index
    %40 = vector.load %arg6[%c0_16, %39, %c0_17, %c0_18] : memref<1x8x8x128xf32, #tpu.memory_space<vmem>>, vector<1x1x8x128xf32>
    %41 = vector.shape_cast %40 : vector<1x1x8x128xf32> to vector<8x128xf32>
    %42 = vector.shape_cast %38 : vector<8x128xf32> to vector<1x1x8x128xf32>
    tpu.vector_store %arg6[%c0_16, %39, %c0_17, %c0_18], %42 {strides = array<i32>} : memref<1x8x8x128xf32, #tpu.memory_space<vmem>>, vector<1x1x8x128xf32>,
    %c1_i32 = arith.constant 1 : i32
    %c0_19 = arith.constant 0 : index
    %43 = arith.index_cast %c1_i32 : i32 to index
    %c0_20 = arith.constant 0 : index
    %c0_21 = arith.constant 0 : index
    %44 = vector.load %arg2[%c0_19, %43, %c0_20, %c0_21] : memref<1x8x8x512xf32, #tpu.memory_space<vmem>>, vector<1x1x8x512xf32>
    %45 = vector.shape_cast %44 : vector<1x1x8x512xf32> to vector<8x512xf32>
    %cst_22 = arith.constant dense<0.000000e+00> : vector<8x512xf32>
    %46 = tpu.matmul %38, %4, %cst_22 {dimension_numbers = #tpu.dot_dimension_numbers<[1], [0], [0], [1], [0, 0, 1, 1], [], []>} : vector<8x128xf32>, vector<128x512xf32>, vector<8x512xf32> -> vector<8x512xf32>
    %47 = arith.addf %45, %46 : vector<8x512xf32>
    %48 = vector.extract_strided_slice %47 {offsets = [0, 0], sizes = [8, 128], strides = [1, 1]} : vector<8x512xf32> to vector<8x128xf32>
    %49 = vector.extract_strided_slice %47 {offsets = [0, 128], sizes = [8, 128], strides = [1, 1]} : vector<8x512xf32> to vector<8x128xf32>
    %50 = vector.extract_strided_slice %47 {offsets = [0, 256], sizes = [8, 128], strides = [1, 1]} : vector<8x512xf32> to vector<8x128xf32>
    %51 = vector.extract_strided_slice %47 {offsets = [0, 384], sizes = [8, 128], strides = [1, 1]} : vector<8x512xf32> to vector<8x128xf32>
    %52 = arith.negf %50 : vector<8x128xf32>
    %53 = math.exp %52 : vector<8x128xf32>
    %cst_23 = arith.constant 1.000000e+00 : f32
    %54 = vector.broadcast %cst_23 : f32 to vector<8x128xf32>
    %55 = arith.addf %54, %53 : vector<8x128xf32>
    %56 = arith.divf %54, %55 : vector<8x128xf32>
    %57 = arith.mulf %31, %56 : vector<8x128xf32>
    %58 = arith.negf %48 : vector<8x128xf32>
    %59 = math.exp %58 : vector<8x128xf32>
    %cst_24 = arith.constant 1.000000e+00 : f32
    %60 = vector.broadcast %cst_24 : f32 to vector<8x128xf32>
    %61 = arith.addf %60, %59 : vector<8x128xf32>
    %62 = arith.divf %60, %61 : vector<8x128xf32>
    %63 = math.tanh %49 : vector<8x128xf32>
    %64 = arith.mulf %62, %63 : vector<8x128xf32>
    %65 = arith.addf %57, %64 : vector<8x128xf32>
    %66 = math.tanh %65 : vector<8x128xf32>
    %67 = arith.negf %51 : vector<8x128xf32>
    %68 = math.exp %67 : vector<8x128xf32>
    %cst_25 = arith.constant 1.000000e+00 : f32
    %69 = vector.broadcast %cst_25 : f32 to vector<8x128xf32>
    %70 = arith.addf %69, %68 : vector<8x128xf32>
    %71 = arith.divf %69, %70 : vector<8x128xf32>
    %72 = arith.mulf %66, %71 : vector<8x128xf32>
    %c0_26 = arith.constant 0 : index
    %73 = arith.index_cast %c1_i32 : i32 to index
    %c0_27 = arith.constant 0 : index
    %c0_28 = arith.constant 0 : index
    %74 = vector.load %arg6[%c0_26, %73, %c0_27, %c0_28] : memref<1x8x8x128xf32, #tpu.memory_space<vmem>>, vector<1x1x8x128xf32>
    %75 = vector.shape_cast %74 : vector<1x1x8x128xf32> to vector<8x128xf32>
    %76 = vector.shape_cast %72 : vector<8x128xf32> to vector<1x1x8x128xf32>
    tpu.vector_store %arg6[%c0_26, %73, %c0_27, %c0_28], %76 {strides = array<i32>} : memref<1x8x8x128xf32, #tpu.memory_space<vmem>>, vector<1x1x8x128xf32>,
    %c2_i32 = arith.constant 2 : i32
    %c0_29 = arith.constant 0 : index
    %77 = arith.index_cast %c2_i32 : i32 to index
    %c0_30 = arith.constant 0 : index
    %c0_31 = arith.constant 0 : index
    %78 = vector.load %arg2[%c0_29, %77, %c0_30, %c0_31] : memref<1x8x8x512xf32, #tpu.memory_space<vmem>>, vector<1x1x8x512xf32>
    %79 = vector.shape_cast %78 : vector<1x1x8x512xf32> to vector<8x512xf32>
    %cst_32 = arith.constant dense<0.000000e+00> : vector<8x512xf32>
    %80 = tpu.matmul %72, %4, %cst_32 {dimension_numbers = #tpu.dot_dimension_numbers<[1], [0], [0], [1], [0, 0, 1, 1], [], []>} : vector<8x128xf32>, vector<128x512xf32>, vector<8x512xf32> -> vector<8x512xf32>
    %81 = arith.addf %79, %80 : vector<8x512xf32>
    %82 = vector.extract_strided_slice %81 {offsets = [0, 0], sizes = [8, 128], strides = [1, 1]} : vector<8x512xf32> to vector<8x128xf32>
    %83 = vector.extract_strided_slice %81 {offsets = [0, 128], sizes = [8, 128], strides = [1, 1]} : vector<8x512xf32> to vector<8x128xf32>
    %84 = vector.extract_strided_slice %81 {offsets = [0, 256], sizes = [8, 128], strides = [1, 1]} : vector<8x512xf32> to vector<8x128xf32>
    %85 = vector.extract_strided_slice %81 {offsets = [0, 384], sizes = [8, 128], strides = [1, 1]} : vector<8x512xf32> to vector<8x128xf32>
    %86 = arith.negf %84 : vector<8x128xf32>
    %87 = math.exp %86 : vector<8x128xf32>
    %cst_33 = arith.constant 1.000000e+00 : f32
    %88 = vector.broadcast %cst_33 : f32 to vector<8x128xf32>
    %89 = arith.addf %88, %87 : vector<8x128xf32>
    %90 = arith.divf %88, %89 : vector<8x128xf32>
    %91 = arith.mulf %65, %90 : vector<8x128xf32>
    %92 = arith.negf %82 : vector<8x128xf32>
    %93 = math.exp %92 : vector<8x128xf32>
    %cst_34 = arith.constant 1.000000e+00 : f32
    %94 = vector.broadcast %cst_34 : f32 to vector<8x128xf32>
    %95 = arith.addf %94, %93 : vector<8x128xf32>
    %96 = arith.divf %94, %95 : vector<8x128xf32>
    %97 = math.tanh %83 : vector<8x128xf32>
    %98 = arith.mulf %96, %97 : vector<8x128xf32>
    %99 = arith.addf %91, %98 : vector<8x128xf32>
    %100 = math.tanh %99 : vector<8x128xf32>
    %101 = arith.negf %85 : vector<8x128xf32>
    %102 = math.exp %101 : vector<8x128xf32>
    %cst_35 = arith.constant 1.000000e+00 : f32
    %103 = vector.broadcast %cst_35 : f32 to vector<8x128xf32>
    %104 = arith.addf %103, %102 : vector<8x128xf32>
    %105 = arith.divf %103, %104 : vector<8x128xf32>
    %106 = arith.mulf %100, %105 : vector<8x128xf32>
    %c0_36 = arith.constant 0 : index
    %107 = arith.index_cast %c2_i32 : i32 to index
    %c0_37 = arith.constant 0 : index
    %c0_38 = arith.constant 0 : index
    %108 = vector.load %arg6[%c0_36, %107, %c0_37, %c0_38] : memref<1x8x8x128xf32, #tpu.memory_space<vmem>>, vector<1x1x8x128xf32>
    %109 = vector.shape_cast %108 : vector<1x1x8x128xf32> to vector<8x128xf32>
    %110 = vector.shape_cast %106 : vector<8x128xf32> to vector<1x1x8x128xf32>
    tpu.vector_store %arg6[%c0_36, %107, %c0_37, %c0_38], %110 {strides = array<i32>} : memref<1x8x8x128xf32, #tpu.memory_space<vmem>>, vector<1x1x8x128xf32>,
    %c3_i32 = arith.constant 3 : i32
    %c0_39 = arith.constant 0 : index
    %111 = arith.index_cast %c3_i32 : i32 to index
    %c0_40 = arith.constant 0 : index
    %c0_41 = arith.constant 0 : index
    %112 = vector.load %arg2[%c0_39, %111, %c0_40, %c0_41] : memref<1x8x8x512xf32, #tpu.memory_space<vmem>>, vector<1x1x8x512xf32>
    %113 = vector.shape_cast %112 : vector<1x1x8x512xf32> to vector<8x512xf32>
    %cst_42 = arith.constant dense<0.000000e+00> : vector<8x512xf32>
    %114 = tpu.matmul %106, %4, %cst_42 {dimension_numbers = #tpu.dot_dimension_numbers<[1], [0], [0], [1], [0, 0, 1, 1], [], []>} : vector<8x128xf32>, vector<128x512xf32>, vector<8x512xf32> -> vector<8x512xf32>
    %115 = arith.addf %113, %114 : vector<8x512xf32>
    %116 = vector.extract_strided_slice %115 {offsets = [0, 0], sizes = [8, 128], strides = [1, 1]} : vector<8x512xf32> to vector<8x128xf32>
    %117 = vector.extract_strided_slice %115 {offsets = [0, 128], sizes = [8, 128], strides = [1, 1]} : vector<8x512xf32> to vector<8x128xf32>
    %118 = vector.extract_strided_slice %115 {offsets = [0, 256], sizes = [8, 128], strides = [1, 1]} : vector<8x512xf32> to vector<8x128xf32>
    %119 = vector.extract_strided_slice %115 {offsets = [0, 384], sizes = [8, 128], strides = [1, 1]} : vector<8x512xf32> to vector<8x128xf32>
    %120 = arith.negf %118 : vector<8x128xf32>
    %121 = math.exp %120 : vector<8x128xf32>
    %cst_43 = arith.constant 1.000000e+00 : f32
    %122 = vector.broadcast %cst_43 : f32 to vector<8x128xf32>
    %123 = arith.addf %122, %121 : vector<8x128xf32>
    %124 = arith.divf %122, %123 : vector<8x128xf32>
    %125 = arith.mulf %99, %124 : vector<8x128xf32>
    %126 = arith.negf %116 : vector<8x128xf32>
    %127 = math.exp %126 : vector<8x128xf32>
    %cst_44 = arith.constant 1.000000e+00 : f32
    %128 = vector.broadcast %cst_44 : f32 to vector<8x128xf32>
    %129 = arith.addf %128, %127 : vector<8x128xf32>
    %130 = arith.divf %128, %129 : vector<8x128xf32>
    %131 = math.tanh %117 : vector<8x128xf32>
    %132 = arith.mulf %130, %131 : vector<8x128xf32>
    %133 = arith.addf %125, %132 : vector<8x128xf32>
    %134 = math.tanh %133 : vector<8x128xf32>
    %135 = arith.negf %119 : vector<8x128xf32>
    %136 = math.exp %135 : vector<8x128xf32>
    %cst_45 = arith.constant 1.000000e+00 : f32
    %137 = vector.broadcast %cst_45 : f32 to vector<8x128xf32>
    %138 = arith.addf %137, %136 : vector<8x128xf32>
    %139 = arith.divf %137, %138 : vector<8x128xf32>
    %140 = arith.mulf %134, %139 : vector<8x128xf32>
    %c0_46 = arith.constant 0 : index
    %141 = arith.index_cast %c3_i32 : i32 to index
    %c0_47 = arith.constant 0 : index
    %c0_48 = arith.constant 0 : index
    %142 = vector.load %arg6[%c0_46, %141, %c0_47, %c0_48] : memref<1x8x8x128xf32, #tpu.memory_space<vmem>>, vector<1x1x8x128xf32>
    %143 = vector.shape_cast %142 : vector<1x1x8x128xf32> to vector<8x128xf32>
    %144 = vector.shape_cast %140 : vector<8x128xf32> to vector<1x1x8x128xf32>
    tpu.vector_store %arg6[%c0_46, %141, %c0_47, %c0_48], %144 {strides = array<i32>} : memref<1x8x8x128xf32, #tpu.memory_space<vmem>>, vector<1x1x8x128xf32>,
    %c4_i32 = arith.constant 4 : i32
    %c0_49 = arith.constant 0 : index
    %145 = arith.index_cast %c4_i32 : i32 to index
    %c0_50 = arith.constant 0 : index
    %c0_51 = arith.constant 0 : index
    %146 = vector.load %arg2[%c0_49, %145, %c0_50, %c0_51] : memref<1x8x8x512xf32, #tpu.memory_space<vmem>>, vector<1x1x8x512xf32>
    %147 = vector.shape_cast %146 : vector<1x1x8x512xf32> to vector<8x512xf32>
    %cst_52 = arith.constant dense<0.000000e+00> : vector<8x512xf32>
    %148 = tpu.matmul %140, %4, %cst_52 {dimension_numbers = #tpu.dot_dimension_numbers<[1], [0], [0], [1], [0, 0, 1, 1], [], []>} : vector<8x128xf32>, vector<128x512xf32>, vector<8x512xf32> -> vector<8x512xf32>
    %149 = arith.addf %147, %148 : vector<8x512xf32>
    %150 = vector.extract_strided_slice %149 {offsets = [0, 0], sizes = [8, 128], strides = [1, 1]} : vector<8x512xf32> to vector<8x128xf32>
    %151 = vector.extract_strided_slice %149 {offsets = [0, 128], sizes = [8, 128], strides = [1, 1]} : vector<8x512xf32> to vector<8x128xf32>
    %152 = vector.extract_strided_slice %149 {offsets = [0, 256], sizes = [8, 128], strides = [1, 1]} : vector<8x512xf32> to vector<8x128xf32>
    %153 = vector.extract_strided_slice %149 {offsets = [0, 384], sizes = [8, 128], strides = [1, 1]} : vector<8x512xf32> to vector<8x128xf32>
    %154 = arith.negf %152 : vector<8x128xf32>
    %155 = math.exp %154 : vector<8x128xf32>
    %cst_53 = arith.constant 1.000000e+00 : f32
    %156 = vector.broadcast %cst_53 : f32 to vector<8x128xf32>
    %157 = arith.addf %156, %155 : vector<8x128xf32>
    %158 = arith.divf %156, %157 : vector<8x128xf32>
    %159 = arith.mulf %133, %158 : vector<8x128xf32>
    %160 = arith.negf %150 : vector<8x128xf32>
    %161 = math.exp %160 : vector<8x128xf32>
    %cst_54 = arith.constant 1.000000e+00 : f32
    %162 = vector.broadcast %cst_54 : f32 to vector<8x128xf32>
    %163 = arith.addf %162, %161 : vector<8x128xf32>
    %164 = arith.divf %162, %163 : vector<8x128xf32>
    %165 = math.tanh %151 : vector<8x128xf32>
    %166 = arith.mulf %164, %165 : vector<8x128xf32>
    %167 = arith.addf %159, %166 : vector<8x128xf32>
    %168 = math.tanh %167 : vector<8x128xf32>
    %169 = arith.negf %153 : vector<8x128xf32>
    %170 = math.exp %169 : vector<8x128xf32>
    %cst_55 = arith.constant 1.000000e+00 : f32
    %171 = vector.broadcast %cst_55 : f32 to vector<8x128xf32>
    %172 = arith.addf %171, %170 : vector<8x128xf32>
    %173 = arith.divf %171, %172 : vector<8x128xf32>
    %174 = arith.mulf %168, %173 : vector<8x128xf32>
    %c0_56 = arith.constant 0 : index
    %175 = arith.index_cast %c4_i32 : i32 to index
    %c0_57 = arith.constant 0 : index
    %c0_58 = arith.constant 0 : index
    %176 = vector.load %arg6[%c0_56, %175, %c0_57, %c0_58] : memref<1x8x8x128xf32, #tpu.memory_space<vmem>>, vector<1x1x8x128xf32>
    %177 = vector.shape_cast %176 : vector<1x1x8x128xf32> to vector<8x128xf32>
    %178 = vector.shape_cast %174 : vector<8x128xf32> to vector<1x1x8x128xf32>
    tpu.vector_store %arg6[%c0_56, %175, %c0_57, %c0_58], %178 {strides = array<i32>} : memref<1x8x8x128xf32, #tpu.memory_space<vmem>>, vector<1x1x8x128xf32>,
    %c5_i32 = arith.constant 5 : i32
    %c0_59 = arith.constant 0 : index
    %179 = arith.index_cast %c5_i32 : i32 to index
    %c0_60 = arith.constant 0 : index
    %c0_61 = arith.constant 0 : index
    %180 = vector.load %arg2[%c0_59, %179, %c0_60, %c0_61] : memref<1x8x8x512xf32, #tpu.memory_space<vmem>>, vector<1x1x8x512xf32>
    %181 = vector.shape_cast %180 : vector<1x1x8x512xf32> to vector<8x512xf32>
    %cst_62 = arith.constant dense<0.000000e+00> : vector<8x512xf32>
    %182 = tpu.matmul %174, %4, %cst_62 {dimension_numbers = #tpu.dot_dimension_numbers<[1], [0], [0], [1], [0, 0, 1, 1], [], []>} : vector<8x128xf32>, vector<128x512xf32>, vector<8x512xf32> -> vector<8x512xf32>
    %183 = arith.addf %181, %182 : vector<8x512xf32>
    %184 = vector.extract_strided_slice %183 {offsets = [0, 0], sizes = [8, 128], strides = [1, 1]} : vector<8x512xf32> to vector<8x128xf32>
    %185 = vector.extract_strided_slice %183 {offsets = [0, 128], sizes = [8, 128], strides = [1, 1]} : vector<8x512xf32> to vector<8x128xf32>
    %186 = vector.extract_strided_slice %183 {offsets = [0, 256], sizes = [8, 128], strides = [1, 1]} : vector<8x512xf32> to vector<8x128xf32>
    %187 = vector.extract_strided_slice %183 {offsets = [0, 384], sizes = [8, 128], strides = [1, 1]} : vector<8x512xf32> to vector<8x128xf32>
    %188 = arith.negf %186 : vector<8x128xf32>
    %189 = math.exp %188 : vector<8x128xf32>
    %cst_63 = arith.constant 1.000000e+00 : f32
    %190 = vector.broadcast %cst_63 : f32 to vector<8x128xf32>
    %191 = arith.addf %190, %189 : vector<8x128xf32>
    %192 = arith.divf %190, %191 : vector<8x128xf32>
    %193 = arith.mulf %167, %192 : vector<8x128xf32>
    %194 = arith.negf %184 : vector<8x128xf32>
    %195 = math.exp %194 : vector<8x128xf32>
    %cst_64 = arith.constant 1.000000e+00 : f32
    %196 = vector.broadcast %cst_64 : f32 to vector<8x128xf32>
    %197 = arith.addf %196, %195 : vector<8x128xf32>
    %198 = arith.divf %196, %197 : vector<8x128xf32>
    %199 = math.tanh %185 : vector<8x128xf32>
    %200 = arith.mulf %198, %199 : vector<8x128xf32>
    %201 = arith.addf %193, %200 : vector<8x128xf32>
    %202 = math.tanh %201 : vector<8x128xf32>
    %203 = arith.negf %187 : vector<8x128xf32>
    %204 = math.exp %203 : vector<8x128xf32>
    %cst_65 = arith.constant 1.000000e+00 : f32
    %205 = vector.broadcast %cst_65 : f32 to vector<8x128xf32>
    %206 = arith.addf %205, %204 : vector<8x128xf32>
    %207 = arith.divf %205, %206 : vector<8x128xf32>
    %208 = arith.mulf %202, %207 : vector<8x128xf32>
    %c0_66 = arith.constant 0 : index
    %209 = arith.index_cast %c5_i32 : i32 to index
    %c0_67 = arith.constant 0 : index
    %c0_68 = arith.constant 0 : index
    %210 = vector.load %arg6[%c0_66, %209, %c0_67, %c0_68] : memref<1x8x8x128xf32, #tpu.memory_space<vmem>>, vector<1x1x8x128xf32>
    %211 = vector.shape_cast %210 : vector<1x1x8x128xf32> to vector<8x128xf32>
    %212 = vector.shape_cast %208 : vector<8x128xf32> to vector<1x1x8x128xf32>
    tpu.vector_store %arg6[%c0_66, %209, %c0_67, %c0_68], %212 {strides = array<i32>} : memref<1x8x8x128xf32, #tpu.memory_space<vmem>>, vector<1x1x8x128xf32>,
    %c6_i32 = arith.constant 6 : i32
    %c0_69 = arith.constant 0 : index
    %213 = arith.index_cast %c6_i32 : i32 to index
    %c0_70 = arith.constant 0 : index
    %c0_71 = arith.constant 0 : index
    %214 = vector.load %arg2[%c0_69, %213, %c0_70, %c0_71] : memref<1x8x8x512xf32, #tpu.memory_space<vmem>>, vector<1x1x8x512xf32>
    %215 = vector.shape_cast %214 : vector<1x1x8x512xf32> to vector<8x512xf32>
    %cst_72 = arith.constant dense<0.000000e+00> : vector<8x512xf32>
    %216 = tpu.matmul %208, %4, %cst_72 {dimension_numbers = #tpu.dot_dimension_numbers<[1], [0], [0], [1], [0, 0, 1, 1], [], []>} : vector<8x128xf32>, vector<128x512xf32>, vector<8x512xf32> -> vector<8x512xf32>
    %217 = arith.addf %215, %216 : vector<8x512xf32>
    %218 = vector.extract_strided_slice %217 {offsets = [0, 0], sizes = [8, 128], strides = [1, 1]} : vector<8x512xf32> to vector<8x128xf32>
    %219 = vector.extract_strided_slice %217 {offsets = [0, 128], sizes = [8, 128], strides = [1, 1]} : vector<8x512xf32> to vector<8x128xf32>
    %220 = vector.extract_strided_slice %217 {offsets = [0, 256], sizes = [8, 128], strides = [1, 1]} : vector<8x512xf32> to vector<8x128xf32>
    %221 = vector.extract_strided_slice %217 {offsets = [0, 384], sizes = [8, 128], strides = [1, 1]} : vector<8x512xf32> to vector<8x128xf32>
    %222 = arith.negf %220 : vector<8x128xf32>
    %223 = math.exp %222 : vector<8x128xf32>
    %cst_73 = arith.constant 1.000000e+00 : f32
    %224 = vector.broadcast %cst_73 : f32 to vector<8x128xf32>
    %225 = arith.addf %224, %223 : vector<8x128xf32>
    %226 = arith.divf %224, %225 : vector<8x128xf32>
    %227 = arith.mulf %201, %226 : vector<8x128xf32>
    %228 = arith.negf %218 : vector<8x128xf32>
    %229 = math.exp %228 : vector<8x128xf32>
    %cst_74 = arith.constant 1.000000e+00 : f32
    %230 = vector.broadcast %cst_74 : f32 to vector<8x128xf32>
    %231 = arith.addf %230, %229 : vector<8x128xf32>
    %232 = arith.divf %230, %231 : vector<8x128xf32>
    %233 = math.tanh %219 : vector<8x128xf32>
    %234 = arith.mulf %232, %233 : vector<8x128xf32>
    %235 = arith.addf %227, %234 : vector<8x128xf32>
    %236 = math.tanh %235 : vector<8x128xf32>
    %237 = arith.negf %221 : vector<8x128xf32>
    %238 = math.exp %237 : vector<8x128xf32>
    %cst_75 = arith.constant 1.000000e+00 : f32
    %239 = vector.broadcast %cst_75 : f32 to vector<8x128xf32>
    %240 = arith.addf %239, %238 : vector<8x128xf32>
    %241 = arith.divf %239, %240 : vector<8x128xf32>
    %242 = arith.mulf %236, %241 : vector<8x128xf32>
    %c0_76 = arith.constant 0 : index
    %243 = arith.index_cast %c6_i32 : i32 to index
    %c0_77 = arith.constant 0 : index
    %c0_78 = arith.constant 0 : index
    %244 = vector.load %arg6[%c0_76, %243, %c0_77, %c0_78] : memref<1x8x8x128xf32, #tpu.memory_space<vmem>>, vector<1x1x8x128xf32>
    %245 = vector.shape_cast %244 : vector<1x1x8x128xf32> to vector<8x128xf32>
    %246 = vector.shape_cast %242 : vector<8x128xf32> to vector<1x1x8x128xf32>
    tpu.vector_store %arg6[%c0_76, %243, %c0_77, %c0_78], %246 {strides = array<i32>} : memref<1x8x8x128xf32, #tpu.memory_space<vmem>>, vector<1x1x8x128xf32>,
    %c7_i32 = arith.constant 7 : i32
    %c0_79 = arith.constant 0 : index
    %247 = arith.index_cast %c7_i32 : i32 to index
    %c0_80 = arith.constant 0 : index
    %c0_81 = arith.constant 0 : index
    %248 = vector.load %arg2[%c0_79, %247, %c0_80, %c0_81] : memref<1x8x8x512xf32, #tpu.memory_space<vmem>>, vector<1x1x8x512xf32>
    %249 = vector.shape_cast %248 : vector<1x1x8x512xf32> to vector<8x512xf32>
    %cst_82 = arith.constant dense<0.000000e+00> : vector<8x512xf32>
    %250 = tpu.matmul %242, %4, %cst_82 {dimension_numbers = #tpu.dot_dimension_numbers<[1], [0], [0], [1], [0, 0, 1, 1], [], []>} : vector<8x128xf32>, vector<128x512xf32>, vector<8x512xf32> -> vector<8x512xf32>
    %251 = arith.addf %249, %250 : vector<8x512xf32>
    %252 = vector.extract_strided_slice %251 {offsets = [0, 0], sizes = [8, 128], strides = [1, 1]} : vector<8x512xf32> to vector<8x128xf32>
    %253 = vector.extract_strided_slice %251 {offsets = [0, 128], sizes = [8, 128], strides = [1, 1]} : vector<8x512xf32> to vector<8x128xf32>
    %254 = vector.extract_strided_slice %251 {offsets = [0, 256], sizes = [8, 128], strides = [1, 1]} : vector<8x512xf32> to vector<8x128xf32>
    %255 = vector.extract_strided_slice %251 {offsets = [0, 384], sizes = [8, 128], strides = [1, 1]} : vector<8x512xf32> to vector<8x128xf32>
    %256 = arith.negf %254 : vector<8x128xf32>
    %257 = math.exp %256 : vector<8x128xf32>
    %cst_83 = arith.constant 1.000000e+00 : f32
    %258 = vector.broadcast %cst_83 : f32 to vector<8x128xf32>
    %259 = arith.addf %258, %257 : vector<8x128xf32>
    %260 = arith.divf %258, %259 : vector<8x128xf32>
    %261 = arith.mulf %235, %260 : vector<8x128xf32>
    %262 = arith.negf %252 : vector<8x128xf32>
    %263 = math.exp %262 : vector<8x128xf32>
    %cst_84 = arith.constant 1.000000e+00 : f32
    %264 = vector.broadcast %cst_84 : f32 to vector<8x128xf32>
    %265 = arith.addf %264, %263 : vector<8x128xf32>
    %266 = arith.divf %264, %265 : vector<8x128xf32>
    %267 = math.tanh %253 : vector<8x128xf32>
    %268 = arith.mulf %266, %267 : vector<8x128xf32>
    %269 = arith.addf %261, %268 : vector<8x128xf32>
    %270 = math.tanh %269 : vector<8x128xf32>
    %271 = arith.negf %255 : vector<8x128xf32>
    %272 = math.exp %271 : vector<8x128xf32>
    %cst_85 = arith.constant 1.000000e+00 : f32
    %273 = vector.broadcast %cst_85 : f32 to vector<8x128xf32>
    %274 = arith.addf %273, %272 : vector<8x128xf32>
    %275 = arith.divf %273, %274 : vector<8x128xf32>
    %276 = arith.mulf %270, %275 : vector<8x128xf32>
    %c0_86 = arith.constant 0 : index
    %277 = arith.index_cast %c7_i32 : i32 to index
    %c0_87 = arith.constant 0 : index
    %c0_88 = arith.constant 0 : index
    %278 = vector.load %arg6[%c0_86, %277, %c0_87, %c0_88] : memref<1x8x8x128xf32, #tpu.memory_space<vmem>>, vector<1x1x8x128xf32>
    %279 = vector.shape_cast %278 : vector<1x1x8x128xf32> to vector<8x128xf32>
    %280 = vector.shape_cast %276 : vector<8x128xf32> to vector<1x1x8x128xf32>
    tpu.vector_store %arg6[%c0_86, %277, %c0_87, %c0_88], %280 {strides = array<i32>} : memref<1x8x8x128xf32, #tpu.memory_space<vmem>>, vector<1x1x8x128xf32>,
    %c8_i32 = arith.constant 8 : i32
    %c0_89 = arith.constant 0 : index
    %c0_90 = arith.constant 0 : index
    %c0_91 = arith.constant 0 : index
    %281 = vector.load %arg7[%c0_89, %c0_90, %c0_91] : memref<1x8x128xf32, #tpu.memory_space<vmem>>, vector<1x8x128xf32>
    %282 = vector.shape_cast %281 : vector<1x8x128xf32> to vector<8x128xf32>
    %283 = vector.shape_cast %276 : vector<8x128xf32> to vector<1x8x128xf32>
    tpu.vector_store %arg7[%c0_89, %c0_90, %c0_91], %283 {strides = array<i32>} : memref<1x8x128xf32, #tpu.memory_space<vmem>>, vector<1x8x128xf32>,
    %c0_92 = arith.constant 0 : index
    %c0_93 = arith.constant 0 : index
    %c0_94 = arith.constant 0 : index
    %284 = vector.load %arg8[%c0_92, %c0_93, %c0_94] : memref<1x8x128xf32, #tpu.memory_space<vmem>>, vector<1x8x128xf32>
    %285 = vector.shape_cast %284 : vector<1x8x128xf32> to vector<8x128xf32>
    %286 = vector.shape_cast %269 : vector<8x128xf32> to vector<1x8x128xf32>
    tpu.vector_store %arg8[%c0_92, %c0_93, %c0_94], %286 {strides = array<i32>} : memref<1x8x128xf32, #tpu.memory_space<vmem>>, vector<1x8x128xf32>,
    return
  }
  func.func @transform_0(%arg0: i32, %arg1: i32) -> (i32, i32, i32, i32) {
    %c0_i32 = arith.constant 0 : i32
    %c0_i32_0 = arith.constant 0 : i32
    %c0_i32_1 = arith.constant 0 : i32
    return %arg0, %arg1, %c0_i32, %c0_i32_0 : i32, i32, i32, i32
  }
  func.func @transform_1(%arg0: i32, %arg1: i32) -> (i32, i32, i32) {
    %c0_i32 = arith.constant 0 : i32
    %c0_i32_0 = arith.constant 0 : i32
    %c0_i32_1 = arith.constant 0 : i32
    return %arg0, %c0_i32, %c0_i32_0 : i32, i32, i32
  }
  func.func @transform_2(%arg0: i32, %arg1: i32) -> (i32, i32, i32) {
    %c0_i32 = arith.constant 0 : i32
    %c0_i32_0 = arith.constant 0 : i32
    %c0_i32_1 = arith.constant 0 : i32
    return %arg0, %c0_i32, %c0_i32_0 : i32, i32, i32
  }
  func.func @transform_3(%arg0: i32, %arg1: i32) -> (i32, i32, i32) {
    %c0_i32 = arith.constant 0 : i32
    %c0_i32_0 = arith.constant 0 : i32
    %c0_i32_1 = arith.constant 0 : i32
    return %arg0, %c0_i32, %c0_i32_0 : i32, i32, i32
  }
  func.func @transform_4(%arg0: i32, %arg1: i32) -> (i32, i32, i32, i32) {
    %c0_i32 = arith.constant 0 : i32
    %c0_i32_0 = arith.constant 0 : i32
    %c0_i32_1 = arith.constant 0 : i32
    return %arg0, %arg1, %c0_i32, %c0_i32_0 : i32, i32, i32, i32
  }
  func.func @transform_5(%arg0: i32, %arg1: i32) -> (i32, i32, i32) {
    %c0_i32 = arith.constant 0 : i32
    %c0_i32_0 = arith.constant 0 : i32
    %c0_i32_1 = arith.constant 0 : i32
    return %arg0, %c0_i32, %c0_i32_0 : i32, i32, i32
  }
  func.func @transform_6(%arg0: i32, %arg1: i32) -> (i32, i32, i32) {
    %c0_i32 = arith.constant 0 : i32
    %c0_i32_0 = arith.constant 0 : i32
    %c0_i32_1 = arith.constant 0 : i32
    return %arg0, %c0_i32, %c0_i32_0 : i32, i32, i32
  }
}

</mosaic_0001>

<bundles_post_ra>
// kernel: tpu_custom_call.1
= control target key start
LH: loop header
LB: loop body
LE: loop exit
PB: predicated region body
PF: predicated region fallthrough
CT: control target
= control target key end

     0   :  { %s3908_s0 = inlined_call_operand.hbm [shape: f32[2,8,8,512], index: 0, kind: input, shape index: {}]   ;;  %s3909_s1 = inlined_call_operand.hbm [shape: f32[2,128,512], index: 1, kind: input, shape index: {}]   ;;  %s3910_s2 = inlined_call_operand.hbm [shape: f32[2,8,128], index: 2, kind: input, shape index: {}]   ;;  %s3911_s3 = inlined_call_operand.hbm [shape: f32[2,8,128], index: 3, kind: input, shape index: {}]   ;;  %s3912_s4 = inlined_call_operand.hbm [shape: f32[2,8,8,128], index: 4, kind: output, shape index: {0}]   ;;  %s3913_s5 = inlined_call_operand.hbm [shape: f32[2,8,128], index: 5, kind: output, shape index: {1}]   ;;  %s3914_s6 = inlined_call_operand.hbm [shape: f32[2,8,128], index: 6, kind: output, shape index: {2}]  }
   0x1   :  { %4031 = sst [smem:[#allocation53_spill]] %s3909_s1 }
   0x2   :  { %4032 = sst [smem:[#allocation54_spill]] %s3914_s6 }
   0x3   :  { %12 = vsyncpa [#allocation3], 0 }
   0x4   :  { %14 = vsyncpa [#allocation3 + $0x1], 0 }
   0x5   :  { %15 = vsyncpa [#allocation6], 0 }
   0x6   :  { %17 = vsyncpa [#allocation6 + $0x1], 0 }
   0x7   :  { %18 = vsyncpa [#allocation9], 0 }
   0x8   :  { %20 = vsyncpa [#allocation9 + $0x1], 0 }
   0x9   :  { %21 = vsyncpa [#allocation4], 0 }
   0xa   :  { %23 = vsyncpa [#allocation4 + $0x1], 0 }
   0xb   :  { %24 = vsyncpa [#allocation12], 0 }
   0xc   :  { %26 = vsyncpa [#allocation12 + $0x1], 0  ;;  %s2693_s21 = smov 0   ;;  %s2695_s22 = smov 0  }
   0xd   :  { %s2697_s23 = smov 0   ;;  %s2699_s24 = smov 0  }
   0xe   :  { %s2701_s25 = smov 0   ;;  %s2703_s26 = smov 0  }
   0xf LB: > { %4033 = sst [smem:[#allocation19_spill]] %s2632_s21  ;;  %s2724_s27 = sadd.s32 4294967295, %s2652_s26   ;;  %s2652_s26 = sphi %s2703_s26, %s32_s26   ;;  %s2648_s25 = sphi %s2701_s25, %s4217_s25   ;;  %s2644_s24 = sphi %s2699_s24, %s4216_s24   ;;  %s2640_s23 = sphi %s2697_s23, %s4212_s23   ;;  %s2636_s22 = sphi %s2695_s22, %s4215_s22   ;;  %s2632_s21 = sphi %s2693_s21, %s4214_s21  }
  0x10   : > { %4034 = sst [smem:[#allocation20_spill]] %s2640_s23  ;;  %s3915_s28 = sadd.s32 4294967294, %s2652_s26  }
  0x11   : > { %4035 = sst [smem:[#allocation21_spill]] %s2652_s26  ;;  %s44_s29 = sadd.s32 1, %s2648_s25 }
  0x12   : > { %s53_s30 = sadd.s32 1, %s2640_s23  ;;  %p46_p0 = scmp.ge.s32.totalorder %s44_s29, 2 }
  0x13   : > { %p60_p1 = scmp.ne.s32.totalorder %s2640_s23, %s2636_s22  ;;  %p61_p2 = scmp.eq.s32.totalorder %s2652_s26, 0 }
  0x14   : > { %p66_p3 = scmp.ne.s32.totalorder %s2636_s22, %s2632_s21  ;;  %s4219_s29 = smov (%p46_p0, %s44_s29), 0 }
  0x15   : > { %4036 = sst [smem:[#allocation22_spill]] %s4219_s29  ;;  %p2736_p4 = por %p61_p2, %p60_p1 }
  0x16   : > { %p67_p5 = scmp.eq.s32.totalorder %s2724_s27, 0  ;;  %s48_s8 = ssub.s32 %s2648_s25, %s4219_s29 }
  0x17   : > { %p170_p6 = scmp.eq.s32.totalorder %s2724_s27, 1  ;;  %p51_p7 = scmp.eq.s32.totalorder %s48_s8, 0 }
  0x18   : > { %p2744_p8 = por %p67_p5, %p66_p3  ;;  %p176_p10 = scmp.eq.s32.totalorder %s3915_s28, 1 }
  0x19   : > { %p2748_p9 = por %p170_p6, %p60_p1  ;;  %p2009_p12 = scmp.ge.s32.totalorder %s2652_s26, 2 }
  0x1a   : > { %s2755_s11 = scalar_select %p51_p7, %s2640_s23, %s53_s30  }
  0x1b   : > { %s4039_s10 = scalar_select %p2748_p9, 1, 0 }
  0x1c   : > { %4041 = sst [smem:[#allocation24_spill]] %s2755_s11  ;;  %p2757_p11 = por %p176_p10, %p66_p3 }
  0x1d   : > { %4040 = sst [smem:[#allocation23_spill]] %s4039_s10  ;;  %p2136_p13 = scmp.lt.s32.totalorder %s2652_s26, 2 }
  0x1e   : > { %s4042_s12 = scalar_select %p2757_p11, 1, 0 }
  0x1f   : > { %s2764_s13 = sand.u32 1, %s2640_s23   ;;  %p2768_p0 = pnand %p2136_p13, %p2736_p4 }
  0x20   : > { %4043 = sst [smem:[#allocation25_spill]] %s4042_s12  ;;  %s273_s15 = sand.u32 1, %s2652_s26  }
  0x21   : > { %s2013_s16 = sshll.u32 %s2764_s13, 9  ;;  %s2097_s17 = sshll.u32 %s2648_s25, 9 }
  0x22   : > { %s277_s18 = scalar_lea.vmem [#allocation5], %s2013_s16  ;;  %s4045_s1 = sld [smem:[#allocation53_spill]] }
  0x23   : > { %s285_s19 = sshll.u32 %s277_s18, 4  ;;  %p2020_p1 = scmp.ge.s32.totalorder %s2652_s26, 1  ;;  %s286_s19 = int_to_ptr.vmem [resolvable:$true] %s285_s19 }
  0x24   : > { %p331_p2 = scmp.lt.s32.totalorder %s2652_s26, 3  ;;  %s274_s7 = scalar_lea.sflag [#allocation6], %s273_s15 }
  0x25   : > { %s2654_s29 = smov 512   ;;  %s2655_s11 = smov 32  }
  0x26   : > { %p2782_p3 = pnand %p2020_p1, %p331_p2  ;;  %s2010_s18 = sshll.u32 %s2764_s13, 8 }
  0x27   : > { %s252_s23 = scalar_lea.vmem [#allocation2], %s2010_s18  ;;  %s249_s15 = scalar_lea.sflag [#allocation3], %s2764_s13 }
  0x28   : > { %s282_s8 = scalar_lea.hbm %s4045_s1, %s2097_s17  ;;  %s2096_s17 = sshll.u32 %s2648_s25, 8 }
  0x29   : > { %s283_s28 = sshll.u32 %s282_s8, 4  ;;  %s260_s8 = scalar_lea.hbm %s3908_s0, %s2096_s17  ;;  %s284_s28 = int_to_ptr.hbm [resolvable:$true] %s283_s28 }
  0x2a   : > { %2119 = dma.hbm_to_vmem [thread:$0]  (!%p2768_p0), %s284_s28, 8192, %s286_s19, %s274_s7, %s2654_s29, %s2654_s29, %s2655_s11  }
  0x2b   : > { %s261_s1 = sshll.u32 %s260_s8, 4  ;;  %s263_s26 = sshll.u32 %s252_s23, 4  ;;  %s262_s1 = int_to_ptr.hbm [resolvable:$true] %s261_s1  ;;  %s264_s26 = int_to_ptr.vmem [resolvable:$true] %s263_s26 }
  0x2c   : > { %2116 = dma.hbm_to_vmem [thread:$0]  (!%p2768_p0), %s262_s1, 4096, %s264_s26, %s249_s15, %s2654_s29, %s2654_s29, %s2655_s11  }
  0x2d   : > { %s2016_s28 = sshll.u32 %s2764_s13, 3  ;;  %s2017_s19 = sshll.u32 %s2648_s25, 3 }
  0x2e   : > { %s303_s10 = scalar_lea.hbm %s3910_s2, %s2017_s19  ;;  %s299_s20 = scalar_lea.vmem [#allocation7], %s2016_s28 }
  0x2f   : > { %s305_s6 = sshll.u32 %s303_s10, 4  ;;  %s307_s17 = sshll.u32 %s299_s20, 4  ;;  %s306_s6 = int_to_ptr.hbm [resolvable:$true] %s305_s6  ;;  %s308_s17 = int_to_ptr.vmem [resolvable:$true] %s307_s17 }
  0x30   : > { %2122 = dma.hbm_to_vmem [thread:$0]  (!%p2768_p0), %s306_s6, 128, %s308_s17, %s274_s7  }
  0x31   : > { %s322_s30 = scalar_lea.hbm %s3911_s3, %s2017_s19  ;;  %s318_s1 = scalar_lea.vmem [#allocation8], %s2016_s28 }
  0x32   : > { %s326_s26 = sshll.u32 %s318_s1, 4  ;;  %s324_s29 = sshll.u32 %s322_s30, 4  ;;  %s327_s26 = int_to_ptr.vmem [resolvable:$true] %s326_s26  ;;  %s325_s29 = int_to_ptr.hbm [resolvable:$true] %s324_s29 }
  0x33   : > { %s315_s11 = scalar_lea.sflag [#allocation9], %s2764_s13  ;;  %335 = sbr.rel (%p2782_p3) target bundleno = 1535 (0x5ff), region = 36 }
  0x34   : > { %2125 = dma.hbm_to_vmem [thread:$0]  (!%p2768_p0), %s325_s29, 128, %s327_s26, %s315_s11  }
  0x38   : > { %s2810_s21 = sand.u32 1, %s2636_s22  }
  0x39   : > { %s2021_s6 = sshll.u32 %s2810_s21, 8  ;;  %s338_s10 = scalar_lea.sflag [#allocation3], %s2810_s21 }
  0x3a   : > { %s2814_s12 = scalar_lea.vmem [#allocation2], %s2021_s6 }
  0x3b   : > { %2611 = dma.done.wait (%p2744_p8), %s338_s10, 4096  }
  0x3c   : > { %2613 = vsyncadd (%p2744_p8), %s338_s10, 4294963200  ;;  %s347_s13 = sand.u32 1, %s2724_s27   ;;  %s2022_s14 = sshll.u32 %s2810_s21, 9 }
  0x3d   : > { %s348_s7 = scalar_lea.sflag [#allocation6], %s347_s13  ;;  %s2824_s16 = scalar_lea.vmem [#allocation5], %s2022_s14 }
  0x3e   : > { %2615 = dma.done.wait (%p2744_p8), %s348_s7, 8320  }
  0x3f   : > { %2617 = vsyncadd (%p2744_p8), %s348_s7, 4294958976  ;;  %s2831_s8 = sshll.u32 %s2810_s21, 3  ;;  %s368_s28 = scalar_lea.sflag [#allocation9], %s2810_s21 }
  0x40   : > { %s361_s15 = scalar_lea.vmem [#allocation7], %s2831_s8  ;;  %s371_s19 = scalar_lea.vmem [#allocation8], %s2831_s8 }
  0x41   : > { %2619 = dma.done.wait (%p2744_p8), %s368_s28, 128  }
  0x42   : > { %2621 = vsyncadd (%p2744_p8), %s368_s28, 4294967168  ;;  %v2841_v0 = vld [vmem:[%s2824_s16 + $0x1e0] sm:$0xff]  ;;  %v2844_v1 = vld [vmem:[%s2824_s16 + $0x1f0] sm:$0xff]  ;;  %s2025_s9 = sshll.u32 %s2810_s21, 6  ;;  %s2092_s17 = sshll.u32 %s2644_s24, 3 }
  0x43   : > { %v2847_v2 = vld [vmem:[%s2824_s16 + $0x1f8] sm:$0xff]  ;;  %506 = vmatpush.msra.mxu0 %v2841_v0  ;;  %546 = vmatpush.msra.mxu2 %v2844_v1  ;;  %v2852_v3 = vld [vmem:[%s2824_s16 + $0x1c0] sm:$0xff]  ;;  %v2855_v4 = vld [vmem:[%s2824_s16 + $0x1d0] sm:$0xff]  ;;  %s3236_s20 = scalar_lea.vmem [#allocation10], %s2025_s9  ;;  %s2098_s23 = sshll.u32 %s2644_s24, 6 }
  0x44   : > { %4047 = vst [vmem:[#allocation26_spill] sm:$0xff] %v2852_v3  ;;  %v2858_v5 = vld [vmem:[%s2824_s16 + $0x1d8] sm:$0xff]  ;;  %566 = vmatpush.msra.mxu3 %v2847_v2  ;;  %v2862_v6 = vld [vmem:[%s2824_s16 + $0x1a0] sm:$0xff]  ;;  %v2865_v7 = vld [vmem:[%s2824_s16 + $0x1b0] sm:$0xff]  ;;  %s425_s18 = scalar_lea.vmem [#allocation13], %s2831_s8  ;;  %s1774_s26 = scalar_lea.hbm %s3913_s5, %s2092_s17 }
  0x45   : > { %507 = vmatpush.msra.mxu0 %v2852_v3  ;;  %547 = vmatpush.msra.mxu2 %v2855_v4  ;;  %v2870_v8 = vld [vmem:[%s2824_s16 + $0x1b8] sm:$0xff]  ;;  %v2874_v9 = vld [vmem:[%s2824_s16 + $0x180] sm:$0xff]  ;;  %v2877_v10 = vld [vmem:[%s2824_s16 + $0x190] sm:$0xff]  ;;  %s418_s29 = scalar_lea.vmem [#allocation11], %s2831_s8  ;;  %s1758_s24 = scalar_lea.hbm %s3912_s4, %s2098_s23 }
  0x46   : > { %567 = vmatpush.msra.mxu3 %v2858_v5  ;;  %v2882_v11 = vld [vmem:[%s2824_s16 + $0x198] sm:$0xff]  ;;  %v2886_v12 = vld [vmem:[%s2824_s16 + $0x160] sm:$0xff]  ;;  %v2889_v13 = vld [vmem:[%s2824_s16 + $0x170] sm:$0xff]  ;;  %s3817_s11 = sshll.u32 %s418_s29, 4  ;;  %s1759_s8 = sshll.u32 %s3236_s20, 4  ;;  %s1777_s11 = int_to_ptr.vmem [resolvable:$true] %s3817_s11  ;;  %s3829_s8 = int_to_ptr.vmem [resolvable:$true] %s1759_s8 }
  0x47   : > { %508 = vmatpush.msra.mxu0 %v2862_v6  ;;  %548 = vmatpush.msra.mxu2 %v2865_v7  ;;  %v2894_v14 = vld [vmem:[%s2824_s16 + $0x178] sm:$0xff]  ;;  %v2898_v15 = vld [vmem:[%s2824_s16 + $0x140] sm:$0xff]  ;;  %v2901_v16 = vld [vmem:[%s2824_s16 + $0x150] sm:$0xff]  ;;  %s1761_s28 = sshll.u32 %s1758_s24, 4  ;;  %s3827_s23 = sshll.u32 %s425_s18, 4  ;;  %s3831_s28 = int_to_ptr.hbm [resolvable:$true] %s1761_s28  ;;  %s1791_s23 = int_to_ptr.vmem [resolvable:$true] %s3827_s23 }
  0x48   : > { %568 = vmatpush.msra.mxu3 %v2870_v8  ;;  %v2906_v17 = vld [vmem:[%s2824_s16 + $0x158] sm:$0xff]  ;;  %v2910_v18 = vld [vmem:[%s2824_s16 + $0x120] sm:$0xff]  ;;  %v2913_v19 = vld [vmem:[%s2824_s16 + $0x130] sm:$0xff]  ;;  %s2522_s6 = scalar_lea.hbm %s3913_s5, 16 }
  0x49   : > { %509 = vmatpush.msra.mxu0 %v2874_v9  ;;  %549 = vmatpush.msra.mxu2 %v2877_v10  ;;  %v2918_v20 = vld [vmem:[%s2824_s16 + $0x138] sm:$0xff]  ;;  %v2921_v21 = vld [vmem:[%s2824_s16 + $0x1e8] sm:$0xff]  ;;  %v2925_v22 = vld [vmem:[%s2824_s16 + $0x100] sm:$0xff] }
  0x4a   : > { %569 = vmatpush.msra.mxu3 %v2882_v11  ;;  %v2928_v23 = vld [vmem:[%s2824_s16 + $0x110] sm:$0xff]  ;;  %526 = vmatpush.msra.mxu1 %v2921_v21  ;;  %v2932_v24 = vld [vmem:[%s2824_s16 + $0x1c8] sm:$0xff]  ;;  %v2937_v25 = vld [vmem:[%s2824_s16 + $0x118] sm:$0xff] }
  0x4b   : > { %510 = vmatpush.msra.mxu0 %v2886_v12  ;;  %550 = vmatpush.msra.mxu2 %v2889_v13  ;;  %v2940_v26 = vld [vmem:[%s2824_s16 + $0x1a8] sm:$0xff]  ;;  %v2944_v27 = vld [vmem:[%s2824_s16 + $0xe0] sm:$0xff]  ;;  %v2947_v28 = vld [vmem:[%s2824_s16 + $0xf0] sm:$0xff] }
  0x4c   : > { %570 = vmatpush.msra.mxu3 %v2894_v14  ;;  %527 = vmatpush.msra.mxu1 %v2932_v24  ;;  %v2953_v29 = vld [vmem:[%s2824_s16 + $0xf8] sm:$0xff]  ;;  %v2956_v30 = vld [vmem:[%s2824_s16 + $0x188] sm:$0xff]  ;;  %v2960_v31 = vld [vmem:[%s2824_s16 + $0xc0] sm:$0xff] }
  0x4d   : > { %511 = vmatpush.msra.mxu0 %v2898_v15  ;;  %551 = vmatpush.msra.mxu2 %v2901_v16  ;;  %v2963_v32 = vld [vmem:[%s2824_s16 + $0xd0] sm:$0xff]  ;;  %v2969_v33 = vld [vmem:[%s2824_s16 + $0xd8] sm:$0xff]  ;;  %v2972_v34 = vld [vmem:[%s2824_s16 + $0x168] sm:$0xff] }
  0x4e   : > { %571 = vmatpush.msra.mxu3 %v2906_v17  ;;  %4048 = vst [vmem:[#allocation27_spill] sm:$0xff] %v2963_v32  ;;  %528 = vmatpush.msra.mxu1 %v2940_v26  ;;  %v2976_v35 = vld [vmem:[%s2824_s16 + $0xa0] sm:$0xff]  ;;  %v2979_v36 = vld [vmem:[%s2824_s16 + $0xb0] sm:$0xff]  ;;  %v2985_v37 = vld [vmem:[%s2824_s16 + $0xb8] sm:$0xff] }
  0x4f   : > { %512 = vmatpush.msra.mxu0 %v2910_v18  ;;  %552 = vmatpush.msra.mxu2 %v2913_v19  ;;  %4049 = vst [vmem:[#allocation28_spill] sm:$0xff] %v2969_v33  ;;  %v2988_v38 = vld [vmem:[%s2824_s16 + $0x148] sm:$0xff]  ;;  %v2992_v39 = vld [vmem:[%s2824_s16 + $0x80] sm:$0xff]  ;;  %v2995_v40 = vld [vmem:[%s2824_s16 + $0x90] sm:$0xff] }
  0x50   : > { %572 = vmatpush.msra.mxu3 %v2918_v20  ;;  %4050 = vst [vmem:[#allocation29_spill] sm:$0xff] %v2976_v35  ;;  %529 = vmatpush.msra.mxu1 %v2956_v30  ;;  %v3001_v41 = vld [vmem:[%s2824_s16 + $0x98] sm:$0xff]  ;;  %v3004_v42 = vld [vmem:[%s2824_s16 + $0x128] sm:$0xff]  ;;  %v3008_v43 = vld [vmem:[%s2824_s16 + $0x60] sm:$0xff] }
  0x51   : > { %513 = vmatpush.msra.mxu0 %v2925_v22  ;;  %553 = vmatpush.msra.mxu2 %v2928_v23  ;;  %4051 = vst [vmem:[#allocation30_spill] sm:$0xff] %v2979_v36  ;;  %v3011_v44 = vld [vmem:[%s2824_s16 + $0x70] sm:$0xff]  ;;  %v3017_v45 = vld [vmem:[%s2824_s16 + $0x78] sm:$0xff]  ;;  %v3020_v46 = vld [vmem:[%s2824_s16 + $0x108] sm:$0xff] }
  0x52   : > { %573 = vmatpush.msra.mxu3 %v2937_v25  ;;  %4052 = vst [vmem:[#allocation31_spill] sm:$0xff] %v2985_v37  ;;  %530 = vmatpush.msra.mxu1 %v2972_v34  ;;  %v3024_v47 = vld [vmem:[%s2824_s16 + $0x40] sm:$0xff]  ;;  %v3027_v48 = vld [vmem:[%s2824_s16 + $0x50] sm:$0xff]  ;;  %v3033_v49 = vld [vmem:[%s2824_s16 + $0x58] sm:$0xff] }
  0x53   : > { %514 = vmatpush.msra.mxu0 %v2944_v27  ;;  %554 = vmatpush.msra.mxu2 %v2947_v28  ;;  %4053 = vst [vmem:[#allocation32_spill] sm:$0xff] %v2992_v39  ;;  %v3036_v50 = vld [vmem:[%s2824_s16 + $0xe8] sm:$0xff]  ;;  %v3040_v51 = vld [vmem:[%s2824_s16 + $0x20] sm:$0xff]  ;;  %v3043_v52 = vld [vmem:[%s2824_s16 + $0x30] sm:$0xff] }
  0x54   : > { %574 = vmatpush.msra.mxu3 %v2953_v29  ;;  %4054 = vst [vmem:[#allocation33_spill] sm:$0xff] %v2995_v40  ;;  %531 = vmatpush.msra.mxu1 %v2988_v38  ;;  %v3049_v53 = vld [vmem:[%s2824_s16 + $0x38] sm:$0xff]  ;;  %v3052_v54 = vld [vmem:[%s2824_s16 + $0xc8] sm:$0xff]  ;;  %v3056_v55 = vld [vmem:[%s2824_s16] sm:$0xff] }
  0x55   : > { %515 = vmatpush.msra.mxu0 %v2960_v31  ;;  %555 = vmatpush.msra.mxu2 %v2963_v32  ;;  %4055 = vst [vmem:[#allocation34_spill] sm:$0xff] %v3001_v41  ;;  %v3059_v56 = vld [vmem:[%s2824_s16 + $0x10] sm:$0xff]  ;;  %v3065_v57 = vld [vmem:[%s2824_s16 + $0x18] sm:$0xff]  ;;  %v432_v58 = vld [vmem:[%s361_s15] sm:$0xff] }
  0x56   : > { %575 = vmatpush.msra.mxu3 %v2969_v33  ;;  %4056 = vst [vmem:[#allocation35_spill] sm:$0xff] %v3008_v43  ;;  %532 = vmatpush.msra.mxu1 %v3004_v42  ;;  %v3074_v59 = vld [vmem:[%s2824_s16 + $0xa8] sm:$0xff] }
  0x57   : > { %516 = vmatpush.msra.mxu0 %v2976_v35  ;;  %556 = vmatpush.msra.mxu2 %v2979_v36  ;;  %4057 = vst [vmem:[#allocation36_spill] sm:$0xff] %v3011_v44  ;;  %v3078_v60 = vld [vmem:[%s2824_s16 + $0x88] sm:$0xff] }
  0x58   : > { %576 = vmatpush.msra.mxu3 %v2985_v37  ;;  %4058 = vst [vmem:[#allocation37_spill] sm:$0xff] %v3017_v45  ;;  %533 = vmatpush.msra.mxu1 %v3020_v46  ;;  %v3083_v61 = vld [vmem:[%s2824_s16 + $0x68] sm:$0xff] }
  0x59   : > { %517 = vmatpush.msra.mxu0 %v2992_v39  ;;  %557 = vmatpush.msra.mxu2 %v2995_v40  ;;  %4059 = vst [vmem:[#allocation38_spill] sm:$0xff] %v3024_v47  ;;  %v3090_v62 = vld [vmem:[%s2824_s16 + $0x48] sm:$0xff] }
  0x5a   : > { %577 = vmatpush.msra.mxu3 %v3001_v41  ;;  %4060 = vst [vmem:[#allocation39_spill] sm:$0xff] %v3027_v48  ;;  %534 = vmatpush.msra.mxu1 %v3036_v50  ;;  %v3097_v63 = vld [vmem:[%s2824_s16 + $0x28] sm:$0xff] }
  0x5b   : > { %518 = vmatpush.msra.mxu0 %v3008_v43  ;;  %558 = vmatpush.msra.mxu2 %v3011_v44  ;;  %4061 = vst [vmem:[#allocation40_spill] sm:$0xff] %v3033_v49 }
  0x5c   : > { %578 = vmatpush.msra.mxu3 %v3017_v45  ;;  %4062 = vst [vmem:[#allocation41_spill] sm:$0xff] %v3040_v51  ;;  %535 = vmatpush.msra.mxu1 %v3052_v54 }
  0x5d   : > { %4063 = vst [vmem:[#allocation42_spill] sm:$0xff] %v3043_v52  ;;  %519 = vmatpush.msra.mxu0 %v3024_v47  ;;  %559 = vmatpush.msra.mxu2 %v3027_v48 }
  0x5e   : > { %4064 = vst [vmem:[#allocation43_spill] sm:$0xff] %v3049_v53  ;;  %579 = vmatpush.msra.mxu3 %v3033_v49  ;;  %536 = vmatpush.msra.mxu1 %v3074_v59 }
  0x5f   : > { %4065 = vst [vmem:[#allocation44_spill] sm:$0xff] %v3056_v55  ;;  %520 = vmatpush.msra.mxu0 %v3040_v51  ;;  %560 = vmatpush.msra.mxu2 %v3043_v52 }
  0x60   : > { %4066 = vst [vmem:[#allocation45_spill] sm:$0xff] %v3059_v56  ;;  %580 = vmatpush.msra.mxu3 %v3049_v53  ;;  %537 = vmatpush.msra.mxu1 %v3078_v60 }
  0x61   : > { %4067 = vst [vmem:[#allocation46_spill] sm:$0xff] %v3065_v57  ;;  %521 = vmatpush.msra.mxu0 %v3056_v55  ;;  %561 = vmatpush.msra.mxu2 %v3059_v56 }
  0x62   : > { %4068 = vst [vmem:[#allocation47_spill] sm:$0xff] %v3074_v59  ;;  %581 = vmatpush.msra.mxu3 %v3065_v57  ;;  %522 = vmatmul.f32.vlgmr.msra.gmra.mxu0 %v432_v58 }
  0x63   : > { %562 = vmatmul.f32.vlgmr.msra.gmra.mxu2 %v432_v58  ;;  %582 = vmatmul.f32.vlgmr.msra.gmra.mxu3 %v432_v58  ;;  %4069 = vst [vmem:[#allocation48_spill] sm:$0xff] %v3078_v60 }
  0x64   : > { %659 = vmatpush.msrb.mxu0 %v2841_v0  ;;  %4070 = vst [vmem:[#allocation49_spill] sm:$0xff] %v3083_v61  ;;  %699 = vmatpush.msrb.mxu2 %v2844_v1 }
  0x65   : > { %719 = vmatpush.msrb.mxu3 %v2847_v2  ;;  %4071 = vst [vmem:[#allocation50_spill] sm:$0xff] %v3090_v62  ;;  %538 = vmatpush.msra.mxu1 %v3083_v61 }
  0x66   : > { %660 = vmatpush.msrb.mxu0 %v2852_v3  ;;  %700 = vmatpush.msrb.mxu2 %v2855_v4  ;;  %4072 = vst [vmem:[#allocation51_spill] sm:$0xff] %v3097_v63  ;;  %v3104_v3 = vld [vmem:[%s2824_s16 + $0x8] sm:$0xff] }
  0x67   : > { %720 = vmatpush.msrb.mxu3 %v2858_v5  ;;  %539 = vmatpush.msra.mxu1 %v3090_v62  ;;  %4073 = vst [vmem:[#allocation52_spill] sm:$0xff] %v3104_v3 }
  0x68   : > { %661 = vmatpush.msrb.mxu0 %v2862_v6  ;;  %701 = vmatpush.msrb.mxu2 %v2865_v7 }
  0x69   : > { %721 = vmatpush.msrb.mxu3 %v2870_v8  ;;  %540 = vmatpush.msra.mxu1 %v3097_v63 }
  0x6a   : > { %662 = vmatpush.msrb.mxu0 %v2874_v9  ;;  %702 = vmatpush.msrb.mxu2 %v2877_v10 }
  0x6b   : > { %722 = vmatpush.msrb.mxu3 %v2882_v11  ;;  %541 = vmatpush.msra.mxu1 %v3104_v3 }
  0x6c   : > { %663 = vmatpush.msrb.mxu0 %v2886_v12  ;;  %703 = vmatpush.msrb.mxu2 %v2889_v13 }
  0x6d   : > { %723 = vmatpush.msrb.mxu3 %v2894_v14  ;;  %542 = vmatmul.f32.vlgmr.msra.gmra.mxu1 %v432_v58  ;;  %v4074_v58 = vld [vmem:[#allocation26_spill] sm:$0xff] }
  0x6e   : > { %664 = vmatpush.msrb.mxu0 %v2898_v15  ;;  %704 = vmatpush.msrb.mxu2 %v2901_v16 }
  0x6f   : > { %679 = vmatpush.msrb.mxu1 %v2921_v21  ;;  %724 = vmatpush.msrb.mxu3 %v2906_v17 }
  0x70   : > { %665 = vmatpush.msrb.mxu0 %v2910_v18  ;;  %705 = vmatpush.msrb.mxu2 %v2913_v19 }
  0x71   : > { %680 = vmatpush.msrb.mxu1 %v2932_v24  ;;  %725 = vmatpush.msrb.mxu3 %v2918_v20 }
  0x72   : > { %666 = vmatpush.msrb.mxu0 %v2925_v22  ;;  %706 = vmatpush.msrb.mxu2 %v2928_v23 }
  0x73   : > { %681 = vmatpush.msrb.mxu1 %v2940_v26  ;;  %726 = vmatpush.msrb.mxu3 %v2937_v25 }
  0x74   : > { %667 = vmatpush.msrb.mxu0 %v2944_v27  ;;  %707 = vmatpush.msrb.mxu2 %v2947_v28 }
  0x75   : > { %682 = vmatpush.msrb.mxu1 %v2956_v30  ;;  %727 = vmatpush.msrb.mxu3 %v2953_v29 }
  0x76   : > { %668 = vmatpush.msrb.mxu0 %v2960_v31  ;;  %708 = vmatpush.msrb.mxu2 %v2963_v32 }
  0x77   : > { %683 = vmatpush.msrb.mxu1 %v2972_v34  ;;  %728 = vmatpush.msrb.mxu3 %v2969_v33 }
  0x78   : > { %669 = vmatpush.msrb.mxu0 %v2976_v35  ;;  %709 = vmatpush.msrb.mxu2 %v2979_v36 }
  0x79   : > { %684 = vmatpush.msrb.mxu1 %v2988_v38  ;;  %729 = vmatpush.msrb.mxu3 %v2985_v37 }
  0x7a   : > { %670 = vmatpush.msrb.mxu0 %v2992_v39  ;;  %710 = vmatpush.msrb.mxu2 %v2995_v40 }
  0x7b   : > { %685 = vmatpush.msrb.mxu1 %v3004_v42  ;;  %730 = vmatpush.msrb.mxu3 %v3001_v41 }
  0x7c   : > { %671 = vmatpush.msrb.mxu0 %v3008_v43  ;;  %711 = vmatpush.msrb.mxu2 %v3011_v44 }
  0x7d   : > { %686 = vmatpush.msrb.mxu1 %v3020_v46  ;;  %731 = vmatpush.msrb.mxu3 %v3017_v45 }
  0x7e   : > { %672 = vmatpush.msrb.mxu0 %v3024_v47  ;;  %712 = vmatpush.msrb.mxu2 %v3027_v48 }
  0x7f   : > { %687 = vmatpush.msrb.mxu1 %v3036_v50  ;;  %732 = vmatpush.msrb.mxu3 %v3033_v49 }
  0x80   : > { %673 = vmatpush.msrb.mxu0 %v3040_v51  ;;  %713 = vmatpush.msrb.mxu2 %v3043_v52 }
  0x81   : > { %688 = vmatpush.msrb.mxu1 %v3052_v54  ;;  %733 = vmatpush.msrb.mxu3 %v3049_v53 }
  0x82   : > { %674 = vmatpush.msrb.mxu0 %v3056_v55  ;;  %714 = vmatpush.msrb.mxu2 %v3059_v56 }
  0x83   : > { %689 = vmatpush.msrb.mxu1 %v3074_v59  ;;  %734 = vmatpush.msrb.mxu3 %v3065_v57 }
  0x84   : > { %813 = vmatpush.msra.mxu0 %v2841_v0  ;;  %853 = vmatpush.msra.mxu2 %v2844_v1 }
  0x85   : > { %690 = vmatpush.msrb.mxu1 %v3078_v60  ;;  %873 = vmatpush.msra.mxu3 %v2847_v2 }
  0x86   : > { %814 = vmatpush.msra.mxu0 %v4074_v58  ;;  %854 = vmatpush.msra.mxu2 %v2855_v4 }
  0x87   : > { %691 = vmatpush.msrb.mxu1 %v3083_v61  ;;  %874 = vmatpush.msra.mxu3 %v2858_v5 }
  0x88   : > { %815 = vmatpush.msra.mxu0 %v2862_v6  ;;  %855 = vmatpush.msra.mxu2 %v2865_v7 }
  0x89   : > { %692 = vmatpush.msrb.mxu1 %v3090_v62  ;;  %875 = vmatpush.msra.mxu3 %v2870_v8 }
  0x8a   : > { %816 = vmatpush.msra.mxu0 %v2874_v9  ;;  %856 = vmatpush.msra.mxu2 %v2877_v10 }
  0x8b   : > { %693 = vmatpush.msrb.mxu1 %v3097_v63  ;;  %876 = vmatpush.msra.mxu3 %v2882_v11 }
  0x8c   : > { %817 = vmatpush.msra.mxu0 %v2886_v12  ;;  %857 = vmatpush.msra.mxu2 %v2889_v13 }
  0x8d   : > { %694 = vmatpush.msrb.mxu1 %v3104_v3  ;;  %877 = vmatpush.msra.mxu3 %v2894_v14 }
  0x8e   : > { %818 = vmatpush.msra.mxu0 %v2898_v15  ;;  %858 = vmatpush.msra.mxu2 %v2901_v16 }
  0x8f   : > { %833 = vmatpush.msra.mxu1 %v2921_v21  ;;  %878 = vmatpush.msra.mxu3 %v2906_v17 }
  0x90   : > { %819 = vmatpush.msra.mxu0 %v2910_v18  ;;  %859 = vmatpush.msra.mxu2 %v2913_v19 }
  0x91   : > { %834 = vmatpush.msra.mxu1 %v2932_v24  ;;  %879 = vmatpush.msra.mxu3 %v2918_v20 }
  0x92   : > { %820 = vmatpush.msra.mxu0 %v2925_v22  ;;  %860 = vmatpush.msra.mxu2 %v2928_v23 }
  0x93   : > { %835 = vmatpush.msra.mxu1 %v2940_v26  ;;  %880 = vmatpush.msra.mxu3 %v2937_v25 }
  0x94   : > { %821 = vmatpush.msra.mxu0 %v2944_v27  ;;  %861 = vmatpush.msra.mxu2 %v2947_v28 }
  0x95   : > { %836 = vmatpush.msra.mxu1 %v2956_v30  ;;  %881 = vmatpush.msra.mxu3 %v2953_v29 }
  0x96   : > { %822 = vmatpush.msra.mxu0 %v2960_v31  ;;  %862 = vmatpush.msra.mxu2 %v2963_v32 }
  0x97   : > { %837 = vmatpush.msra.mxu1 %v2972_v34  ;;  %882 = vmatpush.msra.mxu3 %v2969_v33 }
  0x98   : > { %823 = vmatpush.msra.mxu0 %v2976_v35  ;;  %863 = vmatpush.msra.mxu2 %v2979_v36 }
  0x99   : > { %838 = vmatpush.msra.mxu1 %v2988_v38  ;;  %883 = vmatpush.msra.mxu3 %v2985_v37 }
  0x9a   : > { %824 = vmatpush.msra.mxu0 %v2992_v39  ;;  %864 = vmatpush.msra.mxu2 %v2995_v40 }
  0x9b   : > { %839 = vmatpush.msra.mxu1 %v3004_v42  ;;  %884 = vmatpush.msra.mxu3 %v3001_v41 }
  0x9c   : > { %825 = vmatpush.msra.mxu0 %v3008_v43  ;;  %865 = vmatpush.msra.mxu2 %v3011_v44 }
  0x9d   : > { %840 = vmatpush.msra.mxu1 %v3020_v46  ;;  %885 = vmatpush.msra.mxu3 %v3017_v45 }
  0x9e   : > { %826 = vmatpush.msra.mxu0 %v3024_v47  ;;  %866 = vmatpush.msra.mxu2 %v3027_v48  ;;  %v505_v48 = vld [vmem:[%s2814_s12 + $0x18] sm:$0xff] }
  0x9f   : > { %841 = vmatpush.msra.mxu1 %v3036_v50  ;;  %886 = vmatpush.msra.mxu3 %v3033_v49 }
  0xa0   : > { %827 = vmatpush.msra.mxu0 %v3040_v51  ;;  %867 = vmatpush.msra.mxu2 %v3043_v52 }
  0xa1   : > { %842 = vmatpush.msra.mxu1 %v3052_v54  ;;  %887 = vmatpush.msra.mxu3 %v3049_v53  ;;  %v502_v53 = vld [vmem:[%s2814_s12] sm:$0xff] }
  0xa2   : > { %828 = vmatpush.msra.mxu0 %v3056_v55  ;;  %868 = vmatpush.msra.mxu2 %v3059_v56  ;;  %v504_v55 = vld [vmem:[%s2814_s12 + $0x10] sm:$0xff] }
  0xa3   : > { %843 = vmatpush.msra.mxu1 %v3074_v59  ;;  %888 = vmatpush.msra.mxu3 %v3065_v57  ;;  %v434_v59 = vld [vmem:[%s371_s19] sm:$0xff] }
  0xa5   : > { %844 = vmatpush.msra.mxu1 %v3078_v60 }
  0xa7   : > { %845 = vmatpush.msra.mxu1 %v3083_v61 }
  0xa9   : > { %846 = vmatpush.msra.mxu1 %v3090_v62 }
  0xab   : > { %847 = vmatpush.msra.mxu1 %v3097_v63 }
  0xad   : > { %848 = vmatpush.msra.mxu1 %v3104_v3 }
  0xdf   : > { %v523_v52 = vpop.f32.mrf.mxu0 }
  0xe0   : > { %v586_v51 = vadd.f32 %v523_v52, %v502_v53  ;;  %v503_v53 = vld [vmem:[%s2814_s12 + $0x8] sm:$0xff] }
  0xe2   : > { %v2029_v49 = vmul.f32 -1.442695, %v586_v51 }
  0xe4   : > { %2190 = vpow2.f32 %v2029_v49 }
  0xe6   : > { %v563_v56 = vpop.f32.mrf.mxu2  ;;  %v583_v47 = vpop.f32.mrf.mxu3 }
  0xe7   : > { %v588_v57 = vadd.f32 %v563_v56, %v504_v55  ;;  %v589_v45 = vadd.f32 %v583_v47, %v505_v48 }
  0xe9   : > { %v2028_v44 = vmul.f32 -1.442695, %v588_v57  ;;  %v2030_v61 = vmul.f32 -1.442695, %v589_v45 }
  0xea   : > { %v2191_v43 = vpop.eup %2190  ;;  %v543_v40 = vpop.f32.mrf.mxu1 }
  0xeb   : > { %v613_v62 = vadd.f32 1.0, %v2191_v43  ;;  %2192 = vpow2.f32 %v2028_v44  ;;  %v587_v47 = vadd.f32 %v543_v40, %v503_v53 }
  0xec   : > { %2194 = vpow2.f32 %v2030_v61 }
  0xed   : > { %2196 = vrcp.f32 %v613_v62  ;;  %vm619_vm0 = vweird.f32 %v613_v62  ;;  %v625_v61 = vand.u32 2147483648, %v613_v62 }
  0xef   : > { %v626_v53 = vor.u32 1.1754944e-38, %v625_v61  ;;  %v4082_v61 = vld [vmem:[#allocation48_spill] sm:$0xff] }
  0xf1   : > { %v2193_v3 = vpop.eup %2192 }
  0xf2   : > { %v2195_v63 = vpop.eup %2194  ;;  %v593_v41 = vadd.f32 1.0, %v2193_v3 }
  0xf3   : > { %v2197_v52 = vpop.eup %2196  ;;  %v636_v51 = vadd.f32 1.0, %v2195_v63  ;;  %v623_v63 = vand.u32 2147483647, %v613_v62 }
  0xf4   : > { %v615_v49 = vmul.f32 %v2197_v52, %v613_v62  ;;  %2198 = vrcp.f32 %v593_v41  ;;  %vm620_vm1 = vweird.f32 %v2197_v52  ;;  %v605_v60 = vand.u32 2147483648, %v593_v41 }
  0xf5   : > { %2200 = vrcp.f32 %v636_v51  ;;  %vm621_vm2 = vmor %vm619_vm0, %vm620_vm1  ;;  %v603_v37 = vand.u32 2147483647, %v593_v41  ;;  %vm599_vm4 = vweird.f32 %v593_v41  ;;  %vm624_vm5 = vcmp.eq.f32.partialorder %v623_v63, 8.507059e+37  ;;  %v4083_v63 = vld [vmem:[#allocation33_spill] sm:$0xff] }
  0xf6   : > { %v616_v55 = vsub.f32 1.0, %v615_v49  ;;  %2202 = vtanh.f32 %v587_v47  ;;  %v606_v36 = vor.u32 1.1754944e-38, %v605_v60  ;;  %v648_v32 = vand.u32 2147483648, %v636_v51 }
  0xf7   : > { %vm604_vm7 = vcmp.eq.f32.partialorder %v603_v37, 8.507059e+37  ;;  %vm642_vm8 = vweird.f32 %v636_v51 }
  0xf8   : > { %v617_v48 = vmul.f32 %v2197_v52, %v616_v55  ;;  %v649_v60 = vor.u32 1.1754944e-38, %v648_v32  ;;  %v4075_v32 = vld [vmem:[#allocation27_spill] sm:$0xff] }
  0xfa   : > { %v2199_v56 = vpop.eup %2198  ;;  %v618_v43 = vadd.f32 %v2197_v52, %v617_v48 }
  0xfb   : > { %v2201_v45 = vpop.eup %2200  ;;  %v595_v57 = vmul.f32 %v2199_v56, %v593_v41  ;;  %vm600_vm3 = vweird.f32 %v2199_v56  ;;  %v646_v41 = vand.u32 2147483647, %v636_v51 }
  0xfc   : > { %v638_v44 = vmul.f32 %v2201_v45, %v636_v51  ;;  %v622_v49 = vsel %vm621_vm2, %v2197_v52, %v618_v43  ;;  %v2203_v48 = vpop.eup %2202  ;;  %vm601_vm6 = vmor %vm599_vm4, %vm600_vm3  ;;  %vm643_vm9 = vweird.f32 %v2201_v45  ;;  %v4080_v51 = vld [vmem:[#allocation31_spill] sm:$0xff] }
  0xfd   : > { %v596_v3 = vsub.f32 1.0, %v595_v57  ;;  %v627_v47 = vsel %vm624_vm5, %v626_v53, %v622_v49  ;;  %vm644_vm10 = vmor %vm642_vm8, %vm643_vm9  ;;  %vm647_vm11 = vcmp.eq.f32.partialorder %v646_v41, 8.507059e+37  ;;  %v4084_v49 = vld [vmem:[#allocation34_spill] sm:$0xff]  ;;  %v4086_v53 = vld [vmem:[#allocation49_spill] sm:$0xff] }
  0xfe   : > { %v639_v40 = vsub.f32 1.0, %v638_v44  ;;  %v630_v33 = vmul.f32 %v2203_v48, %v627_v47  ;;  %v4088_v48 = vld [vmem:[#allocation37_spill] sm:$0xff]  ;;  %v4089_v47 = vld [vmem:[#allocation38_spill] sm:$0xff]  ;;  %v4094_v41 = vld [vmem:[#allocation51_spill] sm:$0xff] }
  0xff   : > { %v597_v39 = vmul.f32 %v2199_v56, %v596_v3 }
 0x100   : > { %v640_v62 = vmul.f32 %v2201_v45, %v639_v40  ;;  %v4085_v40 = vld [vmem:[#allocation35_spill] sm:$0xff] }
 0x101   : > { %v598_v55 = vadd.f32 %v2199_v56, %v597_v39 }
 0x102   : > { %v641_v39 = vadd.f32 %v2201_v45, %v640_v62  ;;  %v4091_v62 = vld [vmem:[#allocation39_spill] sm:$0xff] }
 0x103   : > { %v602_v57 = vsel %vm601_vm6, %v2199_v56, %v598_v55  ;;  %v4087_v55 = vld [vmem:[#allocation36_spill] sm:$0xff] }
 0x104   : > { %v607_v35 = vsel %vm604_vm7, %v606_v36, %v602_v57  ;;  %v645_v43 = vsel %vm644_vm10, %v2201_v45, %v641_v39  ;;  %v4078_v36 = vld [vmem:[#allocation47_spill] sm:$0xff]  ;;  %v4081_v45 = vld [vmem:[#allocation32_spill] sm:$0xff]  ;;  %v4090_v57 = vld [vmem:[#allocation50_spill] sm:$0xff] }
 0x105   : > { %v609_v3 = vmul.f32 %v607_v35, %v434_v59  ;;  %v650_v37 = vsel %vm647_vm11, %v649_v60, %v645_v43  ;;  %v4077_v35 = vld [vmem:[#allocation29_spill] sm:$0xff]  ;;  %v4079_v59 = vld [vmem:[#allocation30_spill] sm:$0xff]  ;;  %v4096_v43 = vld [vmem:[#allocation43_spill] sm:$0xff] }
 0x106   : > { %v4093_v39 = vld [vmem:[#allocation41_spill] sm:$0xff]  ;;  %v4095_v60 = vld [vmem:[#allocation42_spill] sm:$0xff] }
 0x107   : > { %v3232_v52 = vadd.f32 %v630_v33, %v609_v3  ;;  %v4076_v33 = vld [vmem:[#allocation28_spill] sm:$0xff] }
 0x108   : > { %v4092_v3 = vld [vmem:[#allocation40_spill] sm:$0xff] }
 0x109   : > { %2204 = vtanh.f32 %v3232_v52 }
 0x10f   : > { %v2205_v56 = vpop.eup %2204 }
 0x110   : > { %v652_v44 = vmul.f32 %v2205_v56, %v650_v37  ;;  %v4097_v56 = vld [vmem:[#allocation44_spill] sm:$0xff] }
 0x111   : > { %v4098_v37 = vld [vmem:[#allocation52_spill] sm:$0xff] }
 0x112   : > { %653 = vst [vmem:[%s3236_s20] sm:$0xff] %v652_v44  ;;  %675 = vmatmul.f32.vlgmr.msrb.gmra.mxu0 %v652_v44  ;;  %695 = vmatmul.f32.vlgmr.msrb.gmra.mxu1 %v652_v44 }
 0x113   : > { %715 = vmatmul.f32.vlgmr.msrb.gmra.mxu2 %v652_v44  ;;  %735 = vmatmul.f32.vlgmr.msrb.gmra.mxu3 %v652_v44  ;;  %v4099_v44 = vld [vmem:[#allocation45_spill] sm:$0xff] }
 0x114   : > { %967 = vmatpush.msrb.mxu0 %v2841_v0  ;;  %987 = vmatpush.msrb.mxu1 %v2921_v21 }
 0x115   : > { %1007 = vmatpush.msrb.mxu2 %v2844_v1  ;;  %1027 = vmatpush.msrb.mxu3 %v2847_v2 }
 0x116   : > { %968 = vmatpush.msrb.mxu0 %v4074_v58  ;;  %988 = vmatpush.msrb.mxu1 %v2932_v24 }
 0x117   : > { %1008 = vmatpush.msrb.mxu2 %v2855_v4  ;;  %1028 = vmatpush.msrb.mxu3 %v2858_v5 }
 0x118   : > { %969 = vmatpush.msrb.mxu0 %v2862_v6  ;;  %989 = vmatpush.msrb.mxu1 %v2940_v26 }
 0x119   : > { %1009 = vmatpush.msrb.mxu2 %v2865_v7  ;;  %1029 = vmatpush.msrb.mxu3 %v2870_v8 }
 0x11a   : > { %970 = vmatpush.msrb.mxu0 %v2874_v9  ;;  %990 = vmatpush.msrb.mxu1 %v2956_v30 }
 0x11b   : > { %1010 = vmatpush.msrb.mxu2 %v2877_v10  ;;  %1030 = vmatpush.msrb.mxu3 %v2882_v11 }
 0x11c   : > { %971 = vmatpush.msrb.mxu0 %v2886_v12  ;;  %991 = vmatpush.msrb.mxu1 %v2972_v34 }
 0x11d   : > { %1011 = vmatpush.msrb.mxu2 %v2889_v13  ;;  %1031 = vmatpush.msrb.mxu3 %v2894_v14 }
 0x11e   : > { %972 = vmatpush.msrb.mxu0 %v2898_v15  ;;  %992 = vmatpush.msrb.mxu1 %v2988_v38 }
 0x11f   : > { %1012 = vmatpush.msrb.mxu2 %v2901_v16  ;;  %1032 = vmatpush.msrb.mxu3 %v2906_v17 }
 0x120   : > { %973 = vmatpush.msrb.mxu0 %v2910_v18  ;;  %993 = vmatpush.msrb.mxu1 %v3004_v42 }
 0x121   : > { %1013 = vmatpush.msrb.mxu2 %v2913_v19  ;;  %1033 = vmatpush.msrb.mxu3 %v2918_v20 }
 0x122   : > { %974 = vmatpush.msrb.mxu0 %v2925_v22  ;;  %994 = vmatpush.msrb.mxu1 %v3020_v46 }
 0x123   : > { %1014 = vmatpush.msrb.mxu2 %v2928_v23  ;;  %1034 = vmatpush.msrb.mxu3 %v2937_v25 }
 0x124   : > { %975 = vmatpush.msrb.mxu0 %v2944_v27  ;;  %995 = vmatpush.msrb.mxu1 %v3036_v50 }
 0x125   : > { %1015 = vmatpush.msrb.mxu2 %v2947_v28  ;;  %1035 = vmatpush.msrb.mxu3 %v2953_v29 }
 0x126   : > { %976 = vmatpush.msrb.mxu0 %v2960_v31  ;;  %996 = vmatpush.msrb.mxu1 %v3052_v54 }
 0x127   : > { %1016 = vmatpush.msrb.mxu2 %v4075_v32  ;;  %1036 = vmatpush.msrb.mxu3 %v4076_v33 }
 0x128   : > { %977 = vmatpush.msrb.mxu0 %v4077_v35  ;;  %997 = vmatpush.msrb.mxu1 %v4078_v36 }
 0x129   : > { %1017 = vmatpush.msrb.mxu2 %v4079_v59  ;;  %1037 = vmatpush.msrb.mxu3 %v4080_v51 }
 0x12a   : > { %978 = vmatpush.msrb.mxu0 %v4081_v45  ;;  %998 = vmatpush.msrb.mxu1 %v4082_v61  ;;  %v2032_v61 = vld [vmem:[%s2814_s12 + $0x28] sm:$0xff] }
 0x12b   : > { %1018 = vmatpush.msrb.mxu2 %v4083_v63  ;;  %1038 = vmatpush.msrb.mxu3 %v4084_v49 }
 0x12c   : > { %979 = vmatpush.msrb.mxu0 %v4085_v40  ;;  %999 = vmatpush.msrb.mxu1 %v4086_v53 }
 0x12d   : > { %1019 = vmatpush.msrb.mxu2 %v4087_v55  ;;  %1039 = vmatpush.msrb.mxu3 %v4088_v48  ;;  %v2034_v55 = vld [vmem:[%s2814_s12 + $0x38] sm:$0xff] }
 0x12e   : > { %980 = vmatpush.msrb.mxu0 %v4089_v47  ;;  %1000 = vmatpush.msrb.mxu1 %v4090_v57  ;;  %v4100_v57 = vld [vmem:[#allocation46_spill] sm:$0xff] }
 0x12f   : > { %1020 = vmatpush.msrb.mxu2 %v4091_v62  ;;  %1040 = vmatpush.msrb.mxu3 %v4092_v3  ;;  %v2031_v62 = vld [vmem:[%s2814_s12 + $0x20] sm:$0xff] }
 0x130   : > { %981 = vmatpush.msrb.mxu0 %v4093_v39  ;;  %1001 = vmatpush.msrb.mxu1 %v4094_v41  ;;  %v2033_v39 = vld [vmem:[%s2814_s12 + $0x30] sm:$0xff] }
 0x131   : > { %1021 = vmatpush.msrb.mxu2 %v4095_v60  ;;  %1041 = vmatpush.msrb.mxu3 %v4096_v43 }
 0x132   : > { %982 = vmatpush.msrb.mxu0 %v4097_v56  ;;  %1002 = vmatpush.msrb.mxu1 %v4098_v37 }
 0x133   : > { %1022 = vmatpush.msrb.mxu2 %v4099_v44  ;;  %1042 = vmatpush.msrb.mxu3 %v4100_v57 }
 0x18f   : > { %v676_v47 = vpop.f32.mrf.mxu0 }
 0x190   : > { %v739_v48 = vadd.f32 %v2031_v62, %v676_v47 }
 0x192   : > { %v2036_v3 = vmul.f32 -1.442695, %v739_v48 }
 0x194   : > { %2206 = vpow2.f32 %v2036_v3 }
 0x196   : > { %v716_v41 = vpop.f32.mrf.mxu2  ;;  %v736_v53 = vpop.f32.mrf.mxu3 }
 0x197   : > { %v741_v60 = vadd.f32 %v2033_v39, %v716_v41  ;;  %v742_v40 = vadd.f32 %v2034_v55, %v736_v53  ;;  %v696_v39 = vpop.f32.mrf.mxu1 }
 0x198   : > { %v740_v41 = vadd.f32 %v2032_v61, %v696_v39 }
 0x199   : > { %v2035_v43 = vmul.f32 -1.442695, %v741_v60  ;;  %v2037_v56 = vmul.f32 -1.442695, %v742_v40 }
 0x19a   : > { %v2207_v49 = vpop.eup %2206 }
 0x19b   : > { %v766_v37 = vadd.f32 1.0, %v2207_v49  ;;  %2208 = vpow2.f32 %v2035_v43 }
 0x19c   : > { %2210 = vpow2.f32 %v2037_v56 }
 0x19d   : > { %2212 = vrcp.f32 %v766_v37  ;;  %v778_v43 = vand.u32 2147483648, %v766_v37  ;;  %vm772_vm13 = vweird.f32 %v766_v37  ;;  %v776_v45 = vand.u32 2147483647, %v766_v37 }
 0x19f   : > { %v779_v36 = vor.u32 1.1754944e-38, %v778_v43  ;;  %vm777_vm0 = vcmp.eq.f32.partialorder %v776_v45, 8.507059e+37 }
 0x1a1   : > { %v2209_v57 = vpop.eup %2208 }
 0x1a2   : > { %v2211_v44 = vpop.eup %2210  ;;  %v746_v63 = vadd.f32 1.0, %v2209_v57 }
 0x1a3   : > { %v2213_v47 = vpop.eup %2212  ;;  %v789_v48 = vadd.f32 1.0, %v2211_v44 }
 0x1a4   : > { %v768_v62 = vmul.f32 %v2213_v47, %v766_v37  ;;  %2214 = vrcp.f32 %v746_v63  ;;  %vm773_vm12 = vweird.f32 %v2213_v47  ;;  %v758_v44 = vand.u32 2147483648, %v746_v63 }
 0x1a5   : > { %2216 = vrcp.f32 %v789_v48  ;;  %vm774_vm14 = vmor %vm772_vm13, %vm773_vm12  ;;  %vm752_vm1 = vweird.f32 %v746_v63  ;;  %v801_v43 = vand.u32 2147483648, %v789_v48  ;;  %vm795_vm5 = vweird.f32 %v789_v48 }
 0x1a6   : > { %v769_v3 = vsub.f32 1.0, %v768_v62  ;;  %2218 = vtanh.f32 %v740_v41  ;;  %v756_v62 = vand.u32 2147483647, %v746_v63 }
 0x1a8   : > { %v770_v53 = vmul.f32 %v2213_v47, %v769_v3  ;;  %vm757_vm3 = vcmp.eq.f32.partialorder %v756_v62, 8.507059e+37  ;;  %v2040_v62 = vld [vmem:[%s2814_s12 + $0x48] sm:$0xff] }
 0x1aa   : > { %v2215_v55 = vpop.eup %2214  ;;  %v771_v60 = vadd.f32 %v2213_v47, %v770_v53  ;;  %v759_v53 = vor.u32 1.1754944e-38, %v758_v44 }
 0x1ab   : > { %v2217_v40 = vpop.eup %2216  ;;  %v748_v49 = vmul.f32 %v2215_v55, %v746_v63  ;;  %vm753_vm15 = vweird.f32 %v2215_v55 }
 0x1ac   : > { %v791_v56 = vmul.f32 %v2217_v40, %v789_v48  ;;  %v775_v51 = vsel %vm774_vm14, %v2213_v47, %v771_v60  ;;  %vm754_vm2 = vmor %vm752_vm1, %vm753_vm15  ;;  %v2219_v33 = vpop.eup %2218  ;;  %vm796_vm4 = vweird.f32 %v2217_v40 }
 0x1ad   : > { %v749_v57 = vsub.f32 1.0, %v748_v49  ;;  %v780_v39 = vsel %vm777_vm0, %v779_v36, %v775_v51  ;;  %v799_v36 = vand.u32 2147483647, %v789_v48  ;;  %vm797_vm6 = vmor %vm795_vm5, %vm796_vm4  ;;  %v802_v51 = vor.u32 1.1754944e-38, %v801_v43 }
 0x1ae   : > { %v792_v3 = vsub.f32 1.0, %v791_v56  ;;  %v783_v32 = vmul.f32 %v2219_v33, %v780_v39 }
 0x1af   : > { %v750_v59 = vmul.f32 %v2215_v55, %v749_v57  ;;  %vm800_vm7 = vcmp.eq.f32.partialorder %v799_v36, 8.507059e+37 }
 0x1b0   : > { %v793_v49 = vmul.f32 %v2217_v40, %v792_v3 }
 0x1b1   : > { %v751_v61 = vadd.f32 %v2215_v55, %v750_v59 }
 0x1b2   : > { %v794_v60 = vadd.f32 %v2217_v40, %v793_v49 }
 0x1b3   : > { %v755_v35 = vsel %vm754_vm2, %v2215_v55, %v751_v61 }
 0x1b4   : > { %v760_v37 = vsel %vm757_vm3, %v759_v53, %v755_v35  ;;  %v798_v59 = vsel %vm797_vm6, %v2217_v40, %v794_v60 }
 0x1b5   : > { %v762_v47 = vmul.f32 %v760_v37, %v3232_v52  ;;  %v803_v35 = vsel %vm800_vm7, %v802_v51, %v798_v59 }
 0x1b7   : > { %v3308_v41 = vadd.f32 %v783_v32, %v762_v47 }
 0x1b9   : > { %2220 = vtanh.f32 %v3308_v41 }
 0x1bf   : > { %v2221_v45 = vpop.eup %2220 }
 0x1c0   : > { %v805_v63 = vmul.f32 %v2221_v45, %v803_v35 }
 0x1c2   : > { %2038 = vst [vmem:[%s3236_s20 + $0x8] sm:$0xff] %v805_v63  ;;  %829 = vmatmul.f32.vlgmr.msra.gmra.mxu0 %v805_v63  ;;  %849 = vmatmul.f32.vlgmr.msra.gmra.mxu1 %v805_v63 }
 0x1c3   : > { %869 = vmatmul.f32.vlgmr.msra.gmra.mxu2 %v805_v63  ;;  %889 = vmatmul.f32.vlgmr.msra.gmra.mxu3 %v805_v63 }
 0x1c4   : > { %1121 = vmatpush.msra.mxu0 %v2841_v0  ;;  %1141 = vmatpush.msra.mxu1 %v2921_v21  ;;  %v4101_v0 = vld [vmem:[#allocation27_spill] sm:$0xff]  ;;  %v4121_v21 = vld [vmem:[#allocation42_spill] sm:$0xff] }
 0x1c5   : > { %1161 = vmatpush.msra.mxu2 %v2844_v1  ;;  %1181 = vmatpush.msra.mxu3 %v2847_v2  ;;  %v4102_v1 = vld [vmem:[#allocation28_spill] sm:$0xff]  ;;  %v4103_v2 = vld [vmem:[#allocation29_spill] sm:$0xff] }
 0x1c6   : > { %1122 = vmatpush.msra.mxu0 %v4074_v58  ;;  %1142 = vmatpush.msra.mxu1 %v2932_v24  ;;  %v4124_v24 = vld [vmem:[#allocation52_spill] sm:$0xff] }
 0x1c7   : > { %1162 = vmatpush.msra.mxu2 %v2855_v4  ;;  %1182 = vmatpush.msra.mxu3 %v2858_v5  ;;  %v4104_v4 = vld [vmem:[#allocation47_spill] sm:$0xff]  ;;  %v4105_v5 = vld [vmem:[#allocation30_spill] sm:$0xff] }
 0x1c8   : > { %1123 = vmatpush.msra.mxu0 %v2862_v6  ;;  %1143 = vmatpush.msra.mxu1 %v2940_v26  ;;  %v4106_v6 = vld [vmem:[#allocation31_spill] sm:$0xff]  ;;  %v4126_v26 = vld [vmem:[#allocation46_spill] sm:$0xff] }
 0x1c9   : > { %1163 = vmatpush.msra.mxu2 %v2865_v7  ;;  %1183 = vmatpush.msra.mxu3 %v2870_v8  ;;  %v4107_v7 = vld [vmem:[#allocation32_spill] sm:$0xff] }
 0x1ca   : > { %1124 = vmatpush.msra.mxu0 %v2874_v9  ;;  %1144 = vmatpush.msra.mxu1 %v2956_v30  ;;  %v4108_v8 = vld [vmem:[#allocation48_spill] sm:$0xff]  ;;  %v4109_v9 = vld [vmem:[#allocation33_spill] sm:$0xff] }
 0x1cb   : > { %1164 = vmatpush.msra.mxu2 %v2877_v10  ;;  %1184 = vmatpush.msra.mxu3 %v2882_v11  ;;  %v4110_v10 = vld [vmem:[#allocation34_spill] sm:$0xff]  ;;  %v4111_v11 = vld [vmem:[#allocation35_spill] sm:$0xff] }
 0x1cc   : > { %1125 = vmatpush.msra.mxu0 %v2886_v12  ;;  %1145 = vmatpush.msra.mxu1 %v2972_v34  ;;  %v4112_v12 = vld [vmem:[#allocation49_spill] sm:$0xff] }
 0x1cd   : > { %1165 = vmatpush.msra.mxu2 %v2889_v13  ;;  %1185 = vmatpush.msra.mxu3 %v2894_v14  ;;  %v4113_v13 = vld [vmem:[#allocation36_spill] sm:$0xff]  ;;  %v4114_v14 = vld [vmem:[#allocation37_spill] sm:$0xff] }
 0x1ce   : > { %1126 = vmatpush.msra.mxu0 %v2898_v15  ;;  %1146 = vmatpush.msra.mxu1 %v2988_v38  ;;  %v4115_v15 = vld [vmem:[#allocation38_spill] sm:$0xff]  ;;  %v2042_v34 = vld [vmem:[%s2814_s12 + $0x58] sm:$0xff] }
 0x1cf   : > { %1166 = vmatpush.msra.mxu2 %v2901_v16  ;;  %1186 = vmatpush.msra.mxu3 %v2906_v17  ;;  %v4116_v16 = vld [vmem:[#allocation50_spill] sm:$0xff]  ;;  %v4117_v17 = vld [vmem:[#allocation39_spill] sm:$0xff] }
 0x1d0   : > { %1127 = vmatpush.msra.mxu0 %v2910_v18  ;;  %1147 = vmatpush.msra.mxu1 %v3004_v42  ;;  %v4118_v18 = vld [vmem:[#allocation40_spill] sm:$0xff] }
 0x1d1   : > { %1167 = vmatpush.msra.mxu2 %v2913_v19  ;;  %1187 = vmatpush.msra.mxu3 %v2918_v20  ;;  %v4119_v19 = vld [vmem:[#allocation41_spill] sm:$0xff]  ;;  %v4120_v20 = vld [vmem:[#allocation51_spill] sm:$0xff] }
 0x1d2   : > { %1128 = vmatpush.msra.mxu0 %v2925_v22  ;;  %1148 = vmatpush.msra.mxu1 %v3020_v46  ;;  %v4122_v22 = vld [vmem:[#allocation43_spill] sm:$0xff] }
 0x1d3   : > { %1168 = vmatpush.msra.mxu2 %v2928_v23  ;;  %1188 = vmatpush.msra.mxu3 %v2937_v25  ;;  %v4123_v23 = vld [vmem:[#allocation44_spill] sm:$0xff]  ;;  %v4125_v25 = vld [vmem:[#allocation45_spill] sm:$0xff] }
 0x1d4   : > { %1129 = vmatpush.msra.mxu0 %v2944_v27  ;;  %1149 = vmatpush.msra.mxu1 %v3036_v50  ;;  %v2039_v27 = vld [vmem:[%s2814_s12 + $0x40] sm:$0xff] }
 0x1d5   : > { %1169 = vmatpush.msra.mxu2 %v2947_v28  ;;  %1189 = vmatpush.msra.mxu3 %v2953_v29 }
 0x1d6   : > { %1130 = vmatpush.msra.mxu0 %v2960_v31  ;;  %1150 = vmatpush.msra.mxu1 %v3052_v54  ;;  %v2041_v31 = vld [vmem:[%s2814_s12 + $0x50] sm:$0xff] }
 0x1d7   : > { %1170 = vmatpush.msra.mxu2 %v4101_v0  ;;  %1190 = vmatpush.msra.mxu3 %v4102_v1 }
 0x1d8   : > { %1131 = vmatpush.msra.mxu0 %v4103_v2  ;;  %1151 = vmatpush.msra.mxu1 %v4104_v4 }
 0x1d9   : > { %1171 = vmatpush.msra.mxu2 %v4105_v5  ;;  %1191 = vmatpush.msra.mxu3 %v4106_v6 }
 0x1da   : > { %1132 = vmatpush.msra.mxu0 %v4107_v7  ;;  %1152 = vmatpush.msra.mxu1 %v4108_v8 }
 0x1db   : > { %1172 = vmatpush.msra.mxu2 %v4109_v9  ;;  %1192 = vmatpush.msra.mxu3 %v4110_v10 }
 0x1dc   : > { %1133 = vmatpush.msra.mxu0 %v4111_v11  ;;  %1153 = vmatpush.msra.mxu1 %v4112_v12 }
 0x1dd   : > { %1173 = vmatpush.msra.mxu2 %v4113_v13  ;;  %1193 = vmatpush.msra.mxu3 %v4114_v14 }
 0x1de   : > { %1134 = vmatpush.msra.mxu0 %v4115_v15  ;;  %1154 = vmatpush.msra.mxu1 %v4116_v16 }
 0x1df   : > { %1174 = vmatpush.msra.mxu2 %v4117_v17  ;;  %1194 = vmatpush.msra.mxu3 %v4118_v18 }
 0x1e0   : > { %1135 = vmatpush.msra.mxu0 %v4119_v19  ;;  %1155 = vmatpush.msra.mxu1 %v4120_v20  ;;  %v3386_v20 = vld [vmem:[%s2824_s16 + $0x1e0] sm:$0xff] }
 0x1e1   : > { %1175 = vmatpush.msra.mxu2 %v4121_v21  ;;  %1195 = vmatpush.msra.mxu3 %v4122_v22  ;;  %v3390_v21 = vld [vmem:[%s2824_s16 + $0x1e8] sm:$0xff]  ;;  %v3394_v22 = vld [vmem:[%s2824_s16 + $0x1f0] sm:$0xff] }
 0x1e2   : > { %1136 = vmatpush.msra.mxu0 %v4123_v23  ;;  %1156 = vmatpush.msra.mxu1 %v4124_v24  ;;  %v3398_v23 = vld [vmem:[%s2824_s16 + $0x1f8] sm:$0xff]  ;;  %v3402_v24 = vld [vmem:[%s2824_s16 + $0x1c0] sm:$0xff] }
 0x1e3   : > { %1176 = vmatpush.msra.mxu2 %v4125_v25  ;;  %1196 = vmatpush.msra.mxu3 %v4126_v26  ;;  %v3406_v25 = vld [vmem:[%s2824_s16 + $0x1c8] sm:$0xff]  ;;  %v3410_v26 = vld [vmem:[%s2824_s16 + $0x1d0] sm:$0xff] }
 0x23f   : > { %v830_v28 = vpop.f32.mrf.mxu0  ;;  %v850_v3 = vpop.f32.mrf.mxu1 }
 0x240   : > { %v893_v29 = vadd.f32 %v2039_v27, %v830_v28  ;;  %v894_v53 = vadd.f32 %v2040_v62, %v850_v3  ;;  %v3414_v27 = vld [vmem:[%s2824_s16 + $0x1d8] sm:$0xff]  ;;  %v3418_v28 = vld [vmem:[%s2824_s16 + $0x1a0] sm:$0xff]  ;;  %v3502_v3 = vld [vmem:[%s2824_s16 + $0x108] sm:$0xff] }
 0x241   : > { %v3498_v62 = vld [vmem:[%s2824_s16 + $0x100] sm:$0xff] }
 0x242   : > { %v2044_v30 = vmul.f32 -1.442695, %v893_v29  ;;  %v3422_v29 = vld [vmem:[%s2824_s16 + $0x1a8] sm:$0xff] }
 0x244   : > { %2222 = vpow2.f32 %v2044_v30  ;;  %v3426_v30 = vld [vmem:[%s2824_s16 + $0x1b0] sm:$0xff] }
 0x246   : > { %v870_v38 = vpop.f32.mrf.mxu2  ;;  %v890_v42 = vpop.f32.mrf.mxu3 }
 0x247   : > { %v895_v46 = vadd.f32 %v2041_v31, %v870_v38  ;;  %v896_v50 = vadd.f32 %v2042_v34, %v890_v42  ;;  %v3430_v31 = vld [vmem:[%s2824_s16 + $0x1b8] sm:$0xff]  ;;  %v3434_v34 = vld [vmem:[%s2824_s16 + $0x180] sm:$0xff]  ;;  %v3438_v38 = vld [vmem:[%s2824_s16 + $0x188] sm:$0xff] }
 0x248   : > { %v3442_v42 = vld [vmem:[%s2824_s16 + $0x190] sm:$0xff] }
 0x249   : > { %v2043_v54 = vmul.f32 -1.442695, %v895_v46  ;;  %v2045_v58 = vmul.f32 -1.442695, %v896_v50  ;;  %v3446_v46 = vld [vmem:[%s2824_s16 + $0x198] sm:$0xff]  ;;  %v3450_v50 = vld [vmem:[%s2824_s16 + $0x160] sm:$0xff] }
 0x24a   : > { %v2223_v52 = vpop.eup %2222 }
 0x24b   : > { %v920_v32 = vadd.f32 1.0, %v2223_v52  ;;  %2224 = vpow2.f32 %v2043_v54  ;;  %v3454_v54 = vld [vmem:[%s2824_s16 + $0x168] sm:$0xff]  ;;  %v3462_v52 = vld [vmem:[%s2824_s16 + $0x178] sm:$0xff] }
 0x24c   : > { %2226 = vpow2.f32 %v2045_v58  ;;  %v3458_v58 = vld [vmem:[%s2824_s16 + $0x170] sm:$0xff] }
 0x24d   : > { %2228 = vrcp.f32 %v920_v32  ;;  %v932_v60 = vand.u32 2147483648, %v920_v32  ;;  %vm926_vm9 = vweird.f32 %v920_v32  ;;  %v930_v36 = vand.u32 2147483647, %v920_v32 }
 0x24f   : > { %v933_v0 = vor.u32 1.1754944e-38, %v932_v60  ;;  %vm931_vm12 = vcmp.eq.f32.partialorder %v930_v36, 8.507059e+37  ;;  %v3530_v60 = vld [vmem:[%s2824_s16 + $0xc0] sm:$0xff]  ;;  %v3538_v36 = vld [vmem:[%s2824_s16 + $0xd0] sm:$0xff] }
 0x250   : > { %4127 = vst [vmem:[#allocation26_spill] sm:$0xff] %v3538_v36 }
 0x251   : > { %v2225_v33 = vpop.eup %2224 }
 0x252   : > { %v2227_v48 = vpop.eup %2226  ;;  %v900_v55 = vadd.f32 1.0, %v2225_v33  ;;  %v3470_v33 = vld [vmem:[%s2824_s16 + $0x148] sm:$0xff] }
 0x253   : > { %v2229_v40 = vpop.eup %2228  ;;  %v943_v56 = vadd.f32 1.0, %v2227_v48  ;;  %v3474_v48 = vld [vmem:[%s2824_s16 + $0x150] sm:$0xff] }
 0x254   : > { %v922_v57 = vmul.f32 %v2229_v40, %v920_v32  ;;  %2230 = vrcp.f32 %v900_v55  ;;  %vm927_vm8 = vweird.f32 %v2229_v40  ;;  %v912_v51 = vand.u32 2147483648, %v900_v55  ;;  %v3466_v32 = vld [vmem:[%s2824_s16 + $0x140] sm:$0xff] }
 0x255   : > { %2232 = vrcp.f32 %v943_v56  ;;  %vm928_vm10 = vmor %vm926_vm9, %vm927_vm8  ;;  %v910_v63 = vand.u32 2147483647, %v900_v55  ;;  %vm906_vm13 = vweird.f32 %v900_v55  ;;  %v955_v14 = vand.u32 2147483648, %v943_v56 }
 0x256   : > { %v923_v44 = vsub.f32 1.0, %v922_v57  ;;  %2234 = vtanh.f32 %v894_v53  ;;  %v913_v5 = vor.u32 1.1754944e-38, %v912_v51  ;;  %vm949_vm1 = vweird.f32 %v943_v56  ;;  %v3490_v57 = vld [vmem:[%s2824_s16 + $0x130] sm:$0xff]  ;;  %v3514_v53 = vld [vmem:[%s2824_s16 + $0xe0] sm:$0xff] }
 0x257   : > { %vm911_vm15 = vcmp.eq.f32.partialorder %v910_v63, 8.507059e+37  ;;  %v953_v15 = vand.u32 2147483647, %v943_v56  ;;  %v956_v17 = vor.u32 1.1754944e-38, %v955_v14  ;;  %v3546_v51 = vld [vmem:[%s2824_s16 + $0xa0] sm:$0xff]  ;;  %v3558_v63 = vld [vmem:[%s2824_s16 + $0xb8] sm:$0xff] }
 0x258   : > { %v924_v61 = vmul.f32 %v2229_v40, %v923_v44  ;;  %v3494_v44 = vld [vmem:[%s2824_s16 + $0x138] sm:$0xff]  ;;  %4129 = vst [vmem:[#allocation28_spill] sm:$0xff] %v3546_v51  ;;  %v3610_v14 = vld [vmem:[%s2824_s16 + $0x20] sm:$0xff] }
 0x259   : > { %vm954_vm3 = vcmp.eq.f32.partialorder %v953_v15, 8.507059e+37  ;;  %4132 = vst [vmem:[#allocation30_spill] sm:$0xff] %v3558_v63  ;;  %v3614_v15 = vld [vmem:[%s2824_s16 + $0x28] sm:$0xff] }
 0x25a   : > { %v2231_v39 = vpop.eup %2230  ;;  %v925_v49 = vadd.f32 %v2229_v40, %v924_v61  ;;  %v3506_v61 = vld [vmem:[%s2824_s16 + $0x110] sm:$0xff]  ;;  %4145 = vst [vmem:[#allocation40_spill] sm:$0xff] %v3610_v14 }
 0x25b   : > { %v2233_v37 = vpop.eup %2232  ;;  %v902_v47 = vmul.f32 %v2231_v39, %v900_v55  ;;  %vm907_vm11 = vweird.f32 %v2231_v39  ;;  %v3478_v55 = vld [vmem:[%s2824_s16 + $0x158] sm:$0xff]  ;;  %4146 = vst [vmem:[#allocation41_spill] sm:$0xff] %v3614_v15 }
 0x25c   : > { %v945_v43 = vmul.f32 %v2233_v37, %v943_v56  ;;  %v929_v45 = vsel %vm928_vm10, %v2229_v40, %v925_v49  ;;  %vm908_vm14 = vmor %vm906_vm13, %vm907_vm11  ;;  %v2235_v7 = vpop.eup %2234  ;;  %vm950_vm0 = vweird.f32 %v2233_v37  ;;  %v3482_v40 = vld [vmem:[%s2824_s16 + $0x120] sm:$0xff]  ;;  %v3486_v56 = vld [vmem:[%s2824_s16 + $0x128] sm:$0xff] }
 0x25d   : > { %v903_v59 = vsub.f32 1.0, %v902_v47  ;;  %v934_v4 = vsel %vm931_vm12, %v933_v0, %v929_v45  ;;  %vm951_vm2 = vmor %vm949_vm1, %vm950_vm0  ;;  %v3522_v49 = vld [vmem:[%s2824_s16 + $0xf0] sm:$0xff]  ;;  %v3526_v47 = vld [vmem:[%s2824_s16 + $0xf8] sm:$0xff] }
 0x25e   : > { %v946_v1 = vsub.f32 1.0, %v945_v43  ;;  %v937_v10 = vmul.f32 %v2235_v7, %v934_v4  ;;  %v3534_v43 = vld [vmem:[%s2824_s16 + $0xc8] sm:$0xff]  ;;  %v3562_v0 = vld [vmem:[%s2824_s16 + $0x80] sm:$0xff]  ;;  %v3574_v4 = vld [vmem:[%s2824_s16 + $0x98] sm:$0xff] }
 0x25f   : > { %v904_v35 = vmul.f32 %v2231_v39, %v903_v59  ;;  %v3542_v59 = vld [vmem:[%s2824_s16 + $0xd8] sm:$0xff]  ;;  %v3550_v45 = vld [vmem:[%s2824_s16 + $0xa8] sm:$0xff]  ;;  %4133 = vst [vmem:[#allocation31_spill] sm:$0xff] %v3562_v0  ;;  %v3586_v7 = vld [vmem:[%s2824_s16 + $0x70] sm:$0xff] }
 0x260   : > { %v947_v9 = vmul.f32 %v2233_v37, %v946_v1  ;;  %4128 = vst [vmem:[#allocation27_spill] sm:$0xff] %v3542_v59  ;;  %v3566_v1 = vld [vmem:[%s2824_s16 + $0x88] sm:$0xff] }
 0x261   : > { %v905_v2 = vadd.f32 %v2231_v39, %v904_v35  ;;  %4130 = vst [vmem:[#allocation29_spill] sm:$0xff] %v3550_v45  ;;  %v3554_v35 = vld [vmem:[%s2824_s16 + $0xb0] sm:$0xff] }
 0x262   : > { %v948_v13 = vadd.f32 %v2233_v37, %v947_v9  ;;  %4131 = vst [vmem:[#allocation47_spill] sm:$0xff] %v3554_v35  ;;  %v3594_v9 = vld [vmem:[%s2824_s16 + $0x40] sm:$0xff] }
 0x263   : > { %v909_v6 = vsel %vm908_vm14, %v2231_v39, %v905_v2  ;;  %v3510_v39 = vld [vmem:[%s2824_s16 + $0x118] sm:$0xff]  ;;  %4134 = vst [vmem:[#allocation32_spill] sm:$0xff] %v3566_v1  ;;  %v3570_v2 = vld [vmem:[%s2824_s16 + $0x90] sm:$0xff] }
 0x264   : > { %v914_v8 = vsel %vm911_vm15, %v913_v5, %v909_v6  ;;  %v952_v16 = vsel %vm951_vm2, %v2233_v37, %v948_v13  ;;  %v3518_v37 = vld [vmem:[%s2824_s16 + $0xe8] sm:$0xff]  ;;  %4135 = vst [vmem:[#allocation48_spill] sm:$0xff] %v3570_v2  ;;  %v3578_v5 = vld [vmem:[%s2824_s16 + $0x60] sm:$0xff]  ;;  %v3606_v13 = vld [vmem:[%s2824_s16 + $0x58] sm:$0xff] }
 0x265   : > { %v916_v11 = vmul.f32 %v914_v8, %v3308_v41  ;;  %v957_v41 = vsel %vm954_vm3, %v956_v17, %v952_v16  ;;  %4136 = vst [vmem:[#allocation33_spill] sm:$0xff] %v3574_v4  ;;  %v3582_v6 = vld [vmem:[%s2824_s16 + $0x68] sm:$0xff]  ;;  %v3590_v8 = vld [vmem:[%s2824_s16 + $0x78] sm:$0xff]  ;;  %v3618_v16 = vld [vmem:[%s2824_s16 + $0x30] sm:$0xff] }
 0x266   : > { %4137 = vst [vmem:[#allocation34_spill] sm:$0xff] %v3578_v5  ;;  %v3622_v17 = vld [vmem:[%s2824_s16 + $0x38] sm:$0xff] }
 0x267   : > { %v3381_v12 = vadd.f32 %v937_v10, %v916_v11  ;;  %4138 = vst [vmem:[#allocation35_spill] sm:$0xff] %v3582_v6  ;;  %v3598_v10 = vld [vmem:[%s2824_s16 + $0x48] sm:$0xff]  ;;  %v3602_v11 = vld [vmem:[%s2824_s16 + $0x50] sm:$0xff] }
 0x268   : > { %4139 = vst [vmem:[#allocation49_spill] sm:$0xff] %v3586_v7 }
 0x269   : > { %2236 = vtanh.f32 %v3381_v12  ;;  %4140 = vst [vmem:[#allocation36_spill] sm:$0xff] %v3590_v8 }
 0x26a   : > { %4141 = vst [vmem:[#allocation37_spill] sm:$0xff] %v3594_v9 }
 0x26b   : > { %4142 = vst [vmem:[#allocation38_spill] sm:$0xff] %v3598_v10 }
 0x26c   : > { %4143 = vst [vmem:[#allocation50_spill] sm:$0xff] %v3602_v11 }
 0x26d   : > { %4144 = vst [vmem:[#allocation39_spill] sm:$0xff] %v3606_v13 }
 0x26e   : > { %4147 = vst [vmem:[#allocation51_spill] sm:$0xff] %v3618_v16 }
 0x26f   : > { %v2237_v18 = vpop.eup %2236  ;;  %4148 = vst [vmem:[#allocation42_spill] sm:$0xff] %v3622_v17 }
 0x270   : > { %v959_v19 = vmul.f32 %v2237_v18, %v957_v41  ;;  %v3626_v18 = vld [vmem:[%s2824_s16] sm:$0xff]  ;;  %v3630_v41 = vld [vmem:[%s2824_s16 + $0x8] sm:$0xff] }
 0x271   : > { %4149 = vst [vmem:[#allocation43_spill] sm:$0xff] %v3626_v18 }
 0x272   : > { %2046 = vst [vmem:[%s3236_s20 + $0x10] sm:$0xff] %v959_v19  ;;  %983 = vmatmul.f32.vlgmr.msrb.gmra.mxu0 %v959_v19  ;;  %1003 = vmatmul.f32.vlgmr.msrb.gmra.mxu1 %v959_v19 }
 0x273   : > { %1023 = vmatmul.f32.vlgmr.msrb.gmra.mxu2 %v959_v19  ;;  %1043 = vmatmul.f32.vlgmr.msrb.gmra.mxu3 %v959_v19  ;;  %4150 = vst [vmem:[#allocation44_spill] sm:$0xff] %v3630_v41  ;;  %v3634_v19 = vld [vmem:[%s2824_s16 + $0x10] sm:$0xff] }
 0x274   : > { %1275 = vmatpush.msrb.mxu0 %v3386_v20  ;;  %1295 = vmatpush.msrb.mxu1 %v3390_v21  ;;  %4151 = vst [vmem:[#allocation52_spill] sm:$0xff] %v3634_v19 }
 0x275   : > { %1315 = vmatpush.msrb.mxu2 %v3394_v22  ;;  %1335 = vmatpush.msrb.mxu3 %v3398_v23 }
 0x276   : > { %1276 = vmatpush.msrb.mxu0 %v3402_v24  ;;  %1296 = vmatpush.msrb.mxu1 %v3406_v25 }
 0x277   : > { %1316 = vmatpush.msrb.mxu2 %v3410_v26  ;;  %1336 = vmatpush.msrb.mxu3 %v3414_v27 }
 0x278   : > { %1277 = vmatpush.msrb.mxu0 %v3418_v28  ;;  %1297 = vmatpush.msrb.mxu1 %v3422_v29 }
 0x279   : > { %1317 = vmatpush.msrb.mxu2 %v3426_v30  ;;  %1337 = vmatpush.msrb.mxu3 %v3430_v31 }
 0x27a   : > { %1278 = vmatpush.msrb.mxu0 %v3434_v34  ;;  %1298 = vmatpush.msrb.mxu1 %v3438_v38 }
 0x27b   : > { %1318 = vmatpush.msrb.mxu2 %v3442_v42  ;;  %1338 = vmatpush.msrb.mxu3 %v3446_v46 }
 0x27c   : > { %1279 = vmatpush.msrb.mxu0 %v3450_v50  ;;  %1299 = vmatpush.msrb.mxu1 %v3454_v54 }
 0x27d   : > { %1319 = vmatpush.msrb.mxu2 %v3458_v58  ;;  %1339 = vmatpush.msrb.mxu3 %v3462_v52 }
 0x27e   : > { %1280 = vmatpush.msrb.mxu0 %v3466_v32  ;;  %1300 = vmatpush.msrb.mxu1 %v3470_v33 }
 0x27f   : > { %1320 = vmatpush.msrb.mxu2 %v3474_v48  ;;  %1340 = vmatpush.msrb.mxu3 %v3478_v55 }
 0x280   : > { %1281 = vmatpush.msrb.mxu0 %v3482_v40  ;;  %1301 = vmatpush.msrb.mxu1 %v3486_v56 }
 0x281   : > { %1321 = vmatpush.msrb.mxu2 %v3490_v57  ;;  %1341 = vmatpush.msrb.mxu3 %v3494_v44 }
 0x282   : > { %1282 = vmatpush.msrb.mxu0 %v3498_v62  ;;  %1302 = vmatpush.msrb.mxu1 %v3502_v3 }
 0x283   : > { %1322 = vmatpush.msrb.mxu2 %v3506_v61  ;;  %1342 = vmatpush.msrb.mxu3 %v3510_v39 }
 0x284   : > { %1283 = vmatpush.msrb.mxu0 %v3514_v53  ;;  %1303 = vmatpush.msrb.mxu1 %v3518_v37 }
 0x285   : > { %1323 = vmatpush.msrb.mxu2 %v3522_v49  ;;  %1343 = vmatpush.msrb.mxu3 %v3526_v47 }
 0x286   : > { %1284 = vmatpush.msrb.mxu0 %v3530_v60  ;;  %1304 = vmatpush.msrb.mxu1 %v3534_v43 }
 0x287   : > { %1324 = vmatpush.msrb.mxu2 %v3538_v36  ;;  %1344 = vmatpush.msrb.mxu3 %v3542_v59 }
 0x288   : > { %1285 = vmatpush.msrb.mxu0 %v3546_v51  ;;  %1305 = vmatpush.msrb.mxu1 %v3550_v45 }
 0x289   : > { %1325 = vmatpush.msrb.mxu2 %v3554_v35  ;;  %1345 = vmatpush.msrb.mxu3 %v3558_v63 }
 0x28a   : > { %1286 = vmatpush.msrb.mxu0 %v3562_v0  ;;  %1306 = vmatpush.msrb.mxu1 %v3566_v1  ;;  %v2048_v1 = vld [vmem:[%s2814_s12 + $0x68] sm:$0xff] }
 0x28b   : > { %1326 = vmatpush.msrb.mxu2 %v3570_v2  ;;  %1346 = vmatpush.msrb.mxu3 %v3574_v4 }
 0x28c   : > { %1287 = vmatpush.msrb.mxu0 %v3578_v5  ;;  %1307 = vmatpush.msrb.mxu1 %v3582_v6 }
 0x28d   : > { %1327 = vmatpush.msrb.mxu2 %v3586_v7  ;;  %1347 = vmatpush.msrb.mxu3 %v3590_v8 }
 0x28e   : > { %1288 = vmatpush.msrb.mxu0 %v3594_v9  ;;  %1308 = vmatpush.msrb.mxu1 %v3598_v10  ;;  %v2050_v10 = vld [vmem:[%s2814_s12 + $0x78] sm:$0xff] }
 0x28f   : > { %1328 = vmatpush.msrb.mxu2 %v3602_v11  ;;  %1348 = vmatpush.msrb.mxu3 %v3606_v13  ;;  %v2049_v11 = vld [vmem:[%s2814_s12 + $0x70] sm:$0xff] }
 0x290   : > { %1289 = vmatpush.msrb.mxu0 %v3610_v14  ;;  %1309 = vmatpush.msrb.mxu1 %v3614_v15  ;;  %v3638_v15 = vld [vmem:[%s2824_s16 + $0x18] sm:$0xff]  ;;  %s4205_s16 = sld [smem:[#allocation54_spill]] }
 0x291   : > { %1329 = vmatpush.msrb.mxu2 %v3618_v16  ;;  %1349 = vmatpush.msrb.mxu3 %v3622_v17  ;;  %4152 = vst [vmem:[#allocation45_spill] sm:$0xff] %v3638_v15  ;;  %v2047_v16 = vld [vmem:[%s2814_s12 + $0x60] sm:$0xff] }
 0x292   : > { %1290 = vmatpush.msrb.mxu0 %v3626_v18  ;;  %1310 = vmatpush.msrb.mxu1 %v3630_v41 }
 0x293   : > { %1330 = vmatpush.msrb.mxu2 %v3634_v19  ;;  %1350 = vmatpush.msrb.mxu3 %v3638_v15 }
 0x296   : > { %s1788_s15 = scalar_lea.hbm %s4205_s16, %s2092_s17  ;;  %s3839_s17 = scalar_lea.sflag [#allocation12], %s347_s13 }
 0x297   : > { %s1792_s9 = sshll.u32 %s1788_s15, 4  ;;  %s3835_s9 = int_to_ptr.hbm [resolvable:$true] %s1792_s9 }
 0x2ef   : > { %v984_v14 = vpop.f32.mrf.mxu0 }
 0x2f0   : > { %v1047_v13 = vadd.f32 %v2047_v16, %v984_v14 }
 0x2f2   : > { %v2052_v17 = vmul.f32 -1.442695, %v1047_v13 }
 0x2f4   : > { %2238 = vpow2.f32 %v2052_v17 }
 0x2f6   : > { %v1024_v18 = vpop.f32.mrf.mxu2  ;;  %v1044_v9 = vpop.f32.mrf.mxu3 }
 0x2f7   : > { %v1049_v8 = vadd.f32 %v2049_v11, %v1024_v18  ;;  %v1050_v7 = vadd.f32 %v2050_v10, %v1044_v9  ;;  %v1004_v11 = vpop.f32.mrf.mxu1 }
 0x2f8   : > { %v1048_v10 = vadd.f32 %v2048_v1, %v1004_v11 }
 0x2f9   : > { %v2051_v41 = vmul.f32 -1.442695, %v1049_v8  ;;  %v2053_v6 = vmul.f32 -1.442695, %v1050_v7 }
 0x2fa   : > { %v2239_v5 = vpop.eup %2238 }
 0x2fb   : > { %v1074_v19 = vadd.f32 1.0, %v2239_v5  ;;  %2240 = vpow2.f32 %v2051_v41 }
 0x2fc   : > { %2242 = vpow2.f32 %v2053_v6 }
 0x2fd   : > { %2244 = vrcp.f32 %v1074_v19  ;;  %v1086_v6 = vand.u32 2147483648, %v1074_v19  ;;  %vm1080_vm5 = vweird.f32 %v1074_v19  ;;  %v1084_v0 = vand.u32 2147483647, %v1074_v19 }
 0x2ff   : > { %v1087_v45 = vor.u32 1.1754944e-38, %v1086_v6  ;;  %vm1085_vm8 = vcmp.eq.f32.partialorder %v1084_v0, 8.507059e+37 }
 0x301   : > { %v2241_v15 = vpop.eup %2240 }
 0x302   : > { %v2243_v4 = vpop.eup %2242  ;;  %v1054_v2 = vadd.f32 1.0, %v2241_v15 }
 0x303   : > { %v2245_v14 = vpop.eup %2244  ;;  %v1097_v13 = vadd.f32 1.0, %v2243_v4 }
 0x304   : > { %v1076_v16 = vmul.f32 %v2245_v14, %v1074_v19  ;;  %2246 = vrcp.f32 %v1054_v2  ;;  %vm1081_vm4 = vweird.f32 %v2245_v14  ;;  %v1066_v4 = vand.u32 2147483648, %v1054_v2 }
 0x305   : > { %2248 = vrcp.f32 %v1097_v13  ;;  %vm1082_vm6 = vmor %vm1080_vm5, %vm1081_vm4  ;;  %vm1060_vm9 = vweird.f32 %v1054_v2  ;;  %v1109_v6 = vand.u32 2147483648, %v1097_v13  ;;  %vm1103_vm13 = vweird.f32 %v1097_v13 }
 0x306   : > { %v1077_v17 = vsub.f32 1.0, %v1076_v16  ;;  %2250 = vtanh.f32 %v1048_v10  ;;  %v1064_v16 = vand.u32 2147483647, %v1054_v2 }
 0x308   : > { %v1078_v9 = vmul.f32 %v2245_v14, %v1077_v17  ;;  %vm1065_vm11 = vcmp.eq.f32.partialorder %v1064_v16, 8.507059e+37  ;;  %v4162_v16 = vld [vmem:[#allocation33_spill] sm:$0xff] }
 0x30a   : > { %v2247_v8 = vpop.eup %2246  ;;  %v1079_v18 = vadd.f32 %v2245_v14, %v1078_v9  ;;  %v1067_v9 = vor.u32 1.1754944e-38, %v1066_v4  ;;  %v4161_v4 = vld [vmem:[#allocation48_spill] sm:$0xff] }
 0x30b   : > { %v2249_v7 = vpop.eup %2248  ;;  %v1056_v5 = vmul.f32 %v2247_v8, %v1054_v2  ;;  %vm1061_vm7 = vweird.f32 %v2247_v8 }
 0x30c   : > { %v1099_v41 = vmul.f32 %v2249_v7, %v1097_v13  ;;  %v1083_v63 = vsel %vm1082_vm6, %v2245_v14, %v1079_v18  ;;  %vm1062_vm10 = vmor %vm1060_vm9, %vm1061_vm7  ;;  %v2251_v59 = vpop.eup %2250  ;;  %vm1104_vm12 = vweird.f32 %v2249_v7 }
 0x30d   : > { %v1057_v15 = vsub.f32 1.0, %v1056_v5  ;;  %v1088_v11 = vsel %vm1085_vm8, %v1087_v45, %v1083_v63  ;;  %v1107_v45 = vand.u32 2147483647, %v1097_v13  ;;  %vm1105_vm14 = vmor %vm1103_vm13, %vm1104_vm12  ;;  %v1110_v63 = vor.u32 1.1754944e-38, %v1109_v6  ;;  %v4156_v13 = vld [vmem:[#allocation29_spill] sm:$0xff]  ;;  %v4171_v6 = vld [vmem:[#allocation40_spill] sm:$0xff] }
 0x30e   : > { %v1100_v17 = vsub.f32 1.0, %v1099_v41  ;;  %v1091_v36 = vmul.f32 %v2251_v59, %v1088_v11  ;;  %v4155_v59 = vld [vmem:[#allocation28_spill] sm:$0xff]  ;;  %v4159_v41 = vld [vmem:[#allocation31_spill] sm:$0xff]  ;;  %v4165_v11 = vld [vmem:[#allocation49_spill] sm:$0xff] }
 0x30f   : > { %v1058_v35 = vmul.f32 %v2247_v8, %v1057_v15  ;;  %vm1108_vm15 = vcmp.eq.f32.partialorder %v1107_v45, 8.507059e+37  ;;  %v4160_v15 = vld [vmem:[#allocation32_spill] sm:$0xff]  ;;  %v4172_v45 = vld [vmem:[#allocation41_spill] sm:$0xff] }
 0x310   : > { %v1101_v5 = vmul.f32 %v2249_v7, %v1100_v17  ;;  %v4163_v17 = vld [vmem:[#allocation34_spill] sm:$0xff] }
 0x311   : > { %v1059_v1 = vadd.f32 %v2247_v8, %v1058_v35 }
 0x312   : > { %v1102_v18 = vadd.f32 %v2249_v7, %v1101_v5  ;;  %v4168_v5 = vld [vmem:[#allocation38_spill] sm:$0xff] }
 0x313   : > { %v1063_v51 = vsel %vm1062_vm10, %v2247_v8, %v1059_v1  ;;  %v4157_v8 = vld [vmem:[#allocation47_spill] sm:$0xff] }
 0x314   : > { %v1068_v19 = vsel %vm1065_vm11, %v1067_v9, %v1063_v51  ;;  %v1106_v35 = vsel %vm1105_vm14, %v2249_v7, %v1102_v18  ;;  %v4158_v7 = vld [vmem:[#allocation30_spill] sm:$0xff]  ;;  %v4164_v1 = vld [vmem:[#allocation35_spill] sm:$0xff]  ;;  %v4166_v9 = vld [vmem:[#allocation36_spill] sm:$0xff] }
 0x315   : > { %v1070_v14 = vmul.f32 %v1068_v19, %v3381_v12  ;;  %v1111_v51 = vsel %vm1108_vm15, %v1110_v63, %v1106_v35  ;;  %v4153_v12 = vld [vmem:[#allocation26_spill] sm:$0xff]  ;;  %v4167_v19 = vld [vmem:[#allocation37_spill] sm:$0xff]  ;;  %v4170_v18 = vld [vmem:[#allocation39_spill] sm:$0xff] }
 0x316   : > { %v4173_v35 = vld [vmem:[#allocation51_spill] sm:$0xff]  ;;  %v4174_v63 = vld [vmem:[#allocation42_spill] sm:$0xff] }
 0x317   : > { %v3646_v10 = vadd.f32 %v1091_v36, %v1070_v14  ;;  %v4154_v36 = vld [vmem:[#allocation27_spill] sm:$0xff]  ;;  %v4169_v14 = vld [vmem:[#allocation50_spill] sm:$0xff] }
 0x319   : > { %2252 = vtanh.f32 %v3646_v10 }
 0x31f   : > { %v2253_v0 = vpop.eup %2252 }
 0x320   : > { %v1113_v2 = vmul.f32 %v2253_v0, %v1111_v51  ;;  %v4175_v0 = vld [vmem:[#allocation43_spill] sm:$0xff]  ;;  %v4176_v51 = vld [vmem:[#allocation44_spill] sm:$0xff] }
 0x322   : > { %2054 = vst [vmem:[%s3236_s20 + $0x18] sm:$0xff] %v1113_v2  ;;  %1137 = vmatmul.f32.vlgmr.msra.gmra.mxu0 %v1113_v2  ;;  %1157 = vmatmul.f32.vlgmr.msra.gmra.mxu1 %v1113_v2 }
 0x323   : > { %1177 = vmatmul.f32.vlgmr.msra.gmra.mxu2 %v1113_v2  ;;  %1197 = vmatmul.f32.vlgmr.msra.gmra.mxu3 %v1113_v2  ;;  %v4177_v2 = vld [vmem:[#allocation52_spill] sm:$0xff] }
 0x324   : > { %1429 = vmatpush.msra.mxu0 %v3386_v20  ;;  %1449 = vmatpush.msra.mxu1 %v3390_v21 }
 0x325   : > { %1469 = vmatpush.msra.mxu2 %v3394_v22  ;;  %1489 = vmatpush.msra.mxu3 %v3398_v23 }
 0x326   : > { %1430 = vmatpush.msra.mxu0 %v3402_v24  ;;  %1450 = vmatpush.msra.mxu1 %v3406_v25 }
 0x327   : > { %1470 = vmatpush.msra.mxu2 %v3410_v26  ;;  %1490 = vmatpush.msra.mxu3 %v3414_v27 }
 0x328   : > { %1431 = vmatpush.msra.mxu0 %v3418_v28  ;;  %1451 = vmatpush.msra.mxu1 %v3422_v29 }
 0x329   : > { %1471 = vmatpush.msra.mxu2 %v3426_v30  ;;  %1491 = vmatpush.msra.mxu3 %v3430_v31 }
 0x32a   : > { %1432 = vmatpush.msra.mxu0 %v3434_v34  ;;  %1452 = vmatpush.msra.mxu1 %v3438_v38 }
 0x32b   : > { %1472 = vmatpush.msra.mxu2 %v3442_v42  ;;  %1492 = vmatpush.msra.mxu3 %v3446_v46 }
 0x32c   : > { %1433 = vmatpush.msra.mxu0 %v3450_v50  ;;  %1453 = vmatpush.msra.mxu1 %v3454_v54 }
 0x32d   : > { %1473 = vmatpush.msra.mxu2 %v3458_v58  ;;  %1493 = vmatpush.msra.mxu3 %v3462_v52 }
 0x32e   : > { %1434 = vmatpush.msra.mxu0 %v3466_v32  ;;  %1454 = vmatpush.msra.mxu1 %v3470_v33 }
 0x32f   : > { %1474 = vmatpush.msra.mxu2 %v3474_v48  ;;  %1494 = vmatpush.msra.mxu3 %v3478_v55 }
 0x330   : > { %1435 = vmatpush.msra.mxu0 %v3482_v40  ;;  %1455 = vmatpush.msra.mxu1 %v3486_v56 }
 0x331   : > { %1475 = vmatpush.msra.mxu2 %v3490_v57  ;;  %1495 = vmatpush.msra.mxu3 %v3494_v44 }
 0x332   : > { %1436 = vmatpush.msra.mxu0 %v3498_v62  ;;  %1456 = vmatpush.msra.mxu1 %v3502_v3 }
 0x333   : > { %1476 = vmatpush.msra.mxu2 %v3506_v61  ;;  %1496 = vmatpush.msra.mxu3 %v3510_v39 }
 0x334   : > { %1437 = vmatpush.msra.mxu0 %v3514_v53  ;;  %1457 = vmatpush.msra.mxu1 %v3518_v37 }
 0x335   : > { %1477 = vmatpush.msra.mxu2 %v3522_v49  ;;  %1497 = vmatpush.msra.mxu3 %v3526_v47 }
 0x336   : > { %1438 = vmatpush.msra.mxu0 %v3530_v60  ;;  %1458 = vmatpush.msra.mxu1 %v3534_v43 }
 0x337   : > { %1478 = vmatpush.msra.mxu2 %v4153_v12  ;;  %1498 = vmatpush.msra.mxu3 %v4154_v36 }
 0x338   : > { %1439 = vmatpush.msra.mxu0 %v4155_v59  ;;  %1459 = vmatpush.msra.mxu1 %v4156_v13 }
 0x339   : > { %1479 = vmatpush.msra.mxu2 %v4157_v8  ;;  %1499 = vmatpush.msra.mxu3 %v4158_v7 }
 0x33a   : > { %1440 = vmatpush.msra.mxu0 %v4159_v41  ;;  %1460 = vmatpush.msra.mxu1 %v4160_v15  ;;  %v2056_v15 = vld [vmem:[%s2814_s12 + $0x88] sm:$0xff] }
 0x33b   : > { %1480 = vmatpush.msra.mxu2 %v4161_v4  ;;  %1500 = vmatpush.msra.mxu3 %v4162_v16 }
 0x33c   : > { %1441 = vmatpush.msra.mxu0 %v4163_v17  ;;  %1461 = vmatpush.msra.mxu1 %v4164_v1 }
 0x33d   : > { %1481 = vmatpush.msra.mxu2 %v4165_v11  ;;  %1501 = vmatpush.msra.mxu3 %v4166_v9  ;;  %v2058_v11 = vld [vmem:[%s2814_s12 + $0x98] sm:$0xff] }
 0x33e   : > { %1442 = vmatpush.msra.mxu0 %v4167_v19  ;;  %1462 = vmatpush.msra.mxu1 %v4168_v5  ;;  %v4178_v5 = vld [vmem:[#allocation45_spill] sm:$0xff] }
 0x33f   : > { %1482 = vmatpush.msra.mxu2 %v4169_v14  ;;  %1502 = vmatpush.msra.mxu3 %v4170_v18  ;;  %v2055_v14 = vld [vmem:[%s2814_s12 + $0x80] sm:$0xff] }
 0x340   : > { %1443 = vmatpush.msra.mxu0 %v4171_v6  ;;  %1463 = vmatpush.msra.mxu1 %v4172_v45  ;;  %v2057_v6 = vld [vmem:[%s2814_s12 + $0x90] sm:$0xff] }
 0x341   : > { %1483 = vmatpush.msra.mxu2 %v4173_v35  ;;  %1503 = vmatpush.msra.mxu3 %v4174_v63 }
 0x342   : > { %1444 = vmatpush.msra.mxu0 %v4175_v0  ;;  %1464 = vmatpush.msra.mxu1 %v4176_v51 }
 0x343   : > { %1484 = vmatpush.msra.mxu2 %v4177_v2  ;;  %1504 = vmatpush.msra.mxu3 %v4178_v5 }
 0x39f   : > { %v1138_v19 = vpop.f32.mrf.mxu0 }
 0x3a0   : > { %v1201_v9 = vadd.f32 %v2055_v14, %v1138_v19 }
 0x3a2   : > { %v2060_v18 = vmul.f32 -1.442695, %v1201_v9 }
 0x3a4   : > { %2254 = vpow2.f32 %v2060_v18 }
 0x3a6   : > { %v1178_v45 = vpop.f32.mrf.mxu2  ;;  %v1198_v1 = vpop.f32.mrf.mxu3 }
 0x3a7   : > { %v1203_v35 = vadd.f32 %v2057_v6, %v1178_v45  ;;  %v1204_v17 = vadd.f32 %v2058_v11, %v1198_v1  ;;  %v1158_v6 = vpop.f32.mrf.mxu1 }
 0x3a8   : > { %v1202_v45 = vadd.f32 %v2056_v15, %v1158_v6 }
 0x3a9   : > { %v2059_v63 = vmul.f32 -1.442695, %v1203_v35  ;;  %v2061_v0 = vmul.f32 -1.442695, %v1204_v17 }
 0x3aa   : > { %v2255_v16 = vpop.eup %2254 }
 0x3ab   : > { %v1228_v51 = vadd.f32 1.0, %v2255_v16  ;;  %2256 = vpow2.f32 %v2059_v63 }
 0x3ac   : > { %2258 = vpow2.f32 %v2061_v0 }
 0x3ad   : > { %2260 = vrcp.f32 %v1228_v51  ;;  %v1240_v63 = vand.u32 2147483648, %v1228_v51  ;;  %vm1234_vm1 = vweird.f32 %v1228_v51  ;;  %v1238_v41 = vand.u32 2147483647, %v1228_v51 }
 0x3af   : > { %v1241_v13 = vor.u32 1.1754944e-38, %v1240_v63  ;;  %vm1239_vm4 = vcmp.eq.f32.partialorder %v1238_v41, 8.507059e+37 }
 0x3b1   : > { %v2257_v5 = vpop.eup %2256 }
 0x3b2   : > { %v2259_v2 = vpop.eup %2258  ;;  %v1208_v4 = vadd.f32 1.0, %v2257_v5 }
 0x3b3   : > { %v2261_v19 = vpop.eup %2260  ;;  %v1251_v9 = vadd.f32 1.0, %v2259_v2 }
 0x3b4   : > { %v1230_v14 = vmul.f32 %v2261_v19, %v1228_v51  ;;  %2262 = vrcp.f32 %v1208_v4  ;;  %vm1235_vm0 = vweird.f32 %v2261_v19  ;;  %v1220_v2 = vand.u32 2147483648, %v1208_v4 }
 0x3b5   : > { %2264 = vrcp.f32 %v1251_v9  ;;  %vm1236_vm2 = vmor %vm1234_vm1, %vm1235_vm0  ;;  %vm1214_vm5 = vweird.f32 %v1208_v4  ;;  %v1263_v63 = vand.u32 2147483648, %v1251_v9  ;;  %vm1257_vm9 = vweird.f32 %v1251_v9 }
 0x3b6   : > { %v1231_v18 = vsub.f32 1.0, %v1230_v14  ;;  %2266 = vtanh.f32 %v1202_v45  ;;  %v1218_v14 = vand.u32 2147483647, %v1208_v4 }
 0x3b8   : > { %v1232_v1 = vmul.f32 %v2261_v19, %v1231_v18  ;;  %vm1219_vm7 = vcmp.eq.f32.partialorder %v1218_v14, 8.507059e+37  ;;  %v2064_v14 = vld [vmem:[%s2814_s12 + $0xa8] sm:$0xff] }
 0x3ba   : > { %v2263_v11 = vpop.eup %2262  ;;  %v1233_v35 = vadd.f32 %v2261_v19, %v1232_v1  ;;  %v1221_v1 = vor.u32 1.1754944e-38, %v1220_v2 }
 0x3bb   : > { %v2265_v17 = vpop.eup %2264  ;;  %v1210_v16 = vmul.f32 %v2263_v11, %v1208_v4  ;;  %vm1215_vm3 = vweird.f32 %v2263_v11 }
 0x3bc   : > { %v1253_v0 = vmul.f32 %v2265_v17, %v1251_v9  ;;  %v1237_v7 = vsel %vm1236_vm2, %v2261_v19, %v1233_v35  ;;  %vm1216_vm6 = vmor %vm1214_vm5, %vm1215_vm3  ;;  %v2267_v36 = vpop.eup %2266  ;;  %vm1258_vm8 = vweird.f32 %v2265_v17 }
 0x3bd   : > { %v1211_v5 = vsub.f32 1.0, %v1210_v16  ;;  %v1242_v6 = vsel %vm1239_vm4, %v1241_v13, %v1237_v7  ;;  %v1261_v13 = vand.u32 2147483647, %v1251_v9  ;;  %vm1259_vm10 = vmor %vm1257_vm9, %vm1258_vm8  ;;  %v1264_v7 = vor.u32 1.1754944e-38, %v1263_v63 }
 0x3be   : > { %v1254_v18 = vsub.f32 1.0, %v1253_v0  ;;  %v1245_v12 = vmul.f32 %v2267_v36, %v1242_v6 }
 0x3bf   : > { %v1212_v8 = vmul.f32 %v2263_v11, %v1211_v5  ;;  %vm1262_vm11 = vcmp.eq.f32.partialorder %v1261_v13, 8.507059e+37 }
 0x3c0   : > { %v1255_v16 = vmul.f32 %v2265_v17, %v1254_v18 }
 0x3c1   : > { %v1213_v15 = vadd.f32 %v2263_v11, %v1212_v8 }
 0x3c2   : > { %v1256_v35 = vadd.f32 %v2265_v17, %v1255_v16 }
 0x3c3   : > { %v1217_v59 = vsel %vm1216_vm6, %v2263_v11, %v1213_v15 }
 0x3c4   : > { %v1222_v51 = vsel %vm1219_vm7, %v1221_v1, %v1217_v59  ;;  %v1260_v8 = vsel %vm1259_vm10, %v2265_v17, %v1256_v35 }
 0x3c5   : > { %v1224_v19 = vmul.f32 %v1222_v51, %v3646_v10  ;;  %v1265_v59 = vsel %vm1262_vm11, %v1264_v7, %v1260_v8 }
 0x3c7   : > { %v3719_v45 = vadd.f32 %v1245_v12, %v1224_v19 }
 0x3c9   : > { %2268 = vtanh.f32 %v3719_v45 }
 0x3cf   : > { %v2269_v41 = vpop.eup %2268 }
 0x3d0   : > { %v1267_v4 = vmul.f32 %v2269_v41, %v1265_v59 }
 0x3d2   : > { %2062 = vst [vmem:[%s3236_s20 + $0x20] sm:$0xff] %v1267_v4  ;;  %1291 = vmatmul.f32.vlgmr.msrb.gmra.mxu0 %v1267_v4  ;;  %1311 = vmatmul.f32.vlgmr.msrb.gmra.mxu1 %v1267_v4 }
 0x3d3   : > { %1331 = vmatmul.f32.vlgmr.msrb.gmra.mxu2 %v1267_v4  ;;  %1351 = vmatmul.f32.vlgmr.msrb.gmra.mxu3 %v1267_v4 }
 0x3d4   : > { %1583 = vmatpush.msrb.mxu0 %v3386_v20  ;;  %1603 = vmatpush.msrb.mxu1 %v3390_v21  ;;  %v4179_v20 = vld [vmem:[#allocation26_spill] sm:$0xff]  ;;  %v4180_v21 = vld [vmem:[#allocation27_spill] sm:$0xff] }
 0x3d5   : > { %1623 = vmatpush.msrb.mxu2 %v3394_v22  ;;  %1643 = vmatpush.msrb.mxu3 %v3398_v23  ;;  %v4181_v22 = vld [vmem:[#allocation28_spill] sm:$0xff]  ;;  %v4182_v23 = vld [vmem:[#allocation29_spill] sm:$0xff] }
 0x3d6   : > { %1584 = vmatpush.msrb.mxu0 %v3402_v24  ;;  %1604 = vmatpush.msrb.mxu1 %v3406_v25  ;;  %v4183_v24 = vld [vmem:[#allocation47_spill] sm:$0xff]  ;;  %v4184_v25 = vld [vmem:[#allocation30_spill] sm:$0xff] }
 0x3d7   : > { %1624 = vmatpush.msrb.mxu2 %v3410_v26  ;;  %1644 = vmatpush.msrb.mxu3 %v3414_v27  ;;  %v4185_v26 = vld [vmem:[#allocation31_spill] sm:$0xff]  ;;  %v4186_v27 = vld [vmem:[#allocation32_spill] sm:$0xff] }
 0x3d8   : > { %1585 = vmatpush.msrb.mxu0 %v3418_v28  ;;  %1605 = vmatpush.msrb.mxu1 %v3422_v29  ;;  %v4187_v28 = vld [vmem:[#allocation48_spill] sm:$0xff]  ;;  %v4188_v29 = vld [vmem:[#allocation33_spill] sm:$0xff] }
 0x3d9   : > { %1625 = vmatpush.msrb.mxu2 %v3426_v30  ;;  %1645 = vmatpush.msrb.mxu3 %v3430_v31  ;;  %v4189_v30 = vld [vmem:[#allocation34_spill] sm:$0xff]  ;;  %v4190_v31 = vld [vmem:[#allocation35_spill] sm:$0xff] }
 0x3da   : > { %1586 = vmatpush.msrb.mxu0 %v3434_v34  ;;  %1606 = vmatpush.msrb.mxu1 %v3438_v38  ;;  %v4191_v34 = vld [vmem:[#allocation49_spill] sm:$0xff]  ;;  %v4192_v38 = vld [vmem:[#allocation36_spill] sm:$0xff] }
 0x3db   : > { %1626 = vmatpush.msrb.mxu2 %v3442_v42  ;;  %1646 = vmatpush.msrb.mxu3 %v3446_v46  ;;  %v4193_v42 = vld [vmem:[#allocation37_spill] sm:$0xff]  ;;  %v4194_v46 = vld [vmem:[#allocation38_spill] sm:$0xff] }
 0x3dc   : > { %1587 = vmatpush.msrb.mxu0 %v3450_v50  ;;  %1607 = vmatpush.msrb.mxu1 %v3454_v54  ;;  %v4195_v50 = vld [vmem:[#allocation50_spill] sm:$0xff]  ;;  %v4196_v54 = vld [vmem:[#allocation39_spill] sm:$0xff] }
 0x3dd   : > { %1627 = vmatpush.msrb.mxu2 %v3458_v58  ;;  %1647 = vmatpush.msrb.mxu3 %v3462_v52  ;;  %v4197_v58 = vld [vmem:[#allocation40_spill] sm:$0xff]  ;;  %v4198_v52 = vld [vmem:[#allocation41_spill] sm:$0xff] }
 0x3de   : > { %1588 = vmatpush.msrb.mxu0 %v3466_v32  ;;  %1608 = vmatpush.msrb.mxu1 %v3470_v33  ;;  %v4199_v32 = vld [vmem:[#allocation51_spill] sm:$0xff]  ;;  %v4200_v33 = vld [vmem:[#allocation42_spill] sm:$0xff] }
 0x3df   : > { %1628 = vmatpush.msrb.mxu2 %v3474_v48  ;;  %1648 = vmatpush.msrb.mxu3 %v3478_v55  ;;  %v4201_v48 = vld [vmem:[#allocation43_spill] sm:$0xff]  ;;  %v4202_v55 = vld [vmem:[#allocation44_spill] sm:$0xff] }
 0x3e0   : > { %1589 = vmatpush.msrb.mxu0 %v3482_v40  ;;  %1609 = vmatpush.msrb.mxu1 %v3486_v56  ;;  %v4203_v40 = vld [vmem:[#allocation52_spill] sm:$0xff]  ;;  %v4204_v56 = vld [vmem:[#allocation45_spill] sm:$0xff] }
 0x3e1   : > { %1629 = vmatpush.msrb.mxu2 %v3490_v57  ;;  %1649 = vmatpush.msrb.mxu3 %v3494_v44  ;;  %v2063_v57 = vld [vmem:[%s2814_s12 + $0xa0] sm:$0xff] }
 0x3e2   : > { %1590 = vmatpush.msrb.mxu0 %v3498_v62  ;;  %1610 = vmatpush.msrb.mxu1 %v3502_v3 }
 0x3e3   : > { %1630 = vmatpush.msrb.mxu2 %v3506_v61  ;;  %1650 = vmatpush.msrb.mxu3 %v3510_v39  ;;  %v2065_v61 = vld [vmem:[%s2814_s12 + $0xb0] sm:$0xff]  ;;  %v2066_v39 = vld [vmem:[%s2814_s12 + $0xb8] sm:$0xff] }
 0x3e4   : > { %1591 = vmatpush.msrb.mxu0 %v3514_v53  ;;  %1611 = vmatpush.msrb.mxu1 %v3518_v37 }
 0x3e5   : > { %1631 = vmatpush.msrb.mxu2 %v3522_v49  ;;  %1651 = vmatpush.msrb.mxu3 %v3526_v47 }
 0x3e6   : > { %1592 = vmatpush.msrb.mxu0 %v3530_v60  ;;  %1612 = vmatpush.msrb.mxu1 %v3534_v43 }
 0x3e7   : > { %1632 = vmatpush.msrb.mxu2 %v4179_v20  ;;  %1652 = vmatpush.msrb.mxu3 %v4180_v21 }
 0x3e8   : > { %1593 = vmatpush.msrb.mxu0 %v4181_v22  ;;  %1613 = vmatpush.msrb.mxu1 %v4182_v23 }
 0x3e9   : > { %1633 = vmatpush.msrb.mxu2 %v4183_v24  ;;  %1653 = vmatpush.msrb.mxu3 %v4184_v25 }
 0x3ea   : > { %1594 = vmatpush.msrb.mxu0 %v4185_v26  ;;  %1614 = vmatpush.msrb.mxu1 %v4186_v27 }
 0x3eb   : > { %1634 = vmatpush.msrb.mxu2 %v4187_v28  ;;  %1654 = vmatpush.msrb.mxu3 %v4188_v29 }
 0x3ec   : > { %1595 = vmatpush.msrb.mxu0 %v4189_v30  ;;  %1615 = vmatpush.msrb.mxu1 %v4190_v31 }
 0x3ed   : > { %1635 = vmatpush.msrb.mxu2 %v4191_v34  ;;  %1655 = vmatpush.msrb.mxu3 %v4192_v38 }
 0x3ee   : > { %1596 = vmatpush.msrb.mxu0 %v4193_v42  ;;  %1616 = vmatpush.msrb.mxu1 %v4194_v46 }
 0x3ef   : > { %1636 = vmatpush.msrb.mxu2 %v4195_v50  ;;  %1656 = vmatpush.msrb.mxu3 %v4196_v54 }
 0x3f0   : > { %1597 = vmatpush.msrb.mxu0 %v4197_v58  ;;  %1617 = vmatpush.msrb.mxu1 %v4198_v52 }
 0x3f1   : > { %1637 = vmatpush.msrb.mxu2 %v4199_v32  ;;  %1657 = vmatpush.msrb.mxu3 %v4200_v33 }
 0x3f2   : > { %1598 = vmatpush.msrb.mxu0 %v4201_v48  ;;  %1618 = vmatpush.msrb.mxu1 %v4202_v55  ;;  %v2073_v55 = vld [vmem:[%s2814_s12 + $0xd0] sm:$0xff] }
 0x3f3   : > { %1638 = vmatpush.msrb.mxu2 %v4203_v40  ;;  %1658 = vmatpush.msrb.mxu3 %v4204_v56  ;;  %v2074_v40 = vld [vmem:[%s2814_s12 + $0xd8] sm:$0xff] }
 0x44f   : > { %v1292_v44 = vpop.f32.mrf.mxu0  ;;  %v1312_v18 = vpop.f32.mrf.mxu1 }
 0x450   : > { %v1355_v62 = vadd.f32 %v2063_v57, %v1292_v44  ;;  %v1356_v1 = vadd.f32 %v2064_v14, %v1312_v18 }
 0x452   : > { %v2068_v3 = vmul.f32 -1.442695, %v1355_v62 }
 0x454   : > { %2270 = vpow2.f32 %v2068_v3 }
 0x456   : > { %v1332_v53 = vpop.f32.mrf.mxu2  ;;  %v1352_v37 = vpop.f32.mrf.mxu3 }
 0x457   : > { %v1357_v49 = vadd.f32 %v2065_v61, %v1332_v53  ;;  %v1358_v47 = vadd.f32 %v2066_v39, %v1352_v37 }
 0x459   : > { %v2067_v60 = vmul.f32 -1.442695, %v1357_v49  ;;  %v2069_v43 = vmul.f32 -1.442695, %v1358_v47 }
 0x45a   : > { %v2271_v10 = vpop.eup %2270 }
 0x45b   : > { %v1382_v12 = vadd.f32 1.0, %v2271_v10  ;;  %2272 = vpow2.f32 %v2067_v60 }
 0x45c   : > { %2274 = vpow2.f32 %v2069_v43 }
 0x45d   : > { %2276 = vrcp.f32 %v1382_v12  ;;  %v1394_v35 = vand.u32 2147483648, %v1382_v12  ;;  %vm1388_vm13 = vweird.f32 %v1382_v12  ;;  %v1392_v13 = vand.u32 2147483647, %v1382_v12 }
 0x45f   : > { %v1395_v20 = vor.u32 1.1754944e-38, %v1394_v35  ;;  %vm1393_vm0 = vcmp.eq.f32.partialorder %v1392_v13, 8.507059e+37 }
 0x461   : > { %v2273_v36 = vpop.eup %2272 }
 0x462   : > { %v2275_v9 = vpop.eup %2274  ;;  %v1362_v11 = vadd.f32 1.0, %v2273_v36  ;;  %v2072_v36 = vld [vmem:[%s2814_s12 + $0xc8] sm:$0xff] }
 0x463   : > { %v2277_v17 = vpop.eup %2276  ;;  %v1405_v0 = vadd.f32 1.0, %v2275_v9 }
 0x464   : > { %v1384_v5 = vmul.f32 %v2277_v17, %v1382_v12  ;;  %2278 = vrcp.f32 %v1362_v11  ;;  %vm1389_vm12 = vweird.f32 %v2277_v17  ;;  %v1374_v7 = vand.u32 2147483648, %v1362_v11 }
 0x465   : > { %2280 = vrcp.f32 %v1405_v0  ;;  %vm1390_vm14 = vmor %vm1388_vm13, %vm1389_vm12  ;;  %v1372_v4 = vand.u32 2147483647, %v1362_v11  ;;  %vm1368_vm1 = vweird.f32 %v1362_v11  ;;  %v1417_v38 = vand.u32 2147483648, %v1405_v0 }
 0x466   : > { %v1385_v2 = vsub.f32 1.0, %v1384_v5  ;;  %2282 = vtanh.f32 %v1356_v1  ;;  %v1375_v24 = vor.u32 1.1754944e-38, %v1374_v7  ;;  %vm1411_vm5 = vweird.f32 %v1405_v0 }
 0x467   : > { %vm1373_vm3 = vcmp.eq.f32.partialorder %v1372_v4, 8.507059e+37  ;;  %v1415_v42 = vand.u32 2147483647, %v1405_v0  ;;  %v1418_v50 = vor.u32 1.1754944e-38, %v1417_v38 }
 0x468   : > { %v1386_v15 = vmul.f32 %v2277_v17, %v1385_v2 }
 0x469   : > { %vm1416_vm7 = vcmp.eq.f32.partialorder %v1415_v42, 8.507059e+37 }
 0x46a   : > { %v2279_v6 = vpop.eup %2278  ;;  %v1387_v16 = vadd.f32 %v2277_v17, %v1386_v15 }
 0x46b   : > { %v2281_v51 = vpop.eup %2280  ;;  %v1364_v19 = vmul.f32 %v2279_v6, %v1362_v11  ;;  %vm1369_vm15 = vweird.f32 %v2279_v6 }
 0x46c   : > { %v1407_v63 = vmul.f32 %v2281_v51, %v1405_v0  ;;  %v1391_v41 = vsel %vm1390_vm14, %v2277_v17, %v1387_v16  ;;  %vm1370_vm2 = vmor %vm1368_vm1, %vm1369_vm15  ;;  %v2283_v26 = vpop.eup %2282  ;;  %vm1412_vm4 = vweird.f32 %v2281_v51 }
 0x46d   : > { %v1365_v8 = vsub.f32 1.0, %v1364_v19  ;;  %v1396_v23 = vsel %vm1393_vm0, %v1395_v20, %v1391_v41  ;;  %vm1413_vm6 = vmor %vm1411_vm5, %vm1412_vm4 }
 0x46e   : > { %v1408_v21 = vsub.f32 1.0, %v1407_v63  ;;  %v1399_v29 = vmul.f32 %v2283_v26, %v1396_v23 }
 0x46f   : > { %v1366_v59 = vmul.f32 %v2279_v6, %v1365_v8 }
 0x470   : > { %v1409_v28 = vmul.f32 %v2281_v51, %v1408_v21 }
 0x471   : > { %v1367_v22 = vadd.f32 %v2279_v6, %v1366_v59 }
 0x472   : > { %v1410_v34 = vadd.f32 %v2281_v51, %v1409_v28 }
 0x473   : > { %v1371_v25 = vsel %vm1370_vm2, %v2279_v6, %v1367_v22 }
 0x474   : > { %v1376_v27 = vsel %vm1373_vm3, %v1375_v24, %v1371_v25  ;;  %v1414_v46 = vsel %vm1413_vm6, %v2281_v51, %v1410_v34 }
 0x475   : > { %v1378_v30 = vmul.f32 %v1376_v27, %v3719_v45  ;;  %v1419_v58 = vsel %vm1416_vm7, %v1418_v50, %v1414_v46  ;;  %v2071_v45 = vld [vmem:[%s2814_s12 + $0xc0] sm:$0xff] }
 0x477   : > { %v3792_v31 = vadd.f32 %v1399_v29, %v1378_v30 }
 0x479   : > { %2284 = vtanh.f32 %v3792_v31 }
 0x47f   : > { %v2285_v54 = vpop.eup %2284 }
 0x480   : > { %v1421_v52 = vmul.f32 %v2285_v54, %v1419_v58  ;;  %v2081_v54 = vld [vmem:[%s2814_s12 + $0xf0] sm:$0xff]  ;;  %v2082_v58 = vld [vmem:[%s2814_s12 + $0xf8] sm:$0xff] }
 0x482   : > { %2070 = vst [vmem:[%s3236_s20 + $0x28] sm:$0xff] %v1421_v52  ;;  %1445 = vmatmul.f32.vlgmr.msra.gmra.mxu0 %v1421_v52  ;;  %1465 = vmatmul.f32.vlgmr.msra.gmra.mxu1 %v1421_v52 }
 0x483   : > { %1485 = vmatmul.f32.vlgmr.msra.gmra.mxu2 %v1421_v52  ;;  %1505 = vmatmul.f32.vlgmr.msra.gmra.mxu3 %v1421_v52 }
 0x4ff   : > { %v1446_v32 = vpop.f32.mrf.mxu0  ;;  %v1466_v9 = vpop.f32.mrf.mxu1 }
 0x500   : > { %v1509_v33 = vadd.f32 %v2071_v45, %v1446_v32  ;;  %v1510_v0 = vadd.f32 %v2072_v36, %v1466_v9 }
 0x502   : > { %v2076_v48 = vmul.f32 -1.442695, %v1509_v33 }
 0x504   : > { %2286 = vpow2.f32 %v2076_v48 }
 0x506   : > { %v1486_v56 = vpop.f32.mrf.mxu2  ;;  %v1506_v57 = vpop.f32.mrf.mxu3 }
 0x507   : > { %v1511_v44 = vadd.f32 %v2073_v55, %v1486_v56  ;;  %v1512_v62 = vadd.f32 %v2074_v40, %v1506_v57 }
 0x509   : > { %v2075_v3 = vmul.f32 -1.442695, %v1511_v44  ;;  %v2077_v61 = vmul.f32 -1.442695, %v1512_v62 }
 0x50a   : > { %v2287_v39 = vpop.eup %2286 }
 0x50b   : > { %v1536_v53 = vadd.f32 1.0, %v2287_v39  ;;  %2288 = vpow2.f32 %v2075_v3 }
 0x50c   : > { %2290 = vpow2.f32 %v2077_v61 }
 0x50d   : > { %2292 = vrcp.f32 %v1536_v53  ;;  %v1548_v18 = vand.u32 2147483648, %v1536_v53  ;;  %vm1542_vm9 = vweird.f32 %v1536_v53  ;;  %v1546_v6 = vand.u32 2147483647, %v1536_v53 }
 0x50f   : > { %v1549_v63 = vor.u32 1.1754944e-38, %v1548_v18  ;;  %vm1547_vm12 = vcmp.eq.f32.partialorder %v1546_v6, 8.507059e+37 }
 0x511   : > { %v2289_v37 = vpop.eup %2288 }
 0x512   : > { %v2291_v49 = vpop.eup %2290  ;;  %v1516_v47 = vadd.f32 1.0, %v2289_v37  ;;  %v2080_v37 = vld [vmem:[%s2814_s12 + $0xe8] sm:$0xff] }
 0x513   : > { %v2293_v60 = vpop.eup %2292  ;;  %v1559_v43 = vadd.f32 1.0, %v2291_v49 }
 0x514   : > { %v1538_v10 = vmul.f32 %v2293_v60, %v1536_v53  ;;  %2294 = vrcp.f32 %v1516_v47  ;;  %vm1543_vm8 = vweird.f32 %v2293_v60  ;;  %v1528_v51 = vand.u32 2147483648, %v1516_v47 }
 0x515   : > { %2296 = vrcp.f32 %v1559_v43  ;;  %vm1544_vm10 = vmor %vm1542_vm9, %vm1543_vm8  ;;  %v1526_v35 = vand.u32 2147483647, %v1516_v47  ;;  %vm1522_vm13 = vweird.f32 %v1516_v47  ;;  %v1571_v26 = vand.u32 2147483648, %v1559_v43 }
 0x516   : > { %v1539_v12 = vsub.f32 1.0, %v1538_v10  ;;  %2298 = vtanh.f32 %v1510_v0  ;;  %v1529_v41 = vor.u32 1.1754944e-38, %v1528_v51  ;;  %vm1565_vm1 = vweird.f32 %v1559_v43 }
 0x517   : > { %vm1527_vm15 = vcmp.eq.f32.partialorder %v1526_v35, 8.507059e+37  ;;  %v1569_v27 = vand.u32 2147483647, %v1559_v43  ;;  %v1572_v29 = vor.u32 1.1754944e-38, %v1571_v26 }
 0x518   : > { %v1540_v11 = vmul.f32 %v2293_v60, %v1539_v12 }
 0x519   : > { %vm1570_vm3 = vcmp.eq.f32.partialorder %v1569_v27, 8.507059e+37 }
 0x51a   : > { %v2295_v17 = vpop.eup %2294  ;;  %v1541_v2 = vadd.f32 %v2293_v60, %v1540_v11 }
 0x51b   : > { %v2297_v5 = vpop.eup %2296  ;;  %v1518_v14 = vmul.f32 %v2295_v17, %v1516_v47  ;;  %vm1523_vm11 = vweird.f32 %v2295_v17 }
 0x51c   : > { %v1561_v15 = vmul.f32 %v2297_v5, %v1559_v43  ;;  %v1545_v16 = vsel %vm1544_vm10, %v2293_v60, %v1541_v2  ;;  %vm1524_vm14 = vmor %vm1522_vm13, %vm1523_vm11  ;;  %v2299_v4 = vpop.eup %2298  ;;  %vm1566_vm0 = vweird.f32 %v2297_v5 }
 0x51d   : > { %v1519_v1 = vsub.f32 1.0, %v1518_v14  ;;  %v1550_v7 = vsel %vm1547_vm12, %v1549_v63, %v1545_v16  ;;  %vm1567_vm2 = vmor %vm1565_vm1, %vm1566_vm0 }
 0x51e   : > { %v1562_v13 = vsub.f32 1.0, %v1561_v15  ;;  %v1553_v22 = vmul.f32 %v2299_v4, %v1550_v7 }
 0x51f   : > { %v1520_v19 = vmul.f32 %v2295_v17, %v1519_v1 }
 0x520   : > { %v1563_v21 = vmul.f32 %v2297_v5, %v1562_v13 }
 0x521   : > { %v1521_v8 = vadd.f32 %v2295_v17, %v1520_v19 }
 0x522   : > { %v1564_v25 = vadd.f32 %v2297_v5, %v1563_v21 }
 0x523   : > { %v1525_v59 = vsel %vm1524_vm14, %v2295_v17, %v1521_v8 }
 0x524   : > { %v1530_v20 = vsel %vm1527_vm15, %v1529_v41, %v1525_v59  ;;  %v1568_v28 = vsel %vm1567_vm2, %v2297_v5, %v1564_v25 }
 0x525   : > { %v1532_v23 = vmul.f32 %v1530_v20, %v3792_v31  ;;  %v1573_v34 = vsel %vm1570_vm3, %v1572_v29, %v1568_v28  ;;  %v2079_v31 = vld [vmem:[%s2814_s12 + $0xe0] sm:$0xff]  ;;  %s1778_s12 = sshll.u32 %s1774_s26, 4  ;;  %s1779_s12 = int_to_ptr.hbm [resolvable:$true] %s1778_s12 }
 0x526   : > { %s2516_s30 = sshra.s32 %s1779_s12, 4  ;;  %s2517_s30 = int_to_ptr.hbm [resolvable:$true] %s2516_s30 }
 0x527   : > { %v3801_v24 = vadd.f32 %v1553_v22, %v1532_v23  ;;  %s2518_s1 = scalar_lea.hbm %s2517_s30, 8  ;;  %p2523_p7 = scmp.lt.s32.totalorder %s2517_s30, %s3913_s5 }
 0x528   : > { %p2519_p4 = scmp.ne.s32.totalorder %s2517_s30, %s2518_s1  ;;  %p2524_p8 = scmp.lt.s32.totalorder %s2522_s6, %s2518_s1 }
 0x529   : > { %2300 = vtanh.f32 %v3801_v24 }
 0x52a   : > { %p2520_p5 = pnand %p2519_p4, %p2748_p9  ;;  %p2525_p10 = por %p2524_p8, %p2523_p7 }
 0x52c   : > { %p2521_p6 = pneg %p2520_p5 }
 0x52e   : > { %p2526_p13 = pnand %p2525_p10, %p2521_p6 }
 0x52f   : > { %v2301_v30 = vpop.eup %2300 }
 0x530   : > { %v1575_v38 = vmul.f32 %v2301_v30, %v1573_v34 }
 0x532   : > { %2078 = vst [vmem:[%s3236_s20 + $0x30] sm:$0xff] %v1575_v38  ;;  %1599 = vmatmul.f32.vlgmr.msrb.gmra.mxu0 %v1575_v38  ;;  %1619 = vmatmul.f32.vlgmr.msrb.gmra.mxu1 %v1575_v38 }
 0x533   : > { %1639 = vmatmul.f32.vlgmr.msrb.gmra.mxu2 %v1575_v38  ;;  %1659 = vmatmul.f32.vlgmr.msrb.gmra.mxu3 %v1575_v38 }
 0x5af   : > { %v1600_v42 = vpop.f32.mrf.mxu0  ;;  %v1620_v49 = vpop.f32.mrf.mxu1 }
 0x5b0   : > { %v1663_v46 = vadd.f32 %v2079_v31, %v1600_v42  ;;  %v1664_v43 = vadd.f32 %v2080_v37, %v1620_v49 }
 0x5b2   : > { %v2084_v50 = vmul.f32 -1.442695, %v1663_v46 }
 0x5b4   : > { %2302 = vpow2.f32 %v2084_v50 }
 0x5b6   : > { %v1640_v52 = vpop.f32.mrf.mxu2  ;;  %v1660_v45 = vpop.f32.mrf.mxu3 }
 0x5b7   : > { %v1665_v32 = vadd.f32 %v2081_v54, %v1640_v52  ;;  %v1666_v33 = vadd.f32 %v2082_v58, %v1660_v45 }
 0x5b9   : > { %v2083_v48 = vmul.f32 -1.442695, %v1665_v32  ;;  %v2085_v55 = vmul.f32 -1.442695, %v1666_v33 }
 0x5ba   : > { %v2303_v40 = vpop.eup %2302 }
 0x5bb   : > { %v1690_v56 = vadd.f32 1.0, %v2303_v40  ;;  %2304 = vpow2.f32 %v2083_v48 }
 0x5bc   : > { %2306 = vpow2.f32 %v2085_v55 }
 0x5bd   : > { %2308 = vrcp.f32 %v1690_v56  ;;  %v1702_v9 = vand.u32 2147483648, %v1690_v56  ;;  %vm1696_vm5 = vweird.f32 %v1690_v56  ;;  %v1700_v17 = vand.u32 2147483647, %v1690_v56 }
 0x5bf   : > { %v1703_v15 = vor.u32 1.1754944e-38, %v1702_v9  ;;  %vm1701_vm8 = vcmp.eq.f32.partialorder %v1700_v17, 8.507059e+37 }
 0x5c1   : > { %v2305_v57 = vpop.eup %2304 }
 0x5c2   : > { %v2307_v44 = vpop.eup %2306  ;;  %v1670_v62 = vadd.f32 1.0, %v2305_v57 }
 0x5c3   : > { %v2309_v3 = vpop.eup %2308  ;;  %v1713_v61 = vadd.f32 1.0, %v2307_v44 }
 0x5c4   : > { %v1692_v39 = vmul.f32 %v2309_v3, %v1690_v56  ;;  %2310 = vrcp.f32 %v1670_v62  ;;  %vm1697_vm4 = vweird.f32 %v2309_v3  ;;  %v1682_v5 = vand.u32 2147483648, %v1670_v62 }
 0x5c5   : > { %2312 = vrcp.f32 %v1713_v61  ;;  %vm1698_vm6 = vmor %vm1696_vm5, %vm1697_vm4  ;;  %v1680_v18 = vand.u32 2147483647, %v1670_v62  ;;  %vm1676_vm9 = vweird.f32 %v1670_v62  ;;  %v1725_v4 = vand.u32 2147483648, %v1713_v61 }
 0x5c6   : > { %v1693_v53 = vsub.f32 1.0, %v1692_v39  ;;  %2314 = vtanh.f32 %v1664_v43  ;;  %v1683_v16 = vor.u32 1.1754944e-38, %v1682_v5  ;;  %vm1719_vm13 = vweird.f32 %v1713_v61 }
 0x5c7   : > { %vm1681_vm11 = vcmp.eq.f32.partialorder %v1680_v18, 8.507059e+37  ;;  %v1723_v20 = vand.u32 2147483647, %v1713_v61  ;;  %v1726_v22 = vor.u32 1.1754944e-38, %v1725_v4 }
 0x5c8   : > { %v1694_v47 = vmul.f32 %v2309_v3, %v1693_v53 }
 0x5c9   : > { %vm1724_vm15 = vcmp.eq.f32.partialorder %v1723_v20, 8.507059e+37 }
 0x5ca   : > { %v2311_v60 = vpop.eup %2310  ;;  %v1695_v12 = vadd.f32 %v2309_v3, %v1694_v47 }
 0x5cb   : > { %v2313_v10 = vpop.eup %2312  ;;  %v1672_v36 = vmul.f32 %v2311_v60, %v1670_v62  ;;  %vm1677_vm7 = vweird.f32 %v2311_v60 }
 0x5cc   : > { %v1715_v11 = vmul.f32 %v2313_v10, %v1713_v61  ;;  %v1699_v2 = vsel %vm1698_vm6, %v2309_v3, %v1695_v12  ;;  %vm1678_vm10 = vmor %vm1676_vm9, %vm1677_vm7  ;;  %v2315_v35 = vpop.eup %2314  ;;  %vm1720_vm12 = vweird.f32 %v2313_v10 }
 0x5cd   : > { %v1673_v0 = vsub.f32 1.0, %v1672_v36  ;;  %v1704_v51 = vsel %vm1701_vm8, %v1703_v15, %v1699_v2  ;;  %vm1721_vm14 = vmor %vm1719_vm13, %vm1720_vm12 }
 0x5ce   : > { %v1716_v6 = vsub.f32 1.0, %v1715_v11  ;;  %v1707_v8 = vmul.f32 %v2315_v35, %v1704_v51 }
 0x5cf   : > { %v1674_v14 = vmul.f32 %v2311_v60, %v1673_v0 }
 0x5d0   : > { %v1717_v13 = vmul.f32 %v2313_v10, %v1716_v6 }
 0x5d1   : > { %v1675_v1 = vadd.f32 %v2311_v60, %v1674_v14 }
 0x5d2   : > { %v1718_v59 = vadd.f32 %v2313_v10, %v1717_v13 }
 0x5d3   : > { %v1679_v19 = vsel %vm1678_vm10, %v2311_v60, %v1675_v1 }
 0x5d4   : > { %v1684_v63 = vsel %vm1681_vm11, %v1683_v16, %v1679_v19  ;;  %v1722_v21 = vsel %vm1721_vm14, %v2313_v10, %v1718_v59 }
 0x5d5   : > { %v1686_v7 = vmul.f32 %v1684_v63, %v3801_v24  ;;  %v1727_v24 = vsel %vm1724_vm15, %v1726_v22, %v1722_v21 }
 0x5d7   : > { %v1708_v41 = vadd.f32 %v1707_v8, %v1686_v7 }
 0x5d9   : > { %2316 = vtanh.f32 %v1708_v41  ;;  %1733 = vst [vmem:[%s425_s18] sm:$0xff] %v1708_v41 }
 0x5df   : > { %v2317_v23 = vpop.eup %2316 }
 0x5e0   : > { %v1729_v25 = vmul.f32 %v2317_v23, %v1727_v24 }
 0x5e2   : > { %2086 = vst [vmem:[%s3236_s20 + $0x38] sm:$0xff] %v1729_v25 }
 0x5e3   : > { %1732 = vst [vmem:[%s418_s29] sm:$0xff] %v1729_v25 }
 0x5e4   : > { %2529 = shalt.err (!%p2526_p13)
}
 0x5e5   : > { %2108 = dma.vmem_to_hbm [thread:$0]  (%p2748_p9), %s1777_s11, 128, %s1779_s12, %s3839_s17  }
 0x5e6   : > { %s1735_s27 = scalar_lea.sflag [#allocation4], %s2810_s21  ;;  %s2544_s13 = sshra.s32 %s3831_s28, 4  ;;  %s2545_s13 = int_to_ptr.hbm [resolvable:$true] %s2544_s13 }
 0x5e7   : > { %s2546_s29 = scalar_lea.hbm %s2545_s13, 64  ;;  %s2550_s7 = scalar_lea.hbm %s3912_s4, 128 }
 0x5e8   : > { %p2547_p0 = scmp.ne.s32.totalorder %s2545_s13, %s2546_s29  ;;  %p2551_p3 = scmp.lt.s32.totalorder %s2545_s13, %s3912_s4 }
 0x5e9   : > { %p2552_p4 = scmp.lt.s32.totalorder %s2550_s7, %s2546_s29 }
 0x5ea   : > { %p2548_p1 = pnand %p2547_p0, %p2748_p9 }
 0x5eb   : > { %p2553_p5 = por %p2552_p4, %p2551_p3 }
 0x5ec   : > { %p2549_p2 = pneg %p2548_p1 }
 0x5ee   : > { %p2554_p6 = pnand %p2553_p5, %p2549_p2 }
 0x5f0   : > { %2557 = shalt.err (!%p2554_p6)
}
 0x5f1   : > { %s2656_s21 = smov 128   ;;  %s2657_s11 = smov 8  }
 0x5f2   : > { %2107 = dma.vmem_to_hbm [thread:$0]  (%p2748_p9), %s3829_s8, 1024, %s3831_s28, %s1735_s27, %s2656_s21, %s2656_s21, %s2657_s11  }
 0x5f3   : > { %s2572_s12 = sshra.s32 %s3835_s9, 4  ;;  %s2578_s6 = scalar_lea.hbm %s4205_s16, 16  ;;  %s2573_s12 = int_to_ptr.hbm [resolvable:$true] %s2572_s12 }
 0x5f4   : > { %s2574_s1 = scalar_lea.hbm %s2573_s12, 8  ;;  %p2579_p13 = scmp.lt.s32.totalorder %s2573_s12, %s4205_s16 }
 0x5f5   : > { %p2575_p7 = scmp.ne.s32.totalorder %s2573_s12, %s2574_s1  ;;  %p2580_p0 = scmp.lt.s32.totalorder %s2578_s6, %s2574_s1 }
 0x5f7   : > { %p2576_p8 = pnand %p2575_p7, %p2748_p9  ;;  %p2581_p1 = por %p2580_p0, %p2579_p13 }
 0x5f9   : > { %p2577_p10 = pneg %p2576_p8 }
 0x5fb   : > { %p2582_p2 = pnand %p2581_p1, %p2577_p10 }
 0x5fd   : > { %2585 = shalt.err (!%p2582_p2)
}
 0x5fe   : > { %2109 = dma.vmem_to_hbm [thread:$0]  (%p2748_p9), %s1791_s23, 128, %s3835_s9, %s3839_s17  }
 0x5ff PF: > { %s4207_s8 = sld [smem:[#allocation19_spill]]  ;;  %p2127_p3 = pnand %p2009_p12, %p2757_p11 }
 0x600   : > { %s4209_s27 = sld [smem:[#allocation21_spill]] }
 0x601   : > { %p2128_p4 = pneg %p2127_p3 }
 0x605   : > { %s1804_s13 = sand.u32 1, %s4207_s8  }
 0x606   : > { %s1805_s29 = scalar_lea.sflag [#allocation4], %s1804_s13 }
 0x607   : > { %2623 = dma.done.wait (%p2128_p4), %s1805_s29, 1024  }
 0x608   : > { %2625 = vsyncadd (%p2128_p4), %s1805_s29, 4294966272  ;;  %s4210_s24 = sadd.s32 4294967294, %s4209_s27  }
 0x609   : > { %s1814_s19 = sand.u32 1, %s4210_s24  }
 0x60a   : > { %s1815_s14 = scalar_lea.sflag [#allocation12], %s1814_s19 }
 0x60b   : > { %2627 = dma.done.wait (%p2128_p4), %s1815_s14, 256  }
 0x60c   : > { %2629 = vsyncadd (%p2128_p4), %s1815_s14, 4294967040  ;;  %s32_s26 = sadd.s32 1, %s4209_s27   ;;  %s4211_s9 = sld [smem:[#allocation20_spill]] }
 0x60d   : > { %p29_p9 = scmp.ge.s32.totalorder %s32_s26, 4   ;;  %s4212_s23 = sld [smem:[#allocation24_spill]] }
 0x60e   : > { %s4213_s17 = sld [smem:[#allocation22_spill]]  ;;  %s4214_s21 = smov %s2636_s22 }
 0x60f   : > { %s4216_s24 = smov %s2648_s25 }
 0x610   :  { %31 = sbr.rel (!%p29_p9) target bundleno = 15 (0xf), region = 168 }
 0x612   : > { %s4215_s22 = smov %s4211_s9 }
 0x614   : > { %s4217_s25 = smov %s4213_s17 }
 0x615   :  { %1831 = vsyncpa [#allocation3], 1 }
 0x616   :  { %1833 = vsyncpa [#allocation3 + $0x1], 1 }
 0x617   :  { %1834 = vsyncpa [#allocation6], 1 }
 0x618   :  { %1836 = vsyncpa [#allocation6 + $0x1], 1 }
 0x619   :  { %1837 = vsyncpa [#allocation9], 1 }
 0x61a   :  { %1839 = vsyncpa [#allocation9 + $0x1], 1 }
 0x61b   :  { %1840 = vsyncpa [#allocation4], 1 }
 0x61c   :  { %1842 = vsyncpa [#allocation4 + $0x1], 1 }
 0x61d   :  { %1843 = vsyncpa [#allocation12], 1 }
 0x61e   :  { %1845 = vsyncpa [#allocation12 + $0x1], 1 }

</bundles_post_ra>
